<compile_context>
chip_gen: v6e
topology: v6e:2x2x1
jax: 0.10.0
libtpu: 0.0.40
codegen_flags: <defaults>
</compile_context>

<pallas_src>
import jax
import jax.numpy as jnp
from jax.experimental import pallas as pl
from jax.experimental.pallas import tpu as pltpu


# Matmul operand dtype fed to the MXU.  float32 is numerically safe on every
# generation; on v6e / v7x flip to jnp.bfloat16 for the native MXU fast path
# (halves operand traffic) after re-checking the output tolerance.
MXU_DTYPE = jnp.float32


# -----------------------------------------------------------------------------
# Fused NAFNet kernel (one image per grid step).
# -----------------------------------------------------------------------------
def _build_nafnet_kernel(H, W, Cin, Cw, DW):
    """Returns the fused kernel body, closed over static shapes."""
    HW = H * W
    base = W + 1          # column of pixel (0, 0) inside the padded scratch
    eps = 1e-6
    pow2_w = (W & (W - 1)) == 0

    def kernel(x_ref,
               iw_ref, ib_ref,
               ln1w_ref, ln1b_ref,
               w1_ref, b1_ref,
               w2_ref, b2_ref,
               wsca_ref, bsca_ref,
               w3_ref, b3_ref,
               beta_ref,
               ln2w_ref, ln2b_ref,
               w4_ref, b4_ref,
               w5_ref, b5_ref,
               gamma_ref,
               ew_ref, eb_ref,
               out_ref,
               xp_ref, taps_ref):
        img = x_ref[0]                                   # (Cin, HW)

        # Zero the flat padded scratch; only the interior columns are rewritten
        # below, so the W+1 pad columns on each side stay zero -- they realise
        # the h-direction zero padding of every 3x3 conv.
        xp_ref[...] = jnp.zeros_like(xp_ref)

        # Lane-index masks for the w-direction taps of the 3x3 convs.
        lane = jax.lax.broadcasted_iota(jnp.int32, (1, HW), 1)
        w_idx = jnp.bitwise_and(lane, W - 1) if pow2_w else jax.lax.rem(lane, W)
        ok_left = w_idx >= 1                             # sampling column w-1 valid
        ok_right = w_idx <= W - 2                        # sampling column w+1 valid

        def mm(a, b):                                    # MXU matmul, f32 accumulation
            return jnp.dot(a.astype(MXU_DTYPE), b.astype(MXU_DTYPE),
                           preferred_element_type=jnp.float32)

        def stage(rows, value):
            # Place `value` (rows, HW) into the interior of the padded scratch.
            xp_ref[0:rows, base:base + HW] = value

        def tap(rows, dy, dx):
            # Shifted view value[:, h+dy, w+dx] with zeros outside the image.
            start = base + dy * W + dx
            t = xp_ref[0:rows, start:start + HW]
            if dx == -1:
                t = jnp.where(ok_left, t, 0.0)
            elif dx == 1:
                t = jnp.where(ok_right, t, 0.0)
            return t

        def layer_norm(v, w, b):                         # LayerNorm2d over channels
            mu = jnp.mean(v, axis=0, keepdims=True)
            var = jnp.mean(v * v, axis=0, keepdims=True) - mu * mu
            return (v - mu) * jax.lax.rsqrt(var + eps) * w + b

        # ---------------- intro: dense 3x3 conv, Cin -> width -----------------
        stage(Cin, img)
        feat = jnp.zeros((Cw, HW), jnp.float32)
        k = 0
        for dy in (-1, 0, 1):
            for dx in (-1, 0, 1):
                feat = feat + mm(iw_ref[k], tap(Cin, dy, dx))
                k += 1
        feat = feat + ib_ref[...]

        # ------------------------------ NAFBlock -------------------------------
        x = layer_norm(feat, ln1w_ref[...], ln1b_ref[...])
        x = mm(w1_ref[...], x) + b1_ref[...]             # conv1: C -> 2C

        # conv2: 3x3 depthwise; 9 taps accumulated in registers (no scratch RMW).
        stage(DW, x)
        acc = jnp.zeros((DW, HW), jnp.float32)
        k = 0
        for dy in (-1, 0, 1):
            for dx in (-1, 0, 1):
                acc = acc + w2_ref[:, k:k + 1] * tap(DW, dy, dx)
                k += 1
        x = acc + b2_ref[...]

        x = x[0:Cw, :] * x[Cw:DW, :]                     # SimpleGate (sublane split)

        # SCA: 1x1 conv of the global mean == global mean of the 1x1 conv.
        sca = jnp.mean(mm(wsca_ref[...], x), axis=1, keepdims=True) + bsca_ref[...]
        x = x * sca

        x = mm(w3_ref[...], x) + b3_ref[...]             # conv3
        y = feat + x * beta_ref[...]                     # dropout1 == identity

        x = layer_norm(y, ln2w_ref[...], ln2b_ref[...])
        x = mm(w4_ref[...], x) + b4_ref[...]             # conv4: C -> 2C
        x = x[0:Cw, :] * x[Cw:DW, :]                     # SimpleGate
        x = mm(w5_ref[...], x) + b5_ref[...]             # conv5
        feat = y + x * gamma_ref[...]                    # dropout2 == identity

        # ---------- ending: dense 3x3 conv via im2col (single K = 9*C) ---------
        stage(Cw, feat)
        k = 0
        for dy in (-1, 0, 1):
            for dx in (-1, 0, 1):
                taps_ref[k * Cw:(k + 1) * Cw, :] = tap(Cw, dy, dx)
                k += 1
        out_ref[0] = mm(ew_ref[...], taps_ref[...]) + eb_ref[...] + img

    return kernel


def nafnet_forward(x_nchw, params):
    """NAFNet forward.  x_nchw: (B, img_channel, H, W) f32 -> same shape."""
    B, Cin, H, W = x_nchw.shape
    Cw = params['intro_b'].shape[0]            # width
    DW = params['blk']['b1'].shape[0]          # dw_channel = 2 * width
    HW = H * W
    PADW = HW + 2 * W + 2

    # check_image_size: padder_size = 2**len(enc_blk_nums) = 1 -> no padding.
    # TODO(synk): for large H, W tile the grid over row bands with a 1-row halo
    # (plus a cross-tile reduction for SCA's global mean) so the per-step
    # working set stays inside v7x's 64 MiB VMEM.

    blk = params['blk']
    col = lambda v: v.reshape(-1, 1).astype(jnp.float32)
    f32 = lambda v: v.astype(jnp.float32)
    # intro weight (Cout, Cin, 3, 3) -> (9, Cout, Cin), tap-major.
    iw = f32(jnp.transpose(params['intro_w'], (2, 3, 0, 1)).reshape(9, Cw, Cin))
    # ending weight (Cout, Cin, 3, 3) -> (Cout, 9*Cin), matching im2col row order.
    ew = f32(jnp.transpose(params['end_w'], (0, 2, 3, 1)).reshape(Cin, 9 * Cw))
    # depthwise weight (DW, 3, 3) -> (DW, 9), tap-major columns.
    w2 = f32(blk['w2'].reshape(DW, 9))

    args = (
        f32(x_nchw).reshape(B, Cin, HW),                  # free reshape, no transpose
        iw, col(params['intro_b']),
        col(blk['ln1_w']), col(blk['ln1_b']),
        f32(blk['w1']), col(blk['b1']),
        w2, col(blk['b2']),
        f32(blk['wsca']), col(blk['bsca']),
        f32(blk['w3']), col(blk['b3']),
        col(blk['beta']),
        col(blk['ln2_w']), col(blk['ln2_b']),
        f32(blk['w4']), col(blk['b4']),
        f32(blk['w5']), col(blk['b5']),
        col(blk['gamma']),
        ew, col(params['end_b']),
    )

    def _full(a):
        nd = a.ndim
        return pl.BlockSpec(a.shape, lambda i, _nd=nd: (0,) * _nd)

    in_specs = [pl.BlockSpec((1, Cin, HW), lambda i: (i, 0, 0))]
    in_specs += [_full(a) for a in args[1:]]

    out_flat = pl.pallas_call(
        _build_nafnet_kernel(H, W, Cin, Cw, DW),
        out_shape=jax.ShapeDtypeStruct((B, Cin, HW), jnp.float32),
        grid=(B,),
        in_specs=in_specs,
        out_specs=pl.BlockSpec((1, Cin, HW), lambda i: (i, 0, 0)),
        scratch_shapes=[
            pltpu.VMEM((DW, PADW), jnp.float32),      # flat zero-padded conv input
            pltpu.VMEM((9 * Cw, HW), jnp.float32),    # im2col taps for ending conv
        ],
        compiler_params=pltpu.CompilerParams(
            dimension_semantics=("parallel",)),
    )(*args)
    return out_flat.reshape(B, Cin, H, W)


# -----------------------------------------------------------------------------
# Pure-JAX reference (NCHW, mirrors the PyTorch module) for correctness check.
# -----------------------------------------------------------------------------
def _conv3x3_ref(x, w, b, groups=1):
    return jax.lax.conv_general_dilated(
        x, w, window_strides=(1, 1), padding=((1, 1), (1, 1)),
        dimension_numbers=('NCHW', 'OIHW', 'NCHW'),
        feature_group_count=groups) + b.reshape(1, -1, 1, 1)


def _pw_ref(x, w, b):                          # 1x1 conv
    return jnp.einsum('oc,bchw->bohw', w, x) + b.reshape(1, -1, 1, 1)


def _ln2d_ref(x, w, b, eps=1e-6):
    mu = x.mean(1, keepdims=True)
    var = ((x - mu) ** 2).mean(1, keepdims=True)
    y = (x - mu) / jnp.sqrt(var + eps)
    return w.reshape(1, -1, 1, 1) * y + b.reshape(1, -1, 1, 1)


def _nafblock_ref(x, p):
    C = p['ln1_w'].shape[0]
    inp = x
    h = _ln2d_ref(x, p['ln1_w'], p['ln1_b'])
    h = _pw_ref(h, p['w1'], p['b1'])
    h = _conv3x3_ref(h, p['w2'][:, None, :, :], p['b2'], groups=p['b2'].shape[0])
    h = h[:, :C] * h[:, C:]
    pooled = h.mean(axis=(2, 3), keepdims=True)
    sca = jnp.einsum('oc,bcij->boij', p['wsca'], pooled) + p['bsca'].reshape(1, -1, 1, 1)
    h = h * sca
    h = _pw_ref(h, p['w3'], p['b3'])
    y = inp + h * p['beta'].reshape(1, -1, 1, 1)
    h = _ln2d_ref(y, p['ln2_w'], p['ln2_b'])
    h = _pw_ref(h, p['w4'], p['b4'])
    h = h[:, :C] * h[:, C:]
    h = _pw_ref(h, p['w5'], p['b5'])
    return y + h * p['gamma'].reshape(1, -1, 1, 1)


def nafnet_ref(x_nchw, params):
    x = x_nchw.astype(jnp.float32)
    # check_image_size is a no-op (padder_size = 1), crop is a no-op.
    feat = _conv3x3_ref(x, params['intro_w'], params['intro_b'])
    feat = _nafblock_ref(feat, params['blk'])
    return _conv3x3_ref(feat, params['end_w'], params['end_b']) + x


# -----------------------------------------------------------------------------
# Deterministic synthetic parameters (PyTorch-style layouts).
# -----------------------------------------------------------------------------
def init_params(key, img_channel=3, width=16):
    c, dw = width, 2 * width
    ks = iter(jax.random.split(key, 32))
    nrm = lambda shape, s=0.1: (s * jax.random.normal(next(ks), shape)
                                ).astype(jnp.float32)
    blk = dict(
        ln1_w=jnp.ones((c,), jnp.float32), ln1_b=jnp.zeros((c,), jnp.float32),
        w1=nrm((dw, c)), b1=nrm((dw,), 0.02),
        w2=nrm((dw, 3, 3)), b2=nrm((dw,), 0.02),
        wsca=nrm((c, c)), bsca=nrm((c,), 0.02),
        w3=nrm((c, c)), b3=nrm((c,), 0.02),
        beta=nrm((c,), 0.5),      # torch init is zeros; nonzero to exercise path
        ln2_w=jnp.ones((c,), jnp.float32), ln2_b=jnp.zeros((c,), jnp.float32),
        w4=nrm((dw, c)), b4=nrm((dw,), 0.02),
        w5=nrm((c, c)), b5=nrm((c,), 0.02),
        gamma=nrm((c,), 0.5),     # torch init is zeros; nonzero to exercise path
    )
    return dict(
        intro_w=nrm((c, img_channel, 3, 3)), intro_b=nrm((c,), 0.02),
        end_w=nrm((img_channel, c, 3, 3)), end_b=nrm((img_channel,), 0.02),
        blk=blk,
    )


if __name__ == "__main__":
    key = jax.random.PRNGKey(0)
    kx, kp = jax.random.split(key)
    B, C, H, W = 2, 3, 16, 16
    x = jax.random.normal(kx, (B, C, H, W), dtype=jnp.float32)
    params = init_params(kp)

    out = jax.block_until_ready(jax.jit(nafnet_forward)(x, params))
    ref = jax.block_until_ready(jax.jit(nafnet_ref)(x, params))

    assert out.shape == (B, C, H, W), out.shape
    err = float(jnp.max(jnp.abs(out - ref)))
    assert err < 2e-3, f"max abs error vs reference: {err}"
    print("KERNEL_OK")
</pallas_src>

<mosaic_0001>
module attributes {stable_mosaic.version = 11 : i64} {
  func.func @kernel(%arg0: i32, %arg1: memref<1x3x256xf32, #tpu.memory_space<vmem>>, %arg2: memref<9x16x3xf32, #tpu.memory_space<vmem>>, %arg3: memref<16x1xf32, #tpu.memory_space<vmem>>, %arg4: memref<16x1xf32, #tpu.memory_space<vmem>>, %arg5: memref<16x1xf32, #tpu.memory_space<vmem>>, %arg6: memref<32x16xf32, #tpu.memory_space<vmem>>, %arg7: memref<32x1xf32, #tpu.memory_space<vmem>>, %arg8: memref<32x9xf32, #tpu.memory_space<vmem>>, %arg9: memref<32x1xf32, #tpu.memory_space<vmem>>, %arg10: memref<16x16xf32, #tpu.memory_space<vmem>>, %arg11: memref<16x1xf32, #tpu.memory_space<vmem>>, %arg12: memref<16x16xf32, #tpu.memory_space<vmem>>, %arg13: memref<16x1xf32, #tpu.memory_space<vmem>>, %arg14: memref<16x1xf32, #tpu.memory_space<vmem>>, %arg15: memref<16x1xf32, #tpu.memory_space<vmem>>, %arg16: memref<16x1xf32, #tpu.memory_space<vmem>>, %arg17: memref<32x16xf32, #tpu.memory_space<vmem>>, %arg18: memref<32x1xf32, #tpu.memory_space<vmem>>, %arg19: memref<16x16xf32, #tpu.memory_space<vmem>>, %arg20: memref<16x1xf32, #tpu.memory_space<vmem>>, %arg21: memref<16x1xf32, #tpu.memory_space<vmem>>, %arg22: memref<3x144xf32, #tpu.memory_space<vmem>>, %arg23: memref<3x1xf32, #tpu.memory_space<vmem>>, %arg24: memref<1x3x256xf32, #tpu.memory_space<vmem>>, %arg25: memref<32x290xf32, #tpu.memory_space<vmem>>, %arg26: memref<144x256xf32, #tpu.memory_space<vmem>>) attributes {dimension_semantics = [#tpu.dimension_semantics<parallel>], iteration_bounds = array<i64: 2>, scalar_prefetch = 0 : i64, scratch_operands = 2 : i64, tpu.core_type = #tpu.core_type<tc>, window_params = [{transform_indices = @transform_0, window_bounds = array<i64: 1, 3, 256>}, {pipeline_mode = #tpu.pipeline_mode<synchronous>, transform_indices = @transform_1, window_bounds = array<i64: 9, 16, 3>}, {pipeline_mode = #tpu.pipeline_mode<synchronous>, transform_indices = @transform_2, window_bounds = array<i64: 16, 1>}, {pipeline_mode = #tpu.pipeline_mode<synchronous>, transform_indices = @transform_3, window_bounds = array<i64: 16, 1>}, {pipeline_mode = #tpu.pipeline_mode<synchronous>, transform_indices = @transform_4, window_bounds = array<i64: 16, 1>}, {pipeline_mode = #tpu.pipeline_mode<synchronous>, transform_indices = @transform_5, window_bounds = array<i64: 32, 16>}, {pipeline_mode = #tpu.pipeline_mode<synchronous>, transform_indices = @transform_6, window_bounds = array<i64: 32, 1>}, {pipeline_mode = #tpu.pipeline_mode<synchronous>, transform_indices = @transform_7, window_bounds = array<i64: 32, 9>}, {pipeline_mode = #tpu.pipeline_mode<synchronous>, transform_indices = @transform_8, window_bounds = array<i64: 32, 1>}, {pipeline_mode = #tpu.pipeline_mode<synchronous>, transform_indices = @transform_9, window_bounds = array<i64: 16, 16>}, {pipeline_mode = #tpu.pipeline_mode<synchronous>, transform_indices = @transform_10, window_bounds = array<i64: 16, 1>}, {pipeline_mode = #tpu.pipeline_mode<synchronous>, transform_indices = @transform_11, window_bounds = array<i64: 16, 16>}, {pipeline_mode = #tpu.pipeline_mode<synchronous>, transform_indices = @transform_12, window_bounds = array<i64: 16, 1>}, {pipeline_mode = #tpu.pipeline_mode<synchronous>, transform_indices = @transform_13, window_bounds = array<i64: 16, 1>}, {pipeline_mode = #tpu.pipeline_mode<synchronous>, transform_indices = @transform_14, window_bounds = array<i64: 16, 1>}, {pipeline_mode = #tpu.pipeline_mode<synchronous>, transform_indices = @transform_15, window_bounds = array<i64: 16, 1>}, {pipeline_mode = #tpu.pipeline_mode<synchronous>, transform_indices = @transform_16, window_bounds = array<i64: 32, 16>}, {pipeline_mode = #tpu.pipeline_mode<synchronous>, transform_indices = @transform_17, window_bounds = array<i64: 32, 1>}, {pipeline_mode = #tpu.pipeline_mode<synchronous>, transform_indices = @transform_18, window_bounds = array<i64: 16, 16>}, {pipeline_mode = #tpu.pipeline_mode<synchronous>, transform_indices = @transform_19, window_bounds = array<i64: 16, 1>}, {pipeline_mode = #tpu.pipeline_mode<synchronous>, transform_indices = @transform_20, window_bounds = array<i64: 16, 1>}, {pipeline_mode = #tpu.pipeline_mode<synchronous>, transform_indices = @transform_21, window_bounds = array<i64: 3, 144>}, {pipeline_mode = #tpu.pipeline_mode<synchronous>, transform_indices = @transform_22, window_bounds = array<i64: 3, 1>}, {transform_indices = @transform_23, window_bounds = array<i64: 1, 3, 256>}]} {
    %c0 = arith.constant 0 : index
    %c0_0 = arith.constant 0 : index
    %c0_1 = arith.constant 0 : index
    %0 = vector.load %arg1[%c0, %c0_0, %c0_1] : memref<1x3x256xf32, #tpu.memory_space<vmem>>, vector<1x3x256xf32>
    %1 = vector.shape_cast %0 : vector<1x3x256xf32> to vector<3x256xf32>
    %cst = arith.constant 0.000000e+00 : f32
    %2 = vector.broadcast %cst : f32 to vector<32x290xf32>
    %c0_2 = arith.constant 0 : index
    %c0_3 = arith.constant 0 : index
    %3 = vector.load %arg25[%c0_2, %c0_3] : memref<32x290xf32, #tpu.memory_space<vmem>>, vector<32x290xf32>
    tpu.vector_store %arg25[%c0_2, %c0_3], %2 {strides = array<i32>} : memref<32x290xf32, #tpu.memory_space<vmem>>, vector<32x290xf32>,
    %4 = tpu.iota {dimensions = array<i32: 1>} : vector<1x256xi32>
    %c15_i32 = arith.constant 15 : i32
    %5 = vector.broadcast %c15_i32 : i32 to vector<1x256xi32>
    %6 = arith.andi %4, %5 : vector<1x256xi32>
    %c1_i32 = arith.constant 1 : i32
    %7 = vector.broadcast %c1_i32 : i32 to vector<1x256xi32>
    %8 = arith.cmpi sge, %6, %7 : vector<1x256xi32>
    %c14_i32 = arith.constant 14 : i32
    %9 = vector.broadcast %c14_i32 : i32 to vector<1x256xi32>
    %10 = arith.cmpi sle, %6, %9 : vector<1x256xi32>
    %c0_4 = arith.constant 0 : index
    %c17 = arith.constant 17 : index
    %11 = vector.load %arg25[%c0_4, %c17] : memref<32x290xf32, #tpu.memory_space<vmem>>, vector<3x256xf32>
    tpu.vector_store %arg25[%c0_4, %c17], %1 {strides = array<i32>} : memref<32x290xf32, #tpu.memory_space<vmem>>, vector<3x256xf32>,
    %cst_5 = arith.constant 0.000000e+00 : f32
    %12 = vector.broadcast %cst_5 : f32 to vector<16x256xf32>
    %c0_6 = arith.constant 0 : index
    %c0_7 = arith.constant 0 : index
    %c0_8 = arith.constant 0 : index
    %13 = vector.load %arg2[%c0_6, %c0_7, %c0_8] : memref<9x16x3xf32, #tpu.memory_space<vmem>>, vector<1x16x3xf32>
    %14 = vector.shape_cast %13 : vector<1x16x3xf32> to vector<16x3xf32>
    %c0_9 = arith.constant 0 : index
    %c0_10 = arith.constant 0 : index
    %15 = vector.load %arg25[%c0_9, %c0_10] : memref<32x290xf32, #tpu.memory_space<vmem>>, vector<3x256xf32>
    %cst_11 = arith.constant 0.000000e+00 : f32
    %16 = vector.shape_cast %8 : vector<1x256xi1> to vector<1x256xi1>
    %17 = vector.broadcast %16 : vector<1x256xi1> to vector<3x256xi1>
    %18 = vector.broadcast %cst_11 : f32 to vector<3x256xf32>
    %19 = arith.select %17, %15, %18 : vector<3x256xi1>, vector<3x256xf32>
    %cst_12 = arith.constant dense<0.000000e+00> : vector<16x256xf32>
    %20 = tpu.matmul %14, %19, %cst_12 {dimension_numbers = #tpu.dot_dimension_numbers<[1], [0], [0], [1], [0, 0, 1, 1], [], []>} : vector<16x3xf32>, vector<3x256xf32>, vector<16x256xf32> -> vector<16x256xf32>
    %21 = arith.addf %12, %20 : vector<16x256xf32>
    %c1 = arith.constant 1 : index
    %c0_13 = arith.constant 0 : index
    %c0_14 = arith.constant 0 : index
    %22 = vector.load %arg2[%c1, %c0_13, %c0_14] : memref<9x16x3xf32, #tpu.memory_space<vmem>>, vector<1x16x3xf32>
    %23 = vector.shape_cast %22 : vector<1x16x3xf32> to vector<16x3xf32>
    %c0_15 = arith.constant 0 : index
    %c1_16 = arith.constant 1 : index
    %24 = vector.load %arg25[%c0_15, %c1_16] : memref<32x290xf32, #tpu.memory_space<vmem>>, vector<3x256xf32>
    %cst_17 = arith.constant dense<0.000000e+00> : vector<16x256xf32>
    %25 = tpu.matmul %23, %24, %cst_17 {dimension_numbers = #tpu.dot_dimension_numbers<[1], [0], [0], [1], [0, 0, 1, 1], [], []>} : vector<16x3xf32>, vector<3x256xf32>, vector<16x256xf32> -> vector<16x256xf32>
    %26 = arith.addf %21, %25 : vector<16x256xf32>
    %c2 = arith.constant 2 : index
    %c0_18 = arith.constant 0 : index
    %c0_19 = arith.constant 0 : index
    %27 = vector.load %arg2[%c2, %c0_18, %c0_19] : memref<9x16x3xf32, #tpu.memory_space<vmem>>, vector<1x16x3xf32>
    %28 = vector.shape_cast %27 : vector<1x16x3xf32> to vector<16x3xf32>
    %c0_20 = arith.constant 0 : index
    %c2_21 = arith.constant 2 : index
    %29 = vector.load %arg25[%c0_20, %c2_21] : memref<32x290xf32, #tpu.memory_space<vmem>>, vector<3x256xf32>
    %cst_22 = arith.constant 0.000000e+00 : f32
    %30 = vector.shape_cast %10 : vector<1x256xi1> to vector<1x256xi1>
    %31 = vector.broadcast %30 : vector<1x256xi1> to vector<3x256xi1>
    %32 = vector.broadcast %cst_22 : f32 to vector<3x256xf32>
    %33 = arith.select %31, %29, %32 : vector<3x256xi1>, vector<3x256xf32>
    %cst_23 = arith.constant dense<0.000000e+00> : vector<16x256xf32>
    %34 = tpu.matmul %28, %33, %cst_23 {dimension_numbers = #tpu.dot_dimension_numbers<[1], [0], [0], [1], [0, 0, 1, 1], [], []>} : vector<16x3xf32>, vector<3x256xf32>, vector<16x256xf32> -> vector<16x256xf32>
    %35 = arith.addf %26, %34 : vector<16x256xf32>
    %c3 = arith.constant 3 : index
    %c0_24 = arith.constant 0 : index
    %c0_25 = arith.constant 0 : index
    %36 = vector.load %arg2[%c3, %c0_24, %c0_25] : memref<9x16x3xf32, #tpu.memory_space<vmem>>, vector<1x16x3xf32>
    %37 = vector.shape_cast %36 : vector<1x16x3xf32> to vector<16x3xf32>
    %c0_26 = arith.constant 0 : index
    %c16 = arith.constant 16 : index
    %38 = vector.load %arg25[%c0_26, %c16] : memref<32x290xf32, #tpu.memory_space<vmem>>, vector<3x256xf32>
    %cst_27 = arith.constant 0.000000e+00 : f32
    %39 = vector.shape_cast %8 : vector<1x256xi1> to vector<1x256xi1>
    %40 = vector.broadcast %39 : vector<1x256xi1> to vector<3x256xi1>
    %41 = vector.broadcast %cst_27 : f32 to vector<3x256xf32>
    %42 = arith.select %40, %38, %41 : vector<3x256xi1>, vector<3x256xf32>
    %cst_28 = arith.constant dense<0.000000e+00> : vector<16x256xf32>
    %43 = tpu.matmul %37, %42, %cst_28 {dimension_numbers = #tpu.dot_dimension_numbers<[1], [0], [0], [1], [0, 0, 1, 1], [], []>} : vector<16x3xf32>, vector<3x256xf32>, vector<16x256xf32> -> vector<16x256xf32>
    %44 = arith.addf %35, %43 : vector<16x256xf32>
    %c4 = arith.constant 4 : index
    %c0_29 = arith.constant 0 : index
    %c0_30 = arith.constant 0 : index
    %45 = vector.load %arg2[%c4, %c0_29, %c0_30] : memref<9x16x3xf32, #tpu.memory_space<vmem>>, vector<1x16x3xf32>
    %46 = vector.shape_cast %45 : vector<1x16x3xf32> to vector<16x3xf32>
    %c0_31 = arith.constant 0 : index
    %c17_32 = arith.constant 17 : index
    %47 = vector.load %arg25[%c0_31, %c17_32] : memref<32x290xf32, #tpu.memory_space<vmem>>, vector<3x256xf32>
    %cst_33 = arith.constant dense<0.000000e+00> : vector<16x256xf32>
    %48 = tpu.matmul %46, %47, %cst_33 {dimension_numbers = #tpu.dot_dimension_numbers<[1], [0], [0], [1], [0, 0, 1, 1], [], []>} : vector<16x3xf32>, vector<3x256xf32>, vector<16x256xf32> -> vector<16x256xf32>
    %49 = arith.addf %44, %48 : vector<16x256xf32>
    %c5 = arith.constant 5 : index
    %c0_34 = arith.constant 0 : index
    %c0_35 = arith.constant 0 : index
    %50 = vector.load %arg2[%c5, %c0_34, %c0_35] : memref<9x16x3xf32, #tpu.memory_space<vmem>>, vector<1x16x3xf32>
    %51 = vector.shape_cast %50 : vector<1x16x3xf32> to vector<16x3xf32>
    %c0_36 = arith.constant 0 : index
    %c18 = arith.constant 18 : index
    %52 = vector.load %arg25[%c0_36, %c18] : memref<32x290xf32, #tpu.memory_space<vmem>>, vector<3x256xf32>
    %cst_37 = arith.constant 0.000000e+00 : f32
    %53 = vector.shape_cast %10 : vector<1x256xi1> to vector<1x256xi1>
    %54 = vector.broadcast %53 : vector<1x256xi1> to vector<3x256xi1>
    %55 = vector.broadcast %cst_37 : f32 to vector<3x256xf32>
    %56 = arith.select %54, %52, %55 : vector<3x256xi1>, vector<3x256xf32>
    %cst_38 = arith.constant dense<0.000000e+00> : vector<16x256xf32>
    %57 = tpu.matmul %51, %56, %cst_38 {dimension_numbers = #tpu.dot_dimension_numbers<[1], [0], [0], [1], [0, 0, 1, 1], [], []>} : vector<16x3xf32>, vector<3x256xf32>, vector<16x256xf32> -> vector<16x256xf32>
    %58 = arith.addf %49, %57 : vector<16x256xf32>
    %c6 = arith.constant 6 : index
    %c0_39 = arith.constant 0 : index
    %c0_40 = arith.constant 0 : index
    %59 = vector.load %arg2[%c6, %c0_39, %c0_40] : memref<9x16x3xf32, #tpu.memory_space<vmem>>, vector<1x16x3xf32>
    %60 = vector.shape_cast %59 : vector<1x16x3xf32> to vector<16x3xf32>
    %c0_41 = arith.constant 0 : index
    %c32 = arith.constant 32 : index
    %61 = vector.load %arg25[%c0_41, %c32] : memref<32x290xf32, #tpu.memory_space<vmem>>, vector<3x256xf32>
    %cst_42 = arith.constant 0.000000e+00 : f32
    %62 = vector.shape_cast %8 : vector<1x256xi1> to vector<1x256xi1>
    %63 = vector.broadcast %62 : vector<1x256xi1> to vector<3x256xi1>
    %64 = vector.broadcast %cst_42 : f32 to vector<3x256xf32>
    %65 = arith.select %63, %61, %64 : vector<3x256xi1>, vector<3x256xf32>
    %cst_43 = arith.constant dense<0.000000e+00> : vector<16x256xf32>
    %66 = tpu.matmul %60, %65, %cst_43 {dimension_numbers = #tpu.dot_dimension_numbers<[1], [0], [0], [1], [0, 0, 1, 1], [], []>} : vector<16x3xf32>, vector<3x256xf32>, vector<16x256xf32> -> vector<16x256xf32>
    %67 = arith.addf %58, %66 : vector<16x256xf32>
    %c7 = arith.constant 7 : index
    %c0_44 = arith.constant 0 : index
    %c0_45 = arith.constant 0 : index
    %68 = vector.load %arg2[%c7, %c0_44, %c0_45] : memref<9x16x3xf32, #tpu.memory_space<vmem>>, vector<1x16x3xf32>
    %69 = vector.shape_cast %68 : vector<1x16x3xf32> to vector<16x3xf32>
    %c0_46 = arith.constant 0 : index
    %c33 = arith.constant 33 : index
    %70 = vector.load %arg25[%c0_46, %c33] : memref<32x290xf32, #tpu.memory_space<vmem>>, vector<3x256xf32>
    %cst_47 = arith.constant dense<0.000000e+00> : vector<16x256xf32>
    %71 = tpu.matmul %69, %70, %cst_47 {dimension_numbers = #tpu.dot_dimension_numbers<[1], [0], [0], [1], [0, 0, 1, 1], [], []>} : vector<16x3xf32>, vector<3x256xf32>, vector<16x256xf32> -> vector<16x256xf32>
    %72 = arith.addf %67, %71 : vector<16x256xf32>
    %c8 = arith.constant 8 : index
    %c0_48 = arith.constant 0 : index
    %c0_49 = arith.constant 0 : index
    %73 = vector.load %arg2[%c8, %c0_48, %c0_49] : memref<9x16x3xf32, #tpu.memory_space<vmem>>, vector<1x16x3xf32>
    %74 = vector.shape_cast %73 : vector<1x16x3xf32> to vector<16x3xf32>
    %c0_50 = arith.constant 0 : index
    %c34 = arith.constant 34 : index
    %75 = vector.load %arg25[%c0_50, %c34] : memref<32x290xf32, #tpu.memory_space<vmem>>, vector<3x256xf32>
    %cst_51 = arith.constant 0.000000e+00 : f32
    %76 = vector.shape_cast %10 : vector<1x256xi1> to vector<1x256xi1>
    %77 = vector.broadcast %76 : vector<1x256xi1> to vector<3x256xi1>
    %78 = vector.broadcast %cst_51 : f32 to vector<3x256xf32>
    %79 = arith.select %77, %75, %78 : vector<3x256xi1>, vector<3x256xf32>
    %cst_52 = arith.constant dense<0.000000e+00> : vector<16x256xf32>
    %80 = tpu.matmul %74, %79, %cst_52 {dimension_numbers = #tpu.dot_dimension_numbers<[1], [0], [0], [1], [0, 0, 1, 1], [], []>} : vector<16x3xf32>, vector<3x256xf32>, vector<16x256xf32> -> vector<16x256xf32>
    %81 = arith.addf %72, %80 : vector<16x256xf32>
    %c0_53 = arith.constant 0 : index
    %c0_54 = arith.constant 0 : index
    %82 = vector.load %arg3[%c0_53, %c0_54] : memref<16x1xf32, #tpu.memory_space<vmem>>, vector<16x1xf32>
    %83 = vector.broadcast %82 : vector<16x1xf32> to vector<16x256xf32>
    %84 = arith.addf %81, %83 : vector<16x256xf32>
    %c0_55 = arith.constant 0 : index
    %c0_56 = arith.constant 0 : index
    %85 = vector.load %arg4[%c0_55, %c0_56] : memref<16x1xf32, #tpu.memory_space<vmem>>, vector<16x1xf32>
    %c0_57 = arith.constant 0 : index
    %c0_58 = arith.constant 0 : index
    %86 = vector.load %arg5[%c0_57, %c0_58] : memref<16x1xf32, #tpu.memory_space<vmem>>, vector<16x1xf32>
    %cst_59 = arith.constant dense<0.000000e+00> : vector<256xf32>
    %87 = vector.multi_reduction <add>, %84, %cst_59 [0] : vector<16x256xf32> to vector<256xf32>
    %88 = vector.shape_cast %87 : vector<256xf32> to vector<1x256xf32>
    %cst_60 = arith.constant 1.600000e+01 : f32
    %89 = vector.broadcast %cst_60 : f32 to vector<1x256xf32>
    %90 = arith.divf %88, %89 : vector<1x256xf32>
    %91 = arith.mulf %84, %84 : vector<16x256xf32>
    %cst_61 = arith.constant dense<0.000000e+00> : vector<256xf32>
    %92 = vector.multi_reduction <add>, %91, %cst_61 [0] : vector<16x256xf32> to vector<256xf32>
    %93 = vector.shape_cast %92 : vector<256xf32> to vector<1x256xf32>
    %cst_62 = arith.constant 1.600000e+01 : f32
    %94 = vector.broadcast %cst_62 : f32 to vector<1x256xf32>
    %95 = arith.divf %93, %94 : vector<1x256xf32>
    %96 = arith.mulf %90, %90 : vector<1x256xf32>
    %97 = arith.subf %95, %96 : vector<1x256xf32>
    %98 = vector.broadcast %90 : vector<1x256xf32> to vector<16x256xf32>
    %99 = arith.subf %84, %98 : vector<16x256xf32>
    %cst_63 = arith.constant 9.99999997E-7 : f32
    %100 = vector.broadcast %cst_63 : f32 to vector<1x256xf32>
    %101 = arith.addf %97, %100 : vector<1x256xf32>
    %102 = math.rsqrt %101 : vector<1x256xf32>
    %103 = vector.broadcast %102 : vector<1x256xf32> to vector<16x256xf32>
    %104 = arith.mulf %99, %103 : vector<16x256xf32>
    %105 = vector.broadcast %85 : vector<16x1xf32> to vector<16x256xf32>
    %106 = arith.mulf %104, %105 : vector<16x256xf32>
    %107 = vector.broadcast %86 : vector<16x1xf32> to vector<16x256xf32>
    %108 = arith.addf %106, %107 : vector<16x256xf32>
    %c0_64 = arith.constant 0 : index
    %c0_65 = arith.constant 0 : index
    %109 = vector.load %arg6[%c0_64, %c0_65] : memref<32x16xf32, #tpu.memory_space<vmem>>, vector<32x16xf32>
    %cst_66 = arith.constant dense<0.000000e+00> : vector<32x256xf32>
    %110 = tpu.matmul %109, %108, %cst_66 {dimension_numbers = #tpu.dot_dimension_numbers<[1], [0], [0], [1], [0, 0, 1, 1], [], []>} : vector<32x16xf32>, vector<16x256xf32>, vector<32x256xf32> -> vector<32x256xf32>
    %c0_67 = arith.constant 0 : index
    %c0_68 = arith.constant 0 : index
    %111 = vector.load %arg7[%c0_67, %c0_68] : memref<32x1xf32, #tpu.memory_space<vmem>>, vector<32x1xf32>
    %112 = vector.broadcast %111 : vector<32x1xf32> to vector<32x256xf32>
    %113 = arith.addf %110, %112 : vector<32x256xf32>
    %c0_69 = arith.constant 0 : index
    %c17_70 = arith.constant 17 : index
    %114 = vector.load %arg25[%c0_69, %c17_70] : memref<32x290xf32, #tpu.memory_space<vmem>>, vector<32x256xf32>
    tpu.vector_store %arg25[%c0_69, %c17_70], %113 {strides = array<i32>} : memref<32x290xf32, #tpu.memory_space<vmem>>, vector<32x256xf32>,
    %cst_71 = arith.constant 0.000000e+00 : f32
    %115 = vector.broadcast %cst_71 : f32 to vector<32x256xf32>
    %c0_72 = arith.constant 0 : index
    %c0_73 = arith.constant 0 : index
    %116 = vector.load %arg8[%c0_72, %c0_73] : memref<32x9xf32, #tpu.memory_space<vmem>>, vector<32x1xf32>
    %c0_74 = arith.constant 0 : index
    %c0_75 = arith.constant 0 : index
    %117 = vector.load %arg25[%c0_74, %c0_75] : memref<32x290xf32, #tpu.memory_space<vmem>>, vector<32x256xf32>
    %cst_76 = arith.constant 0.000000e+00 : f32
    %118 = vector.shape_cast %8 : vector<1x256xi1> to vector<1x256xi1>
    %119 = vector.broadcast %118 : vector<1x256xi1> to vector<32x256xi1>
    %120 = vector.broadcast %cst_76 : f32 to vector<32x256xf32>
    %121 = arith.select %119, %117, %120 : vector<32x256xi1>, vector<32x256xf32>
    %122 = vector.broadcast %116 : vector<32x1xf32> to vector<32x256xf32>
    %123 = arith.mulf %122, %121 : vector<32x256xf32>
    %124 = arith.addf %115, %123 : vector<32x256xf32>
    %c0_77 = arith.constant 0 : index
    %c1_78 = arith.constant 1 : index
    %125 = vector.load %arg8[%c0_77, %c1_78] : memref<32x9xf32, #tpu.memory_space<vmem>>, vector<32x1xf32>
    %c0_79 = arith.constant 0 : index
    %c1_80 = arith.constant 1 : index
    %126 = vector.load %arg25[%c0_79, %c1_80] : memref<32x290xf32, #tpu.memory_space<vmem>>, vector<32x256xf32>
    %127 = vector.broadcast %125 : vector<32x1xf32> to vector<32x256xf32>
    %128 = arith.mulf %127, %126 : vector<32x256xf32>
    %129 = arith.addf %124, %128 : vector<32x256xf32>
    %c0_81 = arith.constant 0 : index
    %c2_82 = arith.constant 2 : index
    %130 = vector.load %arg8[%c0_81, %c2_82] : memref<32x9xf32, #tpu.memory_space<vmem>>, vector<32x1xf32>
    %c0_83 = arith.constant 0 : index
    %c2_84 = arith.constant 2 : index
    %131 = vector.load %arg25[%c0_83, %c2_84] : memref<32x290xf32, #tpu.memory_space<vmem>>, vector<32x256xf32>
    %cst_85 = arith.constant 0.000000e+00 : f32
    %132 = vector.shape_cast %10 : vector<1x256xi1> to vector<1x256xi1>
    %133 = vector.broadcast %132 : vector<1x256xi1> to vector<32x256xi1>
    %134 = vector.broadcast %cst_85 : f32 to vector<32x256xf32>
    %135 = arith.select %133, %131, %134 : vector<32x256xi1>, vector<32x256xf32>
    %136 = vector.broadcast %130 : vector<32x1xf32> to vector<32x256xf32>
    %137 = arith.mulf %136, %135 : vector<32x256xf32>
    %138 = arith.addf %129, %137 : vector<32x256xf32>
    %c0_86 = arith.constant 0 : index
    %c3_87 = arith.constant 3 : index
    %139 = vector.load %arg8[%c0_86, %c3_87] : memref<32x9xf32, #tpu.memory_space<vmem>>, vector<32x1xf32>
    %c0_88 = arith.constant 0 : index
    %c16_89 = arith.constant 16 : index
    %140 = vector.load %arg25[%c0_88, %c16_89] : memref<32x290xf32, #tpu.memory_space<vmem>>, vector<32x256xf32>
    %cst_90 = arith.constant 0.000000e+00 : f32
    %141 = vector.shape_cast %8 : vector<1x256xi1> to vector<1x256xi1>
    %142 = vector.broadcast %141 : vector<1x256xi1> to vector<32x256xi1>
    %143 = vector.broadcast %cst_90 : f32 to vector<32x256xf32>
    %144 = arith.select %142, %140, %143 : vector<32x256xi1>, vector<32x256xf32>
    %145 = vector.broadcast %139 : vector<32x1xf32> to vector<32x256xf32>
    %146 = arith.mulf %145, %144 : vector<32x256xf32>
    %147 = arith.addf %138, %146 : vector<32x256xf32>
    %c0_91 = arith.constant 0 : index
    %c4_92 = arith.constant 4 : index
    %148 = vector.load %arg8[%c0_91, %c4_92] : memref<32x9xf32, #tpu.memory_space<vmem>>, vector<32x1xf32>
    %c0_93 = arith.constant 0 : index
    %c17_94 = arith.constant 17 : index
    %149 = vector.load %arg25[%c0_93, %c17_94] : memref<32x290xf32, #tpu.memory_space<vmem>>, vector<32x256xf32>
    %150 = vector.broadcast %148 : vector<32x1xf32> to vector<32x256xf32>
    %151 = arith.mulf %150, %149 : vector<32x256xf32>
    %152 = arith.addf %147, %151 : vector<32x256xf32>
    %c0_95 = arith.constant 0 : index
    %c5_96 = arith.constant 5 : index
    %153 = vector.load %arg8[%c0_95, %c5_96] : memref<32x9xf32, #tpu.memory_space<vmem>>, vector<32x1xf32>
    %c0_97 = arith.constant 0 : index
    %c18_98 = arith.constant 18 : index
    %154 = vector.load %arg25[%c0_97, %c18_98] : memref<32x290xf32, #tpu.memory_space<vmem>>, vector<32x256xf32>
    %cst_99 = arith.constant 0.000000e+00 : f32
    %155 = vector.shape_cast %10 : vector<1x256xi1> to vector<1x256xi1>
    %156 = vector.broadcast %155 : vector<1x256xi1> to vector<32x256xi1>
    %157 = vector.broadcast %cst_99 : f32 to vector<32x256xf32>
    %158 = arith.select %156, %154, %157 : vector<32x256xi1>, vector<32x256xf32>
    %159 = vector.broadcast %153 : vector<32x1xf32> to vector<32x256xf32>
    %160 = arith.mulf %159, %158 : vector<32x256xf32>
    %161 = arith.addf %152, %160 : vector<32x256xf32>
    %c0_100 = arith.constant 0 : index
    %c6_101 = arith.constant 6 : index
    %162 = vector.load %arg8[%c0_100, %c6_101] : memref<32x9xf32, #tpu.memory_space<vmem>>, vector<32x1xf32>
    %c0_102 = arith.constant 0 : index
    %c32_103 = arith.constant 32 : index
    %163 = vector.load %arg25[%c0_102, %c32_103] : memref<32x290xf32, #tpu.memory_space<vmem>>, vector<32x256xf32>
    %cst_104 = arith.constant 0.000000e+00 : f32
    %164 = vector.shape_cast %8 : vector<1x256xi1> to vector<1x256xi1>
    %165 = vector.broadcast %164 : vector<1x256xi1> to vector<32x256xi1>
    %166 = vector.broadcast %cst_104 : f32 to vector<32x256xf32>
    %167 = arith.select %165, %163, %166 : vector<32x256xi1>, vector<32x256xf32>
    %168 = vector.broadcast %162 : vector<32x1xf32> to vector<32x256xf32>
    %169 = arith.mulf %168, %167 : vector<32x256xf32>
    %170 = arith.addf %161, %169 : vector<32x256xf32>
    %c0_105 = arith.constant 0 : index
    %c7_106 = arith.constant 7 : index
    %171 = vector.load %arg8[%c0_105, %c7_106] : memref<32x9xf32, #tpu.memory_space<vmem>>, vector<32x1xf32>
    %c0_107 = arith.constant 0 : index
    %c33_108 = arith.constant 33 : index
    %172 = vector.load %arg25[%c0_107, %c33_108] : memref<32x290xf32, #tpu.memory_space<vmem>>, vector<32x256xf32>
    %173 = vector.broadcast %171 : vector<32x1xf32> to vector<32x256xf32>
    %174 = arith.mulf %173, %172 : vector<32x256xf32>
    %175 = arith.addf %170, %174 : vector<32x256xf32>
    %c0_109 = arith.constant 0 : index
    %c8_110 = arith.constant 8 : index
    %176 = vector.load %arg8[%c0_109, %c8_110] : memref<32x9xf32, #tpu.memory_space<vmem>>, vector<32x1xf32>
    %c0_111 = arith.constant 0 : index
    %c34_112 = arith.constant 34 : index
    %177 = vector.load %arg25[%c0_111, %c34_112] : memref<32x290xf32, #tpu.memory_space<vmem>>, vector<32x256xf32>
    %cst_113 = arith.constant 0.000000e+00 : f32
    %178 = vector.shape_cast %10 : vector<1x256xi1> to vector<1x256xi1>
    %179 = vector.broadcast %178 : vector<1x256xi1> to vector<32x256xi1>
    %180 = vector.broadcast %cst_113 : f32 to vector<32x256xf32>
    %181 = arith.select %179, %177, %180 : vector<32x256xi1>, vector<32x256xf32>
    %182 = vector.broadcast %176 : vector<32x1xf32> to vector<32x256xf32>
    %183 = arith.mulf %182, %181 : vector<32x256xf32>
    %184 = arith.addf %175, %183 : vector<32x256xf32>
    %c0_114 = arith.constant 0 : index
    %c0_115 = arith.constant 0 : index
    %185 = vector.load %arg9[%c0_114, %c0_115] : memref<32x1xf32, #tpu.memory_space<vmem>>, vector<32x1xf32>
    %186 = vector.broadcast %185 : vector<32x1xf32> to vector<32x256xf32>
    %187 = arith.addf %184, %186 : vector<32x256xf32>
    %188 = vector.extract_strided_slice %187 {offsets = [0, 0], sizes = [16, 256], strides = [1, 1]} : vector<32x256xf32> to vector<16x256xf32>
    %189 = vector.extract_strided_slice %187 {offsets = [16, 0], sizes = [16, 256], strides = [1, 1]} : vector<32x256xf32> to vector<16x256xf32>
    %190 = arith.mulf %188, %189 : vector<16x256xf32>
    %c0_116 = arith.constant 0 : index
    %c0_117 = arith.constant 0 : index
    %191 = vector.load %arg10[%c0_116, %c0_117] : memref<16x16xf32, #tpu.memory_space<vmem>>, vector<16x16xf32>
    %cst_118 = arith.constant dense<0.000000e+00> : vector<16x256xf32>
    %192 = tpu.matmul %191, %190, %cst_118 {dimension_numbers = #tpu.dot_dimension_numbers<[1], [0], [0], [1], [0, 0, 1, 1], [], []>} : vector<16x16xf32>, vector<16x256xf32>, vector<16x256xf32> -> vector<16x256xf32>
    %cst_119 = arith.constant dense<0.000000e+00> : vector<16xf32>
    %193 = vector.multi_reduction <add>, %192, %cst_119 [1] : vector<16x256xf32> to vector<16xf32>
    %194 = vector.shape_cast %193 : vector<16xf32> to vector<16x1xf32>
    %cst_120 = arith.constant 2.560000e+02 : f32
    %195 = vector.broadcast %cst_120 : f32 to vector<16x1xf32>
    %196 = arith.divf %194, %195 : vector<16x1xf32>
    %c0_121 = arith.constant 0 : index
    %c0_122 = arith.constant 0 : index
    %197 = vector.load %arg11[%c0_121, %c0_122] : memref<16x1xf32, #tpu.memory_space<vmem>>, vector<16x1xf32>
    %198 = arith.addf %196, %197 : vector<16x1xf32>
    %199 = vector.broadcast %198 : vector<16x1xf32> to vector<16x256xf32>
    %200 = arith.mulf %190, %199 : vector<16x256xf32>
    %c0_123 = arith.constant 0 : index
    %c0_124 = arith.constant 0 : index
    %201 = vector.load %arg12[%c0_123, %c0_124] : memref<16x16xf32, #tpu.memory_space<vmem>>, vector<16x16xf32>
    %cst_125 = arith.constant dense<0.000000e+00> : vector<16x256xf32>
    %202 = tpu.matmul %201, %200, %cst_125 {dimension_numbers = #tpu.dot_dimension_numbers<[1], [0], [0], [1], [0, 0, 1, 1], [], []>} : vector<16x16xf32>, vector<16x256xf32>, vector<16x256xf32> -> vector<16x256xf32>
    %c0_126 = arith.constant 0 : index
    %c0_127 = arith.constant 0 : index
    %203 = vector.load %arg13[%c0_126, %c0_127] : memref<16x1xf32, #tpu.memory_space<vmem>>, vector<16x1xf32>
    %204 = vector.broadcast %203 : vector<16x1xf32> to vector<16x256xf32>
    %205 = arith.addf %202, %204 : vector<16x256xf32>
    %c0_128 = arith.constant 0 : index
    %c0_129 = arith.constant 0 : index
    %206 = vector.load %arg14[%c0_128, %c0_129] : memref<16x1xf32, #tpu.memory_space<vmem>>, vector<16x1xf32>
    %207 = vector.broadcast %206 : vector<16x1xf32> to vector<16x256xf32>
    %208 = arith.mulf %205, %207 : vector<16x256xf32>
    %209 = arith.addf %84, %208 : vector<16x256xf32>
    %c0_130 = arith.constant 0 : index
    %c0_131 = arith.constant 0 : index
    %210 = vector.load %arg15[%c0_130, %c0_131] : memref<16x1xf32, #tpu.memory_space<vmem>>, vector<16x1xf32>
    %c0_132 = arith.constant 0 : index
    %c0_133 = arith.constant 0 : index
    %211 = vector.load %arg16[%c0_132, %c0_133] : memref<16x1xf32, #tpu.memory_space<vmem>>, vector<16x1xf32>
    %cst_134 = arith.constant dense<0.000000e+00> : vector<256xf32>
    %212 = vector.multi_reduction <add>, %209, %cst_134 [0] : vector<16x256xf32> to vector<256xf32>
    %213 = vector.shape_cast %212 : vector<256xf32> to vector<1x256xf32>
    %cst_135 = arith.constant 1.600000e+01 : f32
    %214 = vector.broadcast %cst_135 : f32 to vector<1x256xf32>
    %215 = arith.divf %213, %214 : vector<1x256xf32>
    %216 = arith.mulf %209, %209 : vector<16x256xf32>
    %cst_136 = arith.constant dense<0.000000e+00> : vector<256xf32>
    %217 = vector.multi_reduction <add>, %216, %cst_136 [0] : vector<16x256xf32> to vector<256xf32>
    %218 = vector.shape_cast %217 : vector<256xf32> to vector<1x256xf32>
    %cst_137 = arith.constant 1.600000e+01 : f32
    %219 = vector.broadcast %cst_137 : f32 to vector<1x256xf32>
    %220 = arith.divf %218, %219 : vector<1x256xf32>
    %221 = arith.mulf %215, %215 : vector<1x256xf32>
    %222 = arith.subf %220, %221 : vector<1x256xf32>
    %223 = vector.broadcast %215 : vector<1x256xf32> to vector<16x256xf32>
    %224 = arith.subf %209, %223 : vector<16x256xf32>
    %cst_138 = arith.constant 9.99999997E-7 : f32
    %225 = vector.broadcast %cst_138 : f32 to vector<1x256xf32>
    %226 = arith.addf %222, %225 : vector<1x256xf32>
    %227 = math.rsqrt %226 : vector<1x256xf32>
    %228 = vector.broadcast %227 : vector<1x256xf32> to vector<16x256xf32>
    %229 = arith.mulf %224, %228 : vector<16x256xf32>
    %230 = vector.broadcast %210 : vector<16x1xf32> to vector<16x256xf32>
    %231 = arith.mulf %229, %230 : vector<16x256xf32>
    %232 = vector.broadcast %211 : vector<16x1xf32> to vector<16x256xf32>
    %233 = arith.addf %231, %232 : vector<16x256xf32>
    %c0_139 = arith.constant 0 : index
    %c0_140 = arith.constant 0 : index
    %234 = vector.load %arg17[%c0_139, %c0_140] : memref<32x16xf32, #tpu.memory_space<vmem>>, vector<32x16xf32>
    %cst_141 = arith.constant dense<0.000000e+00> : vector<32x256xf32>
    %235 = tpu.matmul %234, %233, %cst_141 {dimension_numbers = #tpu.dot_dimension_numbers<[1], [0], [0], [1], [0, 0, 1, 1], [], []>} : vector<32x16xf32>, vector<16x256xf32>, vector<32x256xf32> -> vector<32x256xf32>
    %c0_142 = arith.constant 0 : index
    %c0_143 = arith.constant 0 : index
    %236 = vector.load %arg18[%c0_142, %c0_143] : memref<32x1xf32, #tpu.memory_space<vmem>>, vector<32x1xf32>
    %237 = vector.broadcast %236 : vector<32x1xf32> to vector<32x256xf32>
    %238 = arith.addf %235, %237 : vector<32x256xf32>
    %239 = vector.extract_strided_slice %238 {offsets = [0, 0], sizes = [16, 256], strides = [1, 1]} : vector<32x256xf32> to vector<16x256xf32>
    %240 = vector.extract_strided_slice %238 {offsets = [16, 0], sizes = [16, 256], strides = [1, 1]} : vector<32x256xf32> to vector<16x256xf32>
    %241 = arith.mulf %239, %240 : vector<16x256xf32>
    %c0_144 = arith.constant 0 : index
    %c0_145 = arith.constant 0 : index
    %242 = vector.load %arg19[%c0_144, %c0_145] : memref<16x16xf32, #tpu.memory_space<vmem>>, vector<16x16xf32>
    %cst_146 = arith.constant dense<0.000000e+00> : vector<16x256xf32>
    %243 = tpu.matmul %242, %241, %cst_146 {dimension_numbers = #tpu.dot_dimension_numbers<[1], [0], [0], [1], [0, 0, 1, 1], [], []>} : vector<16x16xf32>, vector<16x256xf32>, vector<16x256xf32> -> vector<16x256xf32>
    %c0_147 = arith.constant 0 : index
    %c0_148 = arith.constant 0 : index
    %244 = vector.load %arg20[%c0_147, %c0_148] : memref<16x1xf32, #tpu.memory_space<vmem>>, vector<16x1xf32>
    %245 = vector.broadcast %244 : vector<16x1xf32> to vector<16x256xf32>
    %246 = arith.addf %243, %245 : vector<16x256xf32>
    %c0_149 = arith.constant 0 : index
    %c0_150 = arith.constant 0 : index
    %247 = vector.load %arg21[%c0_149, %c0_150] : memref<16x1xf32, #tpu.memory_space<vmem>>, vector<16x1xf32>
    %248 = vector.broadcast %247 : vector<16x1xf32> to vector<16x256xf32>
    %249 = arith.mulf %246, %248 : vector<16x256xf32>
    %250 = arith.addf %209, %249 : vector<16x256xf32>
    %c0_151 = arith.constant 0 : index
    %c17_152 = arith.constant 17 : index
    %251 = vector.load %arg25[%c0_151, %c17_152] : memref<32x290xf32, #tpu.memory_space<vmem>>, vector<16x256xf32>
    tpu.vector_store %arg25[%c0_151, %c17_152], %250 {strides = array<i32>} : memref<32x290xf32, #tpu.memory_space<vmem>>, vector<16x256xf32>,
    %c0_153 = arith.constant 0 : index
    %c0_154 = arith.constant 0 : index
    %252 = vector.load %arg25[%c0_153, %c0_154] : memref<32x290xf32, #tpu.memory_space<vmem>>, vector<16x256xf32>
    %cst_155 = arith.constant 0.000000e+00 : f32
    %253 = vector.shape_cast %8 : vector<1x256xi1> to vector<1x256xi1>
    %254 = vector.broadcast %253 : vector<1x256xi1> to vector<16x256xi1>
    %255 = vector.broadcast %cst_155 : f32 to vector<16x256xf32>
    %256 = arith.select %254, %252, %255 : vector<16x256xi1>, vector<16x256xf32>
    %c0_156 = arith.constant 0 : index
    %c0_157 = arith.constant 0 : index
    %257 = vector.load %arg26[%c0_156, %c0_157] : memref<144x256xf32, #tpu.memory_space<vmem>>, vector<16x256xf32>
    tpu.vector_store %arg26[%c0_156, %c0_157], %256 {strides = array<i32>} : memref<144x256xf32, #tpu.memory_space<vmem>>, vector<16x256xf32>,
    %c0_158 = arith.constant 0 : index
    %c1_159 = arith.constant 1 : index
    %258 = vector.load %arg25[%c0_158, %c1_159] : memref<32x290xf32, #tpu.memory_space<vmem>>, vector<16x256xf32>
    %c16_160 = arith.constant 16 : index
    %c0_161 = arith.constant 0 : index
    %259 = vector.load %arg26[%c16_160, %c0_161] : memref<144x256xf32, #tpu.memory_space<vmem>>, vector<16x256xf32>
    tpu.vector_store %arg26[%c16_160, %c0_161], %258 {strides = array<i32>} : memref<144x256xf32, #tpu.memory_space<vmem>>, vector<16x256xf32>,
    %c0_162 = arith.constant 0 : index
    %c2_163 = arith.constant 2 : index
    %260 = vector.load %arg25[%c0_162, %c2_163] : memref<32x290xf32, #tpu.memory_space<vmem>>, vector<16x256xf32>
    %cst_164 = arith.constant 0.000000e+00 : f32
    %261 = vector.shape_cast %10 : vector<1x256xi1> to vector<1x256xi1>
    %262 = vector.broadcast %261 : vector<1x256xi1> to vector<16x256xi1>
    %263 = vector.broadcast %cst_164 : f32 to vector<16x256xf32>
    %264 = arith.select %262, %260, %263 : vector<16x256xi1>, vector<16x256xf32>
    %c32_165 = arith.constant 32 : index
    %c0_166 = arith.constant 0 : index
    %265 = vector.load %arg26[%c32_165, %c0_166] : memref<144x256xf32, #tpu.memory_space<vmem>>, vector<16x256xf32>
    tpu.vector_store %arg26[%c32_165, %c0_166], %264 {strides = array<i32>} : memref<144x256xf32, #tpu.memory_space<vmem>>, vector<16x256xf32>,
    %c0_167 = arith.constant 0 : index
    %c16_168 = arith.constant 16 : index
    %266 = vector.load %arg25[%c0_167, %c16_168] : memref<32x290xf32, #tpu.memory_space<vmem>>, vector<16x256xf32>
    %cst_169 = arith.constant 0.000000e+00 : f32
    %267 = vector.shape_cast %8 : vector<1x256xi1> to vector<1x256xi1>
    %268 = vector.broadcast %267 : vector<1x256xi1> to vector<16x256xi1>
    %269 = vector.broadcast %cst_169 : f32 to vector<16x256xf32>
    %270 = arith.select %268, %266, %269 : vector<16x256xi1>, vector<16x256xf32>
    %c48 = arith.constant 48 : index
    %c0_170 = arith.constant 0 : index
    %271 = vector.load %arg26[%c48, %c0_170] : memref<144x256xf32, #tpu.memory_space<vmem>>, vector<16x256xf32>
    tpu.vector_store %arg26[%c48, %c0_170], %270 {strides = array<i32>} : memref<144x256xf32, #tpu.memory_space<vmem>>, vector<16x256xf32>,
    %c0_171 = arith.constant 0 : index
    %c17_172 = arith.constant 17 : index
    %272 = vector.load %arg25[%c0_171, %c17_172] : memref<32x290xf32, #tpu.memory_space<vmem>>, vector<16x256xf32>
    %c64 = arith.constant 64 : index
    %c0_173 = arith.constant 0 : index
    %273 = vector.load %arg26[%c64, %c0_173] : memref<144x256xf32, #tpu.memory_space<vmem>>, vector<16x256xf32>
    tpu.vector_store %arg26[%c64, %c0_173], %272 {strides = array<i32>} : memref<144x256xf32, #tpu.memory_space<vmem>>, vector<16x256xf32>,
    %c0_174 = arith.constant 0 : index
    %c18_175 = arith.constant 18 : index
    %274 = vector.load %arg25[%c0_174, %c18_175] : memref<32x290xf32, #tpu.memory_space<vmem>>, vector<16x256xf32>
    %cst_176 = arith.constant 0.000000e+00 : f32
    %275 = vector.shape_cast %10 : vector<1x256xi1> to vector<1x256xi1>
    %276 = vector.broadcast %275 : vector<1x256xi1> to vector<16x256xi1>
    %277 = vector.broadcast %cst_176 : f32 to vector<16x256xf32>
    %278 = arith.select %276, %274, %277 : vector<16x256xi1>, vector<16x256xf32>
    %c80 = arith.constant 80 : index
    %c0_177 = arith.constant 0 : index
    %279 = vector.load %arg26[%c80, %c0_177] : memref<144x256xf32, #tpu.memory_space<vmem>>, vector<16x256xf32>
    tpu.vector_store %arg26[%c80, %c0_177], %278 {strides = array<i32>} : memref<144x256xf32, #tpu.memory_space<vmem>>, vector<16x256xf32>,
    %c0_178 = arith.constant 0 : index
    %c32_179 = arith.constant 32 : index
    %280 = vector.load %arg25[%c0_178, %c32_179] : memref<32x290xf32, #tpu.memory_space<vmem>>, vector<16x256xf32>
    %cst_180 = arith.constant 0.000000e+00 : f32
    %281 = vector.shape_cast %8 : vector<1x256xi1> to vector<1x256xi1>
    %282 = vector.broadcast %281 : vector<1x256xi1> to vector<16x256xi1>
    %283 = vector.broadcast %cst_180 : f32 to vector<16x256xf32>
    %284 = arith.select %282, %280, %283 : vector<16x256xi1>, vector<16x256xf32>
    %c96 = arith.constant 96 : index
    %c0_181 = arith.constant 0 : index
    %285 = vector.load %arg26[%c96, %c0_181] : memref<144x256xf32, #tpu.memory_space<vmem>>, vector<16x256xf32>
    tpu.vector_store %arg26[%c96, %c0_181], %284 {strides = array<i32>} : memref<144x256xf32, #tpu.memory_space<vmem>>, vector<16x256xf32>,
    %c0_182 = arith.constant 0 : index
    %c33_183 = arith.constant 33 : index
    %286 = vector.load %arg25[%c0_182, %c33_183] : memref<32x290xf32, #tpu.memory_space<vmem>>, vector<16x256xf32>
    %c112 = arith.constant 112 : index
    %c0_184 = arith.constant 0 : index
    %287 = vector.load %arg26[%c112, %c0_184] : memref<144x256xf32, #tpu.memory_space<vmem>>, vector<16x256xf32>
    tpu.vector_store %arg26[%c112, %c0_184], %286 {strides = array<i32>} : memref<144x256xf32, #tpu.memory_space<vmem>>, vector<16x256xf32>,
    %c0_185 = arith.constant 0 : index
    %c34_186 = arith.constant 34 : index
    %288 = vector.load %arg25[%c0_185, %c34_186] : memref<32x290xf32, #tpu.memory_space<vmem>>, vector<16x256xf32>
    %cst_187 = arith.constant 0.000000e+00 : f32
    %289 = vector.shape_cast %10 : vector<1x256xi1> to vector<1x256xi1>
    %290 = vector.broadcast %289 : vector<1x256xi1> to vector<16x256xi1>
    %291 = vector.broadcast %cst_187 : f32 to vector<16x256xf32>
    %292 = arith.select %290, %288, %291 : vector<16x256xi1>, vector<16x256xf32>
    %c128 = arith.constant 128 : index
    %c0_188 = arith.constant 0 : index
    %293 = vector.load %arg26[%c128, %c0_188] : memref<144x256xf32, #tpu.memory_space<vmem>>, vector<16x256xf32>
    tpu.vector_store %arg26[%c128, %c0_188], %292 {strides = array<i32>} : memref<144x256xf32, #tpu.memory_space<vmem>>, vector<16x256xf32>,
    %c0_189 = arith.constant 0 : index
    %c0_190 = arith.constant 0 : index
    %294 = vector.load %arg22[%c0_189, %c0_190] : memref<3x144xf32, #tpu.memory_space<vmem>>, vector<3x144xf32>
    %c0_191 = arith.constant 0 : index
    %c0_192 = arith.constant 0 : index
    %295 = vector.load %arg26[%c0_191, %c0_192] : memref<144x256xf32, #tpu.memory_space<vmem>>, vector<144x256xf32>
    %cst_193 = arith.constant dense<0.000000e+00> : vector<3x256xf32>
    %296 = tpu.matmul %294, %295, %cst_193 {dimension_numbers = #tpu.dot_dimension_numbers<[1], [0], [0], [1], [0, 0, 1, 1], [], []>} : vector<3x144xf32>, vector<144x256xf32>, vector<3x256xf32> -> vector<3x256xf32>
    %c0_194 = arith.constant 0 : index
    %c0_195 = arith.constant 0 : index
    %297 = vector.load %arg23[%c0_194, %c0_195] : memref<3x1xf32, #tpu.memory_space<vmem>>, vector<3x1xf32>
    %298 = vector.broadcast %297 : vector<3x1xf32> to vector<3x256xf32>
    %299 = arith.addf %296, %298 : vector<3x256xf32>
    %300 = arith.addf %299, %1 : vector<3x256xf32>
    %c0_196 = arith.constant 0 : index
    %c0_197 = arith.constant 0 : index
    %c0_198 = arith.constant 0 : index
    %301 = vector.load %arg24[%c0_196, %c0_197, %c0_198] : memref<1x3x256xf32, #tpu.memory_space<vmem>>, vector<1x3x256xf32>
    %302 = vector.shape_cast %301 : vector<1x3x256xf32> to vector<3x256xf32>
    %303 = vector.shape_cast %300 : vector<3x256xf32> to vector<1x3x256xf32>
    tpu.vector_store %arg24[%c0_196, %c0_197, %c0_198], %303 {strides = array<i32>} : memref<1x3x256xf32, #tpu.memory_space<vmem>>, vector<1x3x256xf32>,
    return
  }
  func.func @transform_0(%arg0: i32) -> (i32, i32, i32) {
    %c0_i32 = arith.constant 0 : i32
    %c0_i32_0 = arith.constant 0 : i32
    %c0_i32_1 = arith.constant 0 : i32
    return %arg0, %c0_i32, %c0_i32_0 : i32, i32, i32
  }
  func.func @transform_1(%arg0: i32) -> (i32, i32, i32) {
    %c0_i32 = arith.constant 0 : i32
    %c0_i32_0 = arith.constant 0 : i32
    %c0_i32_1 = arith.constant 0 : i32
    %c0_i32_2 = arith.constant 0 : i32
    return %c0_i32, %c0_i32_0, %c0_i32_1 : i32, i32, i32
  }
  func.func @transform_2(%arg0: i32) -> (i32, i32) {
    %c0_i32 = arith.constant 0 : i32
    %c0_i32_0 = arith.constant 0 : i32
    %c0_i32_1 = arith.constant 0 : i32
    return %c0_i32, %c0_i32_0 : i32, i32
  }
  func.func @transform_3(%arg0: i32) -> (i32, i32) {
    %c0_i32 = arith.constant 0 : i32
    %c0_i32_0 = arith.constant 0 : i32
    %c0_i32_1 = arith.constant 0 : i32
    return %c0_i32, %c0_i32_0 : i32, i32
  }
  func.func @transform_4(%arg0: i32) -> (i32, i32) {
    %c0_i32 = arith.constant 0 : i32
    %c0_i32_0 = arith.constant 0 : i32
    %c0_i32_1 = arith.constant 0 : i32
    return %c0_i32, %c0_i32_0 : i32, i32
  }
  func.func @transform_5(%arg0: i32) -> (i32, i32) {
    %c0_i32 = arith.constant 0 : i32
    %c0_i32_0 = arith.constant 0 : i32
    %c0_i32_1 = arith.constant 0 : i32
    return %c0_i32, %c0_i32_0 : i32, i32
  }
  func.func @transform_6(%arg0: i32) -> (i32, i32) {
    %c0_i32 = arith.constant 0 : i32
    %c0_i32_0 = arith.constant 0 : i32
    %c0_i32_1 = arith.constant 0 : i32
    return %c0_i32, %c0_i32_0 : i32, i32
  }
  func.func @transform_7(%arg0: i32) -> (i32, i32) {
    %c0_i32 = arith.constant 0 : i32
    %c0_i32_0 = arith.constant 0 : i32
    %c0_i32_1 = arith.constant 0 : i32
    return %c0_i32, %c0_i32_0 : i32, i32
  }
  func.func @transform_8(%arg0: i32) -> (i32, i32) {
    %c0_i32 = arith.constant 0 : i32
    %c0_i32_0 = arith.constant 0 : i32
    %c0_i32_1 = arith.constant 0 : i32
    return %c0_i32, %c0_i32_0 : i32, i32
  }
  func.func @transform_9(%arg0: i32) -> (i32, i32) {
    %c0_i32 = arith.constant 0 : i32
    %c0_i32_0 = arith.constant 0 : i32
    %c0_i32_1 = arith.constant 0 : i32
    return %c0_i32, %c0_i32_0 : i32, i32
  }
  func.func @transform_10(%arg0: i32) -> (i32, i32) {
    %c0_i32 = arith.constant 0 : i32
    %c0_i32_0 = arith.constant 0 : i32
    %c0_i32_1 = arith.constant 0 : i32
    return %c0_i32, %c0_i32_0 : i32, i32
  }
  func.func @transform_11(%arg0: i32) -> (i32, i32) {
    %c0_i32 = arith.constant 0 : i32
    %c0_i32_0 = arith.constant 0 : i32
    %c0_i32_1 = arith.constant 0 : i32
    return %c0_i32, %c0_i32_0 : i32, i32
  }
  func.func @transform_12(%arg0: i32) -> (i32, i32) {
    %c0_i32 = arith.constant 0 : i32
    %c0_i32_0 = arith.constant 0 : i32
    %c0_i32_1 = arith.constant 0 : i32
    return %c0_i32, %c0_i32_0 : i32, i32
  }
  func.func @transform_13(%arg0: i32) -> (i32, i32) {
    %c0_i32 = arith.constant 0 : i32
    %c0_i32_0 = arith.constant 0 : i32
    %c0_i32_1 = arith.constant 0 : i32
    return %c0_i32, %c0_i32_0 : i32, i32
  }
  func.func @transform_14(%arg0: i32) -> (i32, i32) {
    %c0_i32 = arith.constant 0 : i32
    %c0_i32_0 = arith.constant 0 : i32
    %c0_i32_1 = arith.constant 0 : i32
    return %c0_i32, %c0_i32_0 : i32, i32
  }
  func.func @transform_15(%arg0: i32) -> (i32, i32) {
    %c0_i32 = arith.constant 0 : i32
    %c0_i32_0 = arith.constant 0 : i32
    %c0_i32_1 = arith.constant 0 : i32
    return %c0_i32, %c0_i32_0 : i32, i32
  }
  func.func @transform_16(%arg0: i32) -> (i32, i32) {
    %c0_i32 = arith.constant 0 : i32
    %c0_i32_0 = arith.constant 0 : i32
    %c0_i32_1 = arith.constant 0 : i32
    return %c0_i32, %c0_i32_0 : i32, i32
  }
  func.func @transform_17(%arg0: i32) -> (i32, i32) {
    %c0_i32 = arith.constant 0 : i32
    %c0_i32_0 = arith.constant 0 : i32
    %c0_i32_1 = arith.constant 0 : i32
    return %c0_i32, %c0_i32_0 : i32, i32
  }
  func.func @transform_18(%arg0: i32) -> (i32, i32) {
    %c0_i32 = arith.constant 0 : i32
    %c0_i32_0 = arith.constant 0 : i32
    %c0_i32_1 = arith.constant 0 : i32
    return %c0_i32, %c0_i32_0 : i32, i32
  }
  func.func @transform_19(%arg0: i32) -> (i32, i32) {
    %c0_i32 = arith.constant 0 : i32
    %c0_i32_0 = arith.constant 0 : i32
    %c0_i32_1 = arith.constant 0 : i32
    return %c0_i32, %c0_i32_0 : i32, i32
  }
  func.func @transform_20(%arg0: i32) -> (i32, i32) {
    %c0_i32 = arith.constant 0 : i32
    %c0_i32_0 = arith.constant 0 : i32
    %c0_i32_1 = arith.constant 0 : i32
    return %c0_i32, %c0_i32_0 : i32, i32
  }
  func.func @transform_21(%arg0: i32) -> (i32, i32) {
    %c0_i32 = arith.constant 0 : i32
    %c0_i32_0 = arith.constant 0 : i32
    %c0_i32_1 = arith.constant 0 : i32
    return %c0_i32, %c0_i32_0 : i32, i32
  }
  func.func @transform_22(%arg0: i32) -> (i32, i32) {
    %c0_i32 = arith.constant 0 : i32
    %c0_i32_0 = arith.constant 0 : i32
    %c0_i32_1 = arith.constant 0 : i32
    return %c0_i32, %c0_i32_0 : i32, i32
  }
  func.func @transform_23(%arg0: i32) -> (i32, i32, i32) {
    %c0_i32 = arith.constant 0 : i32
    %c0_i32_0 = arith.constant 0 : i32
    %c0_i32_1 = arith.constant 0 : i32
    return %arg0, %c0_i32, %c0_i32_0 : i32, i32, i32
  }
}

</mosaic_0001>

<bundles_post_ra>
// kernel: nafnet_forward.1
= control target key start
LH: loop header
LB: loop body
LE: loop exit
PB: predicated region body
PF: predicated region fallthrough
CT: control target
= control target key end

     0   :  { %s5754_s0 = inlined_call_operand.vmem [shape: f32[2,3,256], index: 0, kind: input, shape index: {}]   ;;  %s5755_s1 = inlined_call_operand.vmem [shape: f32[9,16,3], index: 1, kind: input, shape index: {}]   ;;  %s5756_s2 = inlined_call_operand.vmem [shape: f32[16,1], index: 2, kind: input, shape index: {}]   ;;  %s5757_s3 = inlined_call_operand.vmem [shape: f32[16,1], index: 3, kind: input, shape index: {}]   ;;  %s5758_s4 = inlined_call_operand.vmem [shape: f32[16,1], index: 4, kind: input, shape index: {}]   ;;  %s5759_s5 = inlined_call_operand.vmem [shape: f32[32,16], index: 5, kind: input, shape index: {}]   ;;  %s5760_s6 = inlined_call_operand.vmem [shape: f32[32,1], index: 6, kind: input, shape index: {}]   ;;  %s5761_s7 = inlined_call_operand.vmem [shape: f32[32,9], index: 7, kind: input, shape index: {}]   ;;  %s5762_s8 = inlined_call_operand.vmem [shape: f32[32,1], index: 8, kind: input, shape index: {}]   ;;  %s5763_s9 = inlined_call_operand.vmem [shape: f32[16,16], index: 9, kind: input, shape index: {}]   ;;  %s5764_s10 = inlined_call_operand.vmem [shape: f32[16,1], index: 10, kind: input, shape index: {}]   ;;  %s5765_s11 = inlined_call_operand.vmem [shape: f32[16,16], index: 11, kind: input, shape index: {}]   ;;  %s5766_s12 = inlined_call_operand.vmem [shape: f32[16,1], index: 12, kind: input, shape index: {}]   ;;  %s5767_s13 = inlined_call_operand.vmem [shape: f32[16,1], index: 13, kind: input, shape index: {}]   ;;  %s5768_s14 = inlined_call_operand.vmem [shape: f32[16,1], index: 14, kind: input, shape index: {}]   ;;  %s5769_s15 = inlined_call_operand.vmem [shape: f32[16,1], index: 15, kind: input, shape index: {}]   ;;  %s5770_s16 = inlined_call_operand.vmem [shape: f32[32,16], index: 16, kind: input, shape index: {}]   ;;  %s5771_s17 = inlined_call_operand.vmem [shape: f32[32,1], index: 17, kind: input, shape index: {}]   ;;  %s5772_s18 = inlined_call_operand.vmem [shape: f32[16,16], index: 18, kind: input, shape index: {}]   ;;  %s5773_s19 = inlined_call_operand.vmem [shape: f32[16,1], index: 19, kind: input, shape index: {}]   ;;  %s5774_s20 = inlined_call_operand.vmem [shape: f32[16,1], index: 20, kind: input, shape index: {}]   ;;  %s5775_s21 = inlined_call_operand.vmem [shape: f32[3,144], index: 21, kind: input, shape index: {}]   ;;  %s5776_s22 = inlined_call_operand.vmem [shape: f32[3,1], index: 22, kind: input, shape index: {}]   ;;  %s5777_s23 = inlined_call_operand.vmem [shape: f32[2,3,256], index: 23, kind: output, shape index: {}]  }
   0x1   :  { %5851 = sst [smem:[#allocation62_spill]] %s5754_s0 }
   0x2   :  { %5852 = sst [smem:[#allocation63_spill]] %s5755_s1 }
   0x3   :  { %5853 = sst [smem:[#allocation64_spill]] %s5756_s2 }
   0x4   :  { %5854 = sst [smem:[#allocation65_spill]] %s5757_s3 }
   0x5   :  { %5855 = sst [smem:[#allocation66_spill]] %s5758_s4  ;;  %s4177_s4 = smov 0  }
   0x6   :  { %5856 = sst [smem:[#allocation67_spill]] %s5759_s5 }
   0x7   :  { %5857 = sst [smem:[#allocation68_spill]] %s5760_s6 }
   0x8   :  { %5858 = sst [smem:[#allocation69_spill]] %s5761_s7 }
   0x9   :  { %5859 = sst [smem:[#allocation70_spill]] %s5762_s8 }
   0xa   :  { %5860 = sst [smem:[#allocation71_spill]] %s5763_s9 }
   0xb   :  { %5861 = sst [smem:[#allocation72_spill]] %s5764_s10 }
   0xc   :  { %5862 = sst [smem:[#allocation73_spill]] %s5777_s23 }
   0xd LB: > { %5863 = sst [smem:[#allocation4_spill]] %s4036_s4  ;;  %s3863_s30 = sadd.s32 4294967295, %s4036_s4   ;;  %s4036_s4 = sphi %s4177_s4, %s33_s4  }
   0xe   : > { %p3867_p0 = scmp.ge.s32.totalorder %s4036_s4, 1  ;;  %p637_p1 = scmp.lt.s32.totalorder %s4036_s4, 3 }
  0x10   : > { %p638_p2 = pnand %p3867_p0, %p637_p1 }
  0x12   : > { %641 = sbr.rel (%p638_p2) target bundleno = 2908 (0xb5c), region = 112 }
  0x17   : > { %p4185_p3 = scmp.lt.s32.totalorder %s3863_s30, 1  ;;  %vm714_vm0 = vcmask 277504   ;;  %v5807_v0 = vmov 0.0   ;;  %s5866_s26 = sld [smem:[#allocation62_spill]]  ;;  %v725_v3 = vlaneseq  ;;  %vm745_vm1 = vcmask 1042568  }
  0x18   : > { %712 = vst [vmem:[#allocation2] sm:$0xff] %v5807_v0  ;;  %713 = vst [vmem:[#allocation2 + $0x8] sm:$0xff] %v5807_v0  ;;  %852 = vmatprep.mubr.f32.mxu0 %v5807_v0  ;;  %941 = vmatprep.mubr.f32.mxu1 %v5807_v0  ;;  %s5800_s6 = smov 17   ;;  %vm740_vm2 = vcmask 138240   ;;  %vm748_vm3 = vcmask 133120   ;;  %s5798_s27 = smov 126  }
  0x19   : > { %716 = vst [vmem:[#allocation2 + $0x18] sm:$0xff] %v5807_v0  ;;  %719 = vst [vmem:[#allocation2 + $0x30] sm:$0xff] %v5807_v0  ;;  %s6012_s30 = smov (!%p4185_p3, %s3863_s30), 1  ;;  %v4218_v5 = vand.u32 127, %v725_v3  ;;  %s5786_s7 = smov 127   ;;  %vm783_vm5 = vcmask 1042432  }
  0x1a   : > { %722 = vst [vmem:[#allocation2 + $0x48] sm:$0xff] %v5807_v0  ;;  %715 = vst.msk [vmem:[#allocation2 + $0x10] sm:$0xff] %vm714_vm0, %v5807_v0  ;;  %5865 = sst [smem:[#allocation5_spill]] %s6012_s30  ;;  %s5785_s25 = sshll.u32 %s6012_s30, 3  ;;  %vm776_vm7 = vcmask 23552   ;;  %v4048_v21 = vmov 0  }
  0x1b   : > { %718 = vst.msk [vmem:[#allocation2 + $0x28] sm:$0xff] %vm714_vm0, %v5807_v0  ;;  %721 = vst.msk [vmem:[#allocation2 + $0x40] sm:$0xff] %vm714_vm0, %v5807_v0  ;;  %v4221_v6 = vadd.s32 128, %v4218_v5  ;;  %v728_v11 = vand.u32 15, %v4218_v5  ;;  %s5788_s28 = smov 111   ;;  %s5796_s29 = smov 112   ;;  %3999 = vset.pattern.permute.xlu1 %v4048_v21  ;;  %3998 = vset.pattern.permute.xlu0 %v4048_v21 }
  0x1c   : > { %724 = vst.msk [vmem:[#allocation2 + $0x58] sm:$0xff] %vm714_vm0, %v5807_v0  ;;  %s5873_s24 = sld [smem:[#allocation63_spill]]  ;;  %s5792_s3 = smov 96   ;;  %vm773_vm8 = vcmask 1039360   ;;  %vm967_vm9 = vcmask 1031168   ;;  %vm1076_vm10 = vcmask 916480  }
  0x1d   : > { %s4210_s2 = scalar_lea.vmem %s5866_s26, %s5785_s25  ;;  %v729_v9 = vand.u32 15, %v4221_v6  ;;  %vm4236_vm6 = vcmp.ge.s32.totalorder %v728_v11, 1  ;;  %s5790_s26 = smov 110   ;;  %vm4315_vm11 = vcmp.le.s32.totalorder %v728_v11, 14  ;;  %vm1288_vm13 = vcmask 900096  }
  0x1e   : > { %5867 = sst [smem:[#allocation6_spill]] %s4210_s2  ;;  %v711_v1 = vld [vmem:[%s4210_s2] sm:$0x77]  ;;  %s5794_s0 = smov 95   ;;  %vm1185_vm14 = vcmask 908288   ;;  %vm1397_vm15 = vcmask 785408  }
  0x1f   : > { %736 = vrot.lane.b32.xlu0 %v711_v1, %s5800_s6  ;;  %v4214_v2 = vcombine.high %v711_v1, %v711_v1  ;;  %vm4230_vm4 = vcmp.ge.s32.totalorder %v729_v9, 1  ;;  %s5803_s5 = smov 94   ;;  %vm4321_vm12 = vcmp.le.s32.totalorder %v729_v9, 14  ;;  %vm1506_vm0 = vcmask 777216   ;;  %s5883_s8 = sld [smem:[#allocation70_spill]] }
  0x20   : > { %s5888_s25 = sld [smem:[#allocation67_spill]]  ;;  %s5908_s23 = smov 126  }
  0x21   : > { %5868 = vst [vmem:[#allocation7_spill] sm:$0xff] %v4214_v2  ;;  %s5910_s4 = smov 112   ;;  %s5914_s1 = smov 96  }
  0x22   : > { %v750_v18 = vld [vmem:[%s5873_s24] sm:$0xff]  ;;  %v751_v19 = vld [vmem:[%s5873_s24 + $0x8] sm:$0xff]  ;;  %v3872_v41 = vld [vmem:[%s5873_s24 + $0x10] sm:$0xff]  ;;  %s5998_s9 = sld [smem:[#allocation71_spill]] }
  0x23   : > { %738 = vrot.lane.b32.xlu0 %v4214_v2, %s5800_s6  ;;  %v3873_v50 = vld [vmem:[%s5873_s24 + $0x18] sm:$0xff]  ;;  %v3888_v55 = vld [vmem:[%s5873_s24 + $0x30] sm:$0xff]  ;;  %v3882_v58 = vld [vmem:[%s5873_s24 + $0x20] sm:$0xff]  ;;  %s5912_s6 = smov 110   ;;  %s6000_s10 = sld [smem:[#allocation72_spill]] }
  0x24   : > { %v3889_v59 = vld [vmem:[%s5873_s24 + $0x38] sm:$0xff]  ;;  %v3883_v1 = vld [vmem:[%s5873_s24 + $0x28] sm:$0xff]  ;;  %v3900_v5 = vld [vmem:[%s5873_s24 + $0x50] sm:$0xff] }
  0x25   : > { %v3901_v11 = vld [vmem:[%s5873_s24 + $0x58] sm:$0xff] }
  0x91   : > { %v737_v4 = vpop.permute.xlu0 %736 }
  0x92   : > { %746 = vst.msk [vmem:[#allocation2] sm:$0x7] %vm745_vm1, %v737_v4  ;;  %vm1609_vm1 = vcmask 769024  }
  0x95   : > { %v739_v7 = vpop.permute.xlu0 %738 }
  0x96   : > { %v741_v8 = vsel %vm740_vm2, %v737_v4, %v739_v7  ;;  %749 = vst.msk [vmem:[#allocation2 + $0x10] sm:$0x7] %vm748_vm3, %v739_v7  ;;  %vm1838_vm3 = vcmask 130048  }
  0x97   : > { %747 = vst [vmem:[#allocation2 + $0x8] sm:$0x7] %v741_v8 }
  0x99   : > { %v752_v10 = vld [vmem:[#allocation2] sm:$0x7] }
  0x9a   : > { %961 = vrot.lane.b32.xlu1 %v752_v10, %s5798_s27  ;;  %767 = vrot.lane.b32.xlu0 %v752_v10, %s5786_s7  ;;  %v758_v17 = vsel %vm4236_vm6, %v752_v10, 0.0 }
  0x9d   : > { %v763_v16 = vld [vmem:[#allocation2 + $0x10] sm:$0x7] }
  0x9e   : > { %1179 = vrot.lane.b32.xlu1 %v752_v10, %s5788_s28  ;;  %1070 = vrot.lane.b32.xlu0 %v752_v10, %s5796_s29  ;;  %v753_v14 = vld [vmem:[#allocation2 + $0x8] sm:$0x7] }
  0x9f   : > { %v759_v15 = vsel %vm4230_vm4, %v753_v14, 0.0 }
  0xa0   : > { %3878 = vmatprep.subr.msk.mxu1 %vm783_vm5, %v759_v15 }
  0xa1   : > { %3879 = vmatpush1.msk.msra.mxu1 %vm783_vm5, %v758_v17  ;;  %v3895_v17 = vld [vmem:[%s5873_s24 + $0x48] sm:$0xff] }
  0xa2   : > { %965 = vrot.lane.b32.xlu0 %v763_v16, %s5798_s27  ;;  %771 = vrot.lane.b32.xlu1 %v763_v16, %s5786_s7 }
  0xa3   : > { %3880 = vmatmul.mubr.msk.f32.vlgmr.msra.gmra.mxu1 %vm776_vm7, %v750_v18 }
  0xa4   : > { %947 = vmatprep.mubr.f32.mxu1 %v5807_v0 }
  0xa6   : > { %1183 = vrot.lane.b32.xlu0 %v763_v16, %s5788_s28  ;;  %1074 = vrot.lane.b32.xlu1 %v763_v16, %s5796_s29 }
  0xa7   : > { %3881 = vmatmul.mubr.msk.f32.gmra.mxu1 %vm776_vm7, %v751_v19 }
  0xa8   : > { %1159 = vmatprep.mubr.f32.mxu1 %v5807_v0 }
  0xaa   : > { %1282 = vrot.lane.b32.xlu0 %v752_v10, %s5790_s26  ;;  %769 = vrot.lane.b32.xlu1 %v753_v14, %s5786_s7  ;;  %s5874_s7 = sld [smem:[#allocation64_spill]] }
  0xae   : > { %1072 = vrot.lane.b32.xlu0 %v753_v14, %s5796_s29  ;;  %963 = vrot.lane.b32.xlu1 %v753_v14, %s5798_s27  ;;  %s5876_s27 = sld [smem:[#allocation66_spill]] }
  0xaf   : > { %s5877_s29 = sld [smem:[#allocation68_spill]] }
  0xb0   : > { %v1709_v20 = vld [vmem:[%s5874_s7] sm:$0xff]  ;;  %v1710_v23 = vld [vmem:[%s5874_s7 + $0x8] sm:$0xff] }
  0xb2   : > { %1395 = vrot.lane.b32.xlu0 %v763_v16, %s5792_s3  ;;  %1286 = vrot.lane.b32.xlu1 %v763_v16, %s5790_s26 }
  0xb4   : > { %v1727_v24 = vld [vmem:[%s5876_s27] sm:$0xff]  ;;  %v1728_v26 = vld [vmem:[%s5876_s27 + $0x8] sm:$0xff] }
  0xb5   : > { %v1815_v27 = vld [vmem:[%s5877_s29 + $0x8] sm:$0xff]  ;;  %v1814_v28 = vld [vmem:[%s5877_s29] sm:$0xff] }
  0xb6   : > { %1284 = vrot.lane.b32.xlu0 %v753_v14, %s5790_s26  ;;  %1391 = vrot.lane.b32.xlu1 %v752_v10, %s5792_s3  ;;  %s5895_s26 = smov 17  }
  0xba   : > { %1500 = vrot.lane.b32.xlu0 %v752_v10, %s5794_s0  ;;  %1181 = vrot.lane.b32.xlu1 %v753_v14, %s5788_s28  ;;  %s5915_s28 = smov 127  }
  0xbe   : > { %1502 = vrot.lane.b32.xlu0 %v753_v14, %s5794_s0  ;;  %1393 = vrot.lane.b32.xlu1 %v753_v14, %s5792_s3  ;;  %s5875_s3 = sld [smem:[#allocation65_spill]] }
  0xc2   : > { %1607 = vrot.lane.b32.xlu0 %v763_v16, %s5803_s5  ;;  %1504 = vrot.lane.b32.xlu1 %v763_v16, %s5794_s0  ;;  %s5882_s0 = sld [smem:[#allocation69_spill]] }
  0xc4   : > { %v1725_v22 = vld [vmem:[%s5875_s3] sm:$0xff]  ;;  %v1726_v25 = vld [vmem:[%s5875_s3 + $0x8] sm:$0xff]  ;;  %s5918_s3 = smov 95  }
  0xc6   : > { %1605 = vrot.lane.b32.xlu1 %v753_v14, %s5803_s5  ;;  %1713 = vperm.xlu0 %3998, %v1709_v20  }
  0xca   : > { %1603 = vrot.lane.b32.xlu1 %v752_v10, %s5803_s5  ;;  %1784 = vperm.xlu0 %3998, %v1725_v22   ;;  %v3894_v10 = vld [vmem:[%s5873_s24 + $0x40] sm:$0xff]  ;;  %s5913_s5 = smov 94  }
  0xce   : > { %1718 = vperm.xlu1 %3999, %v1710_v23   ;;  %1798 = vperm.xlu0 %3998, %v1727_v24   ;;  %v3906_v24 = vld [vmem:[%s5873_s24 + $0x60] sm:$0xff] }
  0xd2   : > { %1789 = vperm.xlu1 %3999, %v1726_v25   ;;  %v3912_v25 = vld [vmem:[%s5873_s24 + $0x70] sm:$0xff] }
  0xd6   : > { %1803 = vperm.xlu1 %3999, %v1728_v26  }
  0xda   : > { %1825 = vperm.xlu1 %3999, %v1815_v27  }
  0xde   : > { %1820 = vperm.xlu1 %3999, %v1814_v28  }
 0x10c   : > { %v962_v29 = vpop.permute.xlu1 %961  ;;  %v768_v30 = vpop.permute.xlu0 %767 }
 0x110   : > { %v4304_v31 = vpop.permute.xlu1 %1179  ;;  %v1071_v32 = vpop.permute.xlu0 %1070 }
 0x114   : > { %v772_v33 = vpop.permute.xlu1 %771  ;;  %v966_v34 = vpop.permute.xlu0 %965 }
 0x118   : > { %v1075_v35 = vpop.permute.xlu1 %1074  ;;  %v1184_v36 = vpop.permute.xlu0 %1183 }
 0x11c   : > { %v770_v37 = vpop.permute.xlu1 %769  ;;  %v1283_v38 = vpop.permute.xlu0 %1282 }
 0x11d   : > { %v775_v39 = vsel %vm773_vm8, %v770_v37, %v772_v33  ;;  %v774_v40 = vsel %vm773_vm8, %v768_v30, %v770_v37  ;;  %v3907_v30 = vld [vmem:[%s5873_s24 + $0x68] sm:$0xff] }
 0x11e   : > { %3874 = vmatprep.subr.msk.mxu0 %vm783_vm5, %v775_v39  ;;  %v3919_v37 = vld [vmem:[%s5873_s24 + $0x88] sm:$0xff]  ;;  %v4454_v39 = vld [vmem:[%s5882_s0 + $0x18] sm:$0xff] }
 0x11f   : > { %3875 = vmatpush1.msk.msra.mxu0 %vm783_vm5, %v774_v40  ;;  %v4050_v40 = vmov 4  }
 0x120   : > { %v964_v44 = vpop.permute.xlu1 %963  ;;  %3876 = vmatmul.mubr.msk.f32.vlgmr.msra.gmra.mxu0 %vm776_vm7, %v3872_v41  ;;  %v1073_v45 = vpop.permute.xlu0 %1072  ;;  %v4460_v41 = vld [vmem:[%s5882_s0 + $0x8] sm:$0xff] }
 0x121   : > { %v968_v46 = vsel %vm967_vm9, %v962_v29, %v964_v44  ;;  %v969_v47 = vsel %vm967_vm9, %v964_v44, %v966_v34  ;;  %v1077_v48 = vsel %vm1076_vm10, %v1071_v32, %v1073_v45  ;;  %v1078_v49 = vsel %vm1076_vm10, %v1073_v45, %v1075_v35  ;;  %858 = vmatprep.mubr.f32.mxu0 %v5807_v0  ;;  %v3918_v35 = vld [vmem:[%s5873_s24 + $0x80] sm:$0xff]  ;;  %v4467_v44 = vld [vmem:[%s5882_s0 + $0x10] sm:$0xff] }
 0x122   : > { %v972_v51 = vsel %vm4315_vm11, %v968_v46, 0.0  ;;  %v1081_v52 = vsel %vm4236_vm6, %v1077_v48, 0.0  ;;  %v973_v53 = vsel %vm4321_vm12, %v969_v47, 0.0  ;;  %v1082_v54 = vsel %vm4230_vm4, %v1078_v49, 0.0  ;;  %v4474_v46 = vld [vmem:[%s5882_s0] sm:$0xff]  ;;  %s5916_s0 = smov 111  }
 0x123   : > { %3884 = vmatprep.subr.msk.mxu0 %vm783_vm5, %v973_v53  ;;  %3890 = vmatprep.subr.msk.mxu1 %vm783_vm5, %v1082_v54  ;;  %v4051_v45 = vmov 7   ;;  %v4052_v47 = vmov 2   ;;  %v4053_v48 = vmov 3   ;;  %v4054_v49 = vmov 5  }
 0x124   : > { %v1287_v56 = vpop.permute.xlu1 %1286  ;;  %3877 = vmatmul.mubr.msk.f32.gmra.mxu0 %vm776_vm7, %v3873_v50  ;;  %3891 = vmatpush1.msk.msra.mxu1 %vm783_vm5, %v1081_v52  ;;  %v1396_v57 = vpop.permute.xlu0 %1395  ;;  %v4055_v52 = vmov 6  }
 0x125   : > { %3885 = vmatpush1.msk.msra.mxu0 %vm783_vm5, %v972_v51  ;;  %1050 = vmatprep.mubr.f32.mxu0 %v5807_v0 }
 0x126   : > { %3892 = vmatmul.mubr.msk.f32.vlgmr.msra.gmra.mxu1 %vm776_vm7, %v3888_v55 }
 0x127   : > { %1165 = vmatprep.mubr.f32.mxu1 %v5807_v0 }
 0x128   : > { %v1392_v60 = vpop.permute.xlu1 %1391  ;;  %3886 = vmatmul.mubr.msk.f32.vlgmr.msra.gmra.mxu0 %vm776_vm7, %v3882_v58  ;;  %v1285_v61 = vpop.permute.xlu0 %1284  ;;  %v4056_v58 = vmov 8  }
 0x129   : > { %v1289_v62 = vsel %vm1288_vm13, %v1283_v38, %v1285_v61  ;;  %v1290_v63 = vsel %vm1288_vm13, %v1285_v61, %v1287_v56  ;;  %1056 = vmatprep.mubr.f32.mxu0 %v5807_v0  ;;  %v4049_v38 = vmov 1  }
 0x12a   : > { %v1293_v3 = vsel %vm4315_vm11, %v1289_v62, 0.0  ;;  %v1294_v4 = vsel %vm4321_vm12, %v1290_v63, 0.0  ;;  %3893 = vmatmul.mubr.msk.f32.gmra.mxu1 %vm776_vm7, %v3889_v59  ;;  %4001 = vset.pattern.permute.xlu0 %v4049_v38 }
 0x12b   : > { %3902 = vmatprep.subr.msk.mxu1 %vm783_vm5, %v1294_v4  ;;  %1371 = vmatprep.mubr.f32.mxu1 %v5807_v0 }
 0x12c   : > { %v1182_v6 = vpop.permute.xlu1 %1181  ;;  %3887 = vmatmul.mubr.msk.f32.gmra.mxu0 %vm776_vm7, %v3883_v1  ;;  %3903 = vmatpush1.msk.msra.mxu1 %vm783_vm5, %v1293_v3  ;;  %v1501_v7 = vpop.permute.xlu0 %1500 }
 0x12d   : > { %v1186_v8 = vsel %vm1185_vm14, %v4304_v31, %v1182_v6  ;;  %v1187_v9 = vsel %vm1185_vm14, %v1182_v6, %v1184_v36  ;;  %1262 = vmatprep.mubr.f32.mxu0 %v5807_v0  ;;  %v3913_v31 = vld [vmem:[%s5873_s24 + $0x78] sm:$0xff]  ;;  %4000 = vset.pattern.permute.xlu1 %v4049_v38 }
 0x12e   : > { %3896 = vmatprep.subr.msk.mxu0 %vm783_vm5, %v1187_v9  ;;  %3904 = vmatmul.mubr.msk.f32.vlgmr.msra.gmra.mxu1 %vm776_vm7, %v3900_v5  ;;  %v1817_v5 = vld [vmem:[%s5877_s29 + $0x18] sm:$0xff] }
 0x12f   : > { %3897 = vmatpush1.msk.msra.mxu0 %vm783_vm5, %v1186_v8  ;;  %1377 = vmatprep.mubr.f32.mxu1 %v5807_v0 }
 0x130   : > { %v1394_v14 = vpop.permute.xlu1 %1393  ;;  %3898 = vmatmul.mubr.msk.f32.vlgmr.msra.gmra.mxu0 %vm776_vm7, %v3894_v10  ;;  %v1503_v19 = vpop.permute.xlu0 %1502  ;;  %2074 = vperm.xlu0 %4001, %v4454_v39  }
 0x131   : > { %v1398_v15 = vsel %vm1397_vm15, %v1392_v60, %v1394_v14  ;;  %v1399_v16 = vsel %vm1397_vm15, %v1394_v14, %v1396_v57  ;;  %1268 = vmatprep.mubr.f32.mxu0 %v5807_v0  ;;  %v1507_v26 = vsel %vm1506_vm0, %v1501_v7, %v1503_v19  ;;  %2066 = vperm.xlu1 %4000, %v4460_v41  }
 0x132   : > { %v1402_v18 = vsel %vm4236_vm6, %v1398_v15, 0.0  ;;  %v1403_v20 = vsel %vm4230_vm4, %v1399_v16, 0.0  ;;  %3905 = vmatmul.mubr.msk.f32.gmra.mxu1 %vm776_vm7, %v3901_v11  ;;  %v1816_v15 = vld [vmem:[%s5877_s29 + $0x10] sm:$0xff] }
 0x133   : > { %3908 = vmatprep.subr.msk.mxu0 %vm783_vm5, %v1403_v20  ;;  %1583 = vmatprep.mubr.f32.mxu1 %v5807_v0 }
 0x134   : > { %v1505_v22 = vpop.permute.xlu1 %1504  ;;  %3899 = vmatmul.mubr.msk.f32.gmra.mxu0 %vm776_vm7, %v3895_v17  ;;  %v1608_v27 = vpop.permute.xlu0 %1607  ;;  %4002 = vset.pattern.permute.xlu0 %v4050_v40 }
 0x135   : > { %v1508_v23 = vsel %vm1506_vm0, %v1503_v19, %v1505_v22  ;;  %3909 = vmatpush1.msk.msra.mxu0 %vm783_vm5, %v1402_v18  ;;  %1480 = vmatprep.mubr.f32.mxu0 %v5807_v0 }
 0x136   : > { %3914 = vmatprep.subr.msk.mxu1 %vm783_vm5, %v1508_v23  ;;  %2326 = vperm.xlu0 %4002, %v4460_v41  }
 0x137   : > { %3915 = vmatpush1.msk.msra.mxu1 %vm783_vm5, %v1507_v26  ;;  %2062 = vperm.xlu1 %4000, %v4474_v46  }
 0x138   : > { %v1606_v28 = vpop.permute.xlu1 %1605  ;;  %3910 = vmatmul.mubr.msk.f32.vlgmr.msra.gmra.mxu0 %vm776_vm7, %v3906_v24  ;;  %3916 = vmatmul.mubr.msk.f32.vlgmr.msra.gmra.mxu1 %vm776_vm7, %v3912_v25 }
 0x139   : > { %v1611_v29 = vsel %vm1609_vm1, %v1606_v28, %v1608_v27  ;;  %1486 = vmatprep.mubr.f32.mxu0 %v5807_v0  ;;  %1589 = vmatprep.mubr.f32.mxu1 %v5807_v0 }
 0x13a   : > { %v1615_v32 = vsel %vm4321_vm12, %v1611_v29, 0.0  ;;  %2330 = vperm.xlu0 %4002, %v4467_v44  }
 0x13b   : > { %3920 = vmatprep.subr.msk.mxu0 %vm783_vm5, %v1615_v32  ;;  %2070 = vperm.xlu1 %4000, %v4467_v44  }
 0x13c   : > { %v1604_v33 = vpop.permute.xlu1 %1603  ;;  %3911 = vmatmul.mubr.msk.f32.gmra.mxu0 %vm776_vm7, %v3907_v30  ;;  %3917 = vmatmul.mubr.msk.f32.gmra.mxu1 %vm776_vm7, %v3913_v31 }
 0x13d   : > { %v1610_v34 = vsel %vm1609_vm1, %v1604_v33, %v1606_v28  ;;  %1692 = vmatprep.mubr.f32.mxu0 %v5807_v0  ;;  %1933 = vmatprep.mubr.f32.mxu1 %v5807_v0 }
 0x13e   : > { %v1614_v36 = vsel %vm4315_vm11, %v1610_v34, 0.0  ;;  %4005 = vset.pattern.permute.xlu0 %v4051_v45 }
 0x13f   : > { %3921 = vmatpush1.msk.msra.mxu0 %vm783_vm5, %v1614_v36  ;;  %2582 = vperm.xlu0 %4005, %v4454_v39   ;;  %vm1980_vm5 = vcmask 1047688  }
 0x140   : > { %3922 = vmatmul.mubr.msk.f32.vlgmr.msra.gmra.mxu0 %vm776_vm7, %v3918_v35  ;;  %4003 = vset.pattern.permute.xlu1 %v4050_v40 }
 0x141   : > { %1698 = vmatprep.mubr.f32.mxu0 %v5807_v0  ;;  %2334 = vperm.xlu1 %4003, %v4454_v39  }
 0x143   : > { %4008 = vset.pattern.permute.xlu0 %v4052_v47 }
 0x144   : > { %3923 = vmatmul.mubr.msk.f32.gmra.mxu0 %vm776_vm7, %v3919_v37  ;;  %2222 = vperm.xlu0 %4008, %v4454_v39  }
 0x145   : > { %1915 = vmatprep.mubr.f32.mxu0 %v5807_v0  ;;  %2322 = vperm.xlu1 %4003, %v4474_v46  }
 0x148   : > { %4009 = vset.pattern.permute.xlu0 %v4053_v48 }
 0x149   : > { %2294 = vperm.xlu0 %4009, %v4460_v41   ;;  %4004 = vset.pattern.permute.xlu1 %v4051_v45 }
 0x14a   : > { %2574 = vperm.xlu1 %4004, %v4460_v41  }
 0x14d   : > { %2298 = vperm.xlu0 %4009, %v4467_v44  }
 0x14e   : > { %2570 = vperm.xlu1 %4004, %v4474_v46  }
 0x151   : > { %4012 = vset.pattern.permute.xlu0 %v4054_v49 }
 0x152   : > { %2470 = vperm.xlu0 %4012, %v4454_v39   ;;  %2578 = vperm.xlu1 %4004, %v4467_v44  }
 0x156   : > { %2458 = vperm.xlu0 %4012, %v4474_v46   ;;  %4006 = vset.pattern.permute.xlu1 %v4048_v21 }
 0x157   : > { %2030 = vperm.xlu1 %4006, %v4454_v39  }
 0x15a   : > { %4013 = vset.pattern.permute.xlu0 %v4055_v52 }
 0x15b   : > { %2542 = vperm.xlu0 %4013, %v4460_v41   ;;  %2015 = vperm.xlu1 %4006, %v4474_v46  }
 0x15f   : > { %2546 = vperm.xlu0 %4013, %v4467_v44   ;;  %4007 = vset.pattern.permute.xlu1 %v4052_v47 }
 0x160   : > { %2214 = vperm.xlu1 %4007, %v4460_v41  }
 0x163   : > { %v943_v50 = vpop.f32.mrf.mxu1  ;;  %4016 = vset.pattern.permute.xlu0 %v4056_v58 }
 0x164   : > { %2718 = vperm.xlu0 %4016, %v4454_v39   ;;  %2210 = vperm.xlu1 %4007, %v4474_v46  }
 0x165   : > { %v945_v51 = vpop.f32.mrf.mxu1 }
 0x167   : > { %v949_v54 = vpop.f32.mrf.mxu1 }
 0x168   : > { %2706 = vperm.xlu0 %4016, %v4474_v46   ;;  %2218 = vperm.xlu1 %4007, %v4467_v44  }
 0x169   : > { %v951_v57 = vpop.f32.mrf.mxu1 }
 0x16c   : > { %4017 = vset.pattern.permute.xlu0 %v4048_v21  ;;  %4010 = vset.pattern.permute.xlu1 %v4053_v48 }
 0x16d   : > { %1835 = vperm.xlu0 %4017, %v1817_v5   ;;  %2302 = vperm.xlu1 %4010, %v4454_v39  }
 0x171   : > { %1830 = vperm.xlu0 %4017, %v1816_v15   ;;  %2290 = vperm.xlu1 %4010, %v4474_v46  }
 0x175   : > { %2020 = vperm.xlu0 %4017, %v4460_v41   ;;  %4011 = vset.pattern.permute.xlu1 %v4054_v49 }
 0x176   : > { %2462 = vperm.xlu1 %4011, %v4460_v41  }
 0x179   : > { %2025 = vperm.xlu0 %4017, %v4467_v44  }
 0x17a   : > { %2466 = vperm.xlu1 %4011, %v4467_v44  }
 0x17e   : > { %4014 = vset.pattern.permute.xlu1 %v4055_v52 }
 0x17f   : > { %2550 = vperm.xlu1 %4014, %v4454_v39  }
 0x183   : > { %2538 = vperm.xlu1 %4014, %v4474_v46  }
 0x187   : > { %4015 = vset.pattern.permute.xlu1 %v4056_v58  ;;  %v2740_v58 = vld [vmem:[%s5883_s8 + $0x18] sm:$0xff] }
 0x188   : > { %2710 = vperm.xlu1 %4015, %v4460_v41  }
 0x18c   : > { %2714 = vperm.xlu1 %4015, %v4467_v44  }
 0x190   : > { %4018 = vset.pattern.permute.xlu1 %v4048_v21 }
 0x191   : > { %2758 = vperm.xlu1 %4018, %v2740_v58  }
 0x1e0   : > { %v854_v53 = vpop.f32.mrf.mxu0 }
 0x1e1   : > { %v944_v6 = vadd.f32 %v943_v50, %v854_v53 }
 0x1e2   : > { %v856_v55 = vpop.f32.mrf.mxu0 }
 0x1e3   : > { %v946_v9 = vadd.f32 %v945_v51, %v856_v55  ;;  %v2738_v51 = vld [vmem:[%s5883_s8 + $0x8] sm:$0xff] }
 0x1e4   : > { %v860_v56 = vpop.f32.mrf.mxu0  ;;  %2748 = vperm.xlu0 %4017, %v2738_v51  }
 0x1e5   : > { %v950_v16 = vadd.f32 %v949_v54, %v860_v56 }
 0x1e6   : > { %v862_v59 = vpop.f32.mrf.mxu0  ;;  %v1161_v60 = vpop.f32.mrf.mxu1 }
 0x1e7   : > { %v952_v20 = vadd.f32 %v951_v57, %v862_v59 }
 0x1e8   : > { %v1052_v61 = vpop.f32.mrf.mxu0  ;;  %v1163_v62 = vpop.f32.mrf.mxu1 }
 0x1e9   : > { %v1063_v10 = vadd.f32 %v1052_v61, %v944_v6  ;;  %v1714_v6 = vpop.permute.xlu0 %1713 }
 0x1ea   : > { %v1054_v63 = vpop.f32.mrf.mxu0  ;;  %v1167_v1 = vpop.f32.mrf.mxu1 }
 0x1eb   : > { %v1064_v17 = vadd.f32 %v1054_v63, %v946_v9  ;;  %v1172_v22 = vadd.f32 %v1161_v60, %v1063_v10 }
 0x1ec   : > { %v1058_v3 = vpop.f32.mrf.mxu0  ;;  %v1169_v4 = vpop.f32.mrf.mxu1 }
 0x1ed   : > { %v1065_v23 = vadd.f32 %v1058_v3, %v950_v16  ;;  %v1173_v26 = vadd.f32 %v1163_v62, %v1064_v17 }
 0x1ee   : > { %v1060_v7 = vpop.f32.mrf.mxu0  ;;  %v1373_v8 = vpop.f32.mrf.mxu1 }
 0x1ef   : > { %v1066_v27 = vadd.f32 %v1060_v7, %v952_v20  ;;  %v1174_v30 = vadd.f32 %v1167_v1, %v1065_v23 }
 0x1f0   : > { %v1264_v11 = vpop.f32.mrf.mxu0  ;;  %v1375_v14 = vpop.f32.mrf.mxu1 }
 0x1f1   : > { %v1275_v28 = vadd.f32 %v1264_v11, %v1172_v22  ;;  %v1175_v34 = vadd.f32 %v1169_v4, %v1066_v27  ;;  %v1719_v11 = vpop.permute.xlu1 %1718 }
 0x1f2   : > { %v1266_v18 = vpop.f32.mrf.mxu0  ;;  %v1379_v19 = vpop.f32.mrf.mxu1 }
 0x1f3   : > { %v1276_v31 = vadd.f32 %v1266_v18, %v1173_v26  ;;  %v1384_v35 = vadd.f32 %v1373_v8, %v1275_v28 }
 0x1f4   : > { %v1270_v24 = vpop.f32.mrf.mxu0  ;;  %v1381_v25 = vpop.f32.mrf.mxu1 }
 0x1f5   : > { %v1277_v36 = vadd.f32 %v1270_v24, %v1174_v30  ;;  %v1385_v40 = vadd.f32 %v1375_v14, %v1276_v31 }
 0x1f6   : > { %v1272_v29 = vpop.f32.mrf.mxu0 }
 0x1f7   : > { %v1278_v45 = vadd.f32 %v1272_v29, %v1175_v34  ;;  %v1386_v48 = vadd.f32 %v1379_v19, %v1277_v36 }
 0x1f8   : > { %v1482_v32 = vpop.f32.mrf.mxu0  ;;  %v1585_v33 = vpop.f32.mrf.mxu1 }
 0x1f9   : > { %v1493_v47 = vadd.f32 %v1482_v32, %v1384_v35  ;;  %v1387_v56 = vadd.f32 %v1381_v25, %v1278_v45 }
 0x1fa   : > { %v1484_v37 = vpop.f32.mrf.mxu0  ;;  %v1587_v38 = vpop.f32.mrf.mxu1 }
 0x1fb   : > { %v1494_v53 = vadd.f32 %v1484_v37, %v1385_v40  ;;  %v1596_v57 = vadd.f32 %v1585_v33, %v1493_v47 }
 0x1fc   : > { %v1488_v50 = vpop.f32.mrf.mxu0  ;;  %v1591_v55 = vpop.f32.mrf.mxu1 }
 0x1fd   : > { %v1495_v59 = vadd.f32 %v1488_v50, %v1386_v48  ;;  %v1597_v61 = vadd.f32 %v1587_v38, %v1494_v53 }
 0x1fe   : > { %v1490_v54 = vpop.f32.mrf.mxu0  ;;  %v1593_v1 = vpop.f32.mrf.mxu1 }
 0x1ff   : > { %v1496_v62 = vadd.f32 %v1490_v54, %v1387_v56  ;;  %v1598_v4 = vadd.f32 %v1591_v55, %v1495_v59 }
 0x200   : > { %v1694_v60 = vpop.f32.mrf.mxu0 }
 0x201   : > { %v1705_v63 = vadd.f32 %v1694_v60, %v1596_v57  ;;  %v1599_v8 = vadd.f32 %v1593_v1, %v1496_v62 }
 0x202   : > { %v1696_v3 = vpop.f32.mrf.mxu0 }
 0x203   : > { %v1706_v5 = vadd.f32 %v1696_v3, %v1597_v61  ;;  %v4519_v9 = vadd.f32 %v1714_v6, %v1705_v63 }
 0x204   : > { %v1700_v7 = vpop.f32.mrf.mxu0 }
 0x205   : > { %5884 = vst [vmem:[#allocation8_spill] sm:$0xff] %v4519_v9  ;;  %v1707_v10 = vadd.f32 %v1700_v7, %v1598_v4  ;;  %v4522_v14 = vadd.f32 %v1714_v6, %v1706_v5  ;;  %v1746_v17 = vmul.f32 %v4519_v9, %v4519_v9  ;;  %v1790_v5 = vpop.permute.xlu1 %1789 }
 0x206   : > { %v1702_v49 = vpop.f32.mrf.mxu0 }
 0x207   : > { %5885 = vst [vmem:[#allocation9_spill] sm:$0xff] %v4522_v14  ;;  %v4524_v15 = vadd.f32 %v1719_v11, %v1707_v10  ;;  %v1708_v16 = vadd.f32 %v1702_v49, %v1599_v8  ;;  %v1747_v22 = vmul.f32 %v4522_v14, %v4522_v14  ;;  %v1785_v49 = vpop.permute.xlu0 %1784 }
 0x209   : > { %5886 = vst [vmem:[#allocation10_spill] sm:$0xff] %v4524_v15  ;;  %v1729_v18 = vadd.f32 %v4524_v15, %v4519_v9  ;;  %v1748_v19 = vmul.f32 %v4524_v15, %v4524_v15  ;;  %v4532_v20 = vadd.f32 %v1719_v11, %v1708_v16 }
 0x20b   : > { %5887 = vst [vmem:[#allocation11_spill] sm:$0xff] %v4532_v20  ;;  %v1730_v23 = vrot.slane %v1729_v18, 4  ;;  %v1750_v24 = vadd.f32 %v1748_v19, %v1746_v17  ;;  %v1736_v25 = vadd.f32 %v4532_v20, %v4522_v14  ;;  %v1749_v26 = vmul.f32 %v4532_v20, %v4532_v20 }
 0x20d   : > { %v1731_v27 = vadd.f32 %v1730_v23, %v1729_v18  ;;  %v1751_v28 = vrot.slane %v1750_v24, 4  ;;  %v1737_v29 = vrot.slane %v1736_v25, 4  ;;  %v1757_v30 = vadd.f32 %v1749_v26, %v1747_v22  ;;  %v1804_v23 = vpop.permute.xlu1 %1803  ;;  %v1799_v26 = vpop.permute.xlu0 %1798 }
 0x20f   : > { %v1732_v52 = vrot.slane %v1731_v27, 2  ;;  %v1752_v31 = vadd.f32 %v1751_v28, %v1750_v24  ;;  %v1738_v32 = vadd.f32 %v1737_v29, %v1736_v25  ;;  %v1758_v33 = vrot.slane %v1757_v30, 4 }
 0x211   : > { %v1733_v34 = vadd.f32 %v1732_v52, %v1731_v27  ;;  %v1753_v39 = vrot.slane %v1752_v31, 2  ;;  %v1739_v35 = vrot.slane %v1738_v32, 2  ;;  %v1759_v36 = vadd.f32 %v1758_v33, %v1757_v30  ;;  %v1810_v30 = vld [vmem:[%s5888_s25] sm:$0xff]  ;;  %v1813_v52 = vld [vmem:[%s5888_s25 + $0x18] sm:$0xff]  ;;  %v4574_v33 = vpop.permute.xlu0 %2074 }
 0x213   : > { %v1734_v37 = vrot.slane %v1733_v34, 1  ;;  %v1754_v38 = vadd.f32 %v1753_v39, %v1752_v31  ;;  %v1760_v40 = vrot.slane %v1759_v36, 2  ;;  %v1740_v45 = vadd.f32 %v1739_v35, %v1738_v32  ;;  %v1811_v31 = vld [vmem:[%s5888_s25 + $0x8] sm:$0xff]  ;;  %v1812_v32 = vld [vmem:[%s5888_s25 + $0x10] sm:$0xff] }
 0x215   : > { %v1735_v47 = vadd.f32 %v1734_v37, %v1733_v34  ;;  %v1755_v50 = vrot.slane %v1754_v38, 1  ;;  %v1761_v51 = vadd.f32 %v1760_v40, %v1759_v36  ;;  %v1741_v46 = vrot.slane %v1740_v45, 1  ;;  %v4576_v34 = vpop.permute.xlu0 %2326 }
 0x217   : > { %v1744_v48 = vmul.f32 0.0625, %v1735_v47  ;;  %v1756_v53 = vadd.f32 %v1755_v50, %v1754_v38  ;;  %v1762_v54 = vrot.slane %v1761_v51, 1  ;;  %v1742_v55 = vadd.f32 %v1741_v46, %v1740_v45 }
 0x219   : > { %v1764_v56 = vmul.f32 0.0625, %v1756_v53  ;;  %v1766_v57 = vmul.f32 %v1744_v48, %v1744_v48  ;;  %v1763_v59 = vadd.f32 %v1762_v54, %v1761_v51  ;;  %v1745_v60 = vmul.f32 0.0625, %v1742_v55  ;;  %v4578_v39 = vpop.permute.xlu0 %2330  ;;  %v1826_v51 = vpop.permute.xlu1 %1825 }
 0x21a   : > { %v1772_v44 = vsub.f32 %v4524_v15, %v1744_v48  ;;  %v1770_v6 = vsub.f32 %v4519_v9, %v1744_v48 }
 0x21b   : > { %v1765_v61 = vmul.f32 0.0625, %v1763_v59  ;;  %v1768_v41 = vsub.f32 %v1764_v56, %v1766_v57  ;;  %v1767_v62 = vmul.f32 %v1745_v60, %v1745_v60  ;;  %v1771_v8 = vsub.f32 %v4522_v14, %v1745_v60 }
 0x21c   : > { %v1773_v10 = vsub.f32 %v4532_v20, %v1745_v60 }
 0x21d   : > { %v1774_v63 = vadd.f32 1e-06, %v1768_v41  ;;  %v1769_v1 = vsub.f32 %v1765_v61, %v1767_v62  ;;  %v4580_v35 = vpop.permute.xlu0 %2582  ;;  %v1821_v48 = vpop.permute.xlu1 %1820 }
 0x21f   : > { %4021 = vrsqrt.f32 %v1774_v63  ;;  %v1775_v3 = vadd.f32 1e-06, %v1769_v1 }
 0x221   : > { %4023 = vrsqrt.f32 %v1775_v3  ;;  %v4582_v36 = vpop.permute.xlu0 %2222  ;;  %v4600_v54 = vpop.permute.xlu1 %2066 }
 0x225   : > { %v4584_v37 = vpop.permute.xlu0 %2294  ;;  %v4602_v56 = vpop.permute.xlu1 %2062 }
 0x229   : > { %v4586_v38 = vpop.permute.xlu0 %2298  ;;  %v4606_v1 = vpop.permute.xlu1 %2070 }
 0x22a   : > { %5889 = vst [vmem:[#allocation12_spill] sm:$0xff] %v4586_v38 }
 0x22c   : > { %v4022_v4 = vpop.eup %4021 }
 0x22d   : > { %v1780_v7 = vmul.f32 %v4022_v4, %v1772_v44  ;;  %v1778_v21 = vmul.f32 %v4022_v4, %v1770_v6  ;;  %v4588_v40 = vpop.permute.xlu0 %2470  ;;  %v4610_v6 = vpop.permute.xlu1 %2334 }
 0x22e   : > { %v4024_v11 = vpop.eup %4023 }
 0x22f   : > { %v1779_v16 = vmul.f32 %v4024_v11, %v1771_v8  ;;  %v1781_v17 = vmul.f32 %v4024_v11, %v1773_v10  ;;  %v1794_v18 = vmul.f32 %v1790_v5, %v1780_v7  ;;  %v1792_v24 = vmul.f32 %v1785_v49, %v1778_v21 }
 0x231   : > { %v1793_v19 = vmul.f32 %v1785_v49, %v1779_v16  ;;  %v1795_v22 = vmul.f32 %v1790_v5, %v1781_v17  ;;  %v1808_v27 = vadd.f32 %v1804_v23, %v1794_v18  ;;  %v1806_v29 = vadd.f32 %v1799_v26, %v1792_v24  ;;  %v4590_v45 = vpop.permute.xlu0 %2458  ;;  %v4615_v49 = vpop.permute.xlu1 %2322 }
 0x232   : > { %5890 = vst [vmem:[#allocation13_spill] sm:$0xff] %v4590_v45 }
 0x233   : > { %v1809_v25 = vadd.f32 %v1804_v23, %v1795_v22  ;;  %v1807_v28 = vadd.f32 %v1799_v26, %v1793_v19 }
 0x235   : > { %1879 = vmatprep.subr.mxu0 %v1809_v25  ;;  %3967 = vmatprep.subr.mxu1 %v1809_v25  ;;  %v4592_v47 = vpop.permute.xlu0 %2542  ;;  %v4618_v16 = vpop.permute.xlu1 %2574 }
 0x236   : > { %1880 = vmatpush1.msra.mxu0 %v1808_v27  ;;  %3969 = vmatpush1.msra.mxu1 %v1808_v27  ;;  %5891 = vst [vmem:[#allocation14_spill] sm:$0xff] %v4592_v47 }
 0x237   : > { %1881 = vmatprep.subr.mxu0 %v1807_v28  ;;  %3968 = vmatprep.subr.mxu1 %v1807_v28 }
 0x238   : > { %1882 = vmatpush1.msra.mxu0 %v1806_v29  ;;  %3970 = vmatpush1.msra.mxu1 %v1806_v29 }
 0x239   : > { %3924 = vmatmul.mubr.msk.f32.vlgmr.msra.gmra.mxu0 %vm1838_vm3, %v1810_v30  ;;  %3927 = vmatmul.mubr.msk.f32.vlgmr.msra.gmra.mxu1 %vm1838_vm3, %v1813_v52  ;;  %v4594_v50 = vpop.permute.xlu0 %2546  ;;  %v4620_v17 = vpop.permute.xlu1 %2570 }
 0x23a   : > { %1921 = vmatprep.mubr.f32.mxu0 %v5807_v0  ;;  %3190 = vmatprep.mubr.f32.mxu1 %v5807_v0  ;;  %5892 = vst [vmem:[#allocation15_spill] sm:$0xff] %v4594_v50 }
 0x23d   : > { %3925 = vmatmul.mubr.msk.f32.gmra.mxu0 %vm1838_vm3, %v1811_v31  ;;  %v4596_v46 = vpop.permute.xlu0 %2718  ;;  %v4622_v18 = vpop.permute.xlu1 %2578 }
 0x23e   : > { %1927 = vmatprep.mubr.f32.mxu0 %v5807_v0  ;;  %5893 = vst [vmem:[#allocation16_spill] sm:$0xff] %v4596_v46 }
 0x241   : > { %3926 = vmatmul.mubr.msk.f32.gmra.mxu0 %vm1838_vm3, %v1812_v32  ;;  %v4598_v53 = vpop.permute.xlu0 %2706  ;;  %v4624_v19 = vpop.permute.xlu1 %2030 }
 0x242   : > { %2845 = vmatprep.mubr.f32.mxu0 %v5807_v0  ;;  %5894 = vst [vmem:[#allocation17_spill] sm:$0xff] %v4598_v53 }
 0x245   : > { %v1836_v55 = vpop.permute.xlu0 %1835  ;;  %v4626_v22 = vpop.permute.xlu1 %2015 }
 0x246   : > { %5896 = vst [vmem:[#allocation18_spill] sm:$0xff] %v4626_v22 }
 0x249   : > { %v1831_v8 = vpop.permute.xlu0 %1830  ;;  %v4628_v23 = vpop.permute.xlu1 %2214 }
 0x24d   : > { %v4630_v24 = vpop.permute.xlu1 %2210  ;;  %v4648_v32 = vpop.permute.xlu0 %2020 }
 0x24e   : > { %5897 = vst [vmem:[#allocation19_spill] sm:$0xff] %v4630_v24 }
 0x251   : > { %v4632_v25 = vpop.permute.xlu1 %2218 }
 0x252   : > { %5898 = vst [vmem:[#allocation20_spill] sm:$0xff] %v4632_v25 }
 0x255   : > { %v4634_v26 = vpop.permute.xlu1 %2302 }
 0x259   : > { %v4636_v27 = vpop.permute.xlu1 %2290 }
 0x25a   : > { %5899 = vst [vmem:[#allocation21_spill] sm:$0xff] %v4636_v27 }
 0x25d   : > { %v4638_v28 = vpop.permute.xlu1 %2462 }
 0x25e   : > { %5900 = vst [vmem:[#allocation22_spill] sm:$0xff] %v4638_v28 }
 0x261   : > { %v4640_v29 = vpop.permute.xlu1 %2466 }
 0x262   : > { %5901 = vst [vmem:[#allocation23_spill] sm:$0xff] %v4640_v29 }
 0x265   : > { %v4642_v30 = vpop.permute.xlu1 %2550 }
 0x269   : > { %v4644_v52 = vpop.permute.xlu1 %2538 }
 0x26a   : > { %5902 = vst [vmem:[#allocation24_spill] sm:$0xff] %v4644_v52 }
 0x26d   : > { %v4646_v31 = vpop.permute.xlu1 %2710 }
 0x26e   : > { %5903 = vst [vmem:[#allocation25_spill] sm:$0xff] %v4646_v31 }
 0x2f9   : > { %v1917_v57 = vpop.f32.mrf.mxu0  ;;  %v1935_v59 = vpop.f32.mrf.mxu1 }
 0x2fa   : > { %v1936_v58 = vadd.f32 %v1935_v59, %v1836_v55  ;;  %v1918_v63 = vadd.f32 %v1917_v57, %v1821_v48 }
 0x2fb   : > { %v1919_v60 = vpop.f32.mrf.mxu0  ;;  %v1937_v61 = vpop.f32.mrf.mxu1 }
 0x2fc   : > { %v1938_v41 = vadd.f32 %v1937_v61, %v1836_v55  ;;  %1960 = vrot.lane.b32.xlu1 %v1936_v58, %s5895_s26  ;;  %v1920_v44 = vadd.f32 %v1919_v60, %v1821_v48  ;;  %v4652_v48 = vpop.permute.xlu0 %2025 }
 0x2fd   : > { %v1923_v62 = vpop.f32.mrf.mxu0  ;;  %5905 = vst [vmem:[#allocation27_spill] sm:$0xff] %v4652_v48 }
 0x2fe   : > { %1962 = vrot.lane.b32.xlu0 %v1938_v41, %s5895_s26  ;;  %v1924_v5 = vadd.f32 %v1923_v62, %v1826_v51 }
 0x2ff   : > { %v1925_v3 = vpop.f32.mrf.mxu0 }
 0x300   : > { %1948 = vrot.lane.b32.xlu1 %v1918_v63, %s5895_s26  ;;  %v1926_v7 = vadd.f32 %v1925_v3, %v1826_v51  ;;  %v4650_v51 = vpop.permute.xlu1 %2714  ;;  %v4656_v57 = vpop.permute.xlu0 %2748 }
 0x301   : > { %v1929_v4 = vpop.f32.mrf.mxu0  ;;  %5904 = vst [vmem:[#allocation26_spill] sm:$0xff] %v4650_v51  ;;  %5907 = vst [vmem:[#allocation29_spill] sm:$0xff] %v4656_v57 }
 0x302   : > { %1950 = vrot.lane.b32.xlu0 %v1920_v44, %s5895_s26  ;;  %v1930_v11 = vadd.f32 %v1929_v4, %v1831_v8 }
 0x303   : > { %v1931_v10 = vpop.f32.mrf.mxu0 }
 0x304   : > { %1952 = vrot.lane.b32.xlu1 %v1924_v5, %s5895_s26  ;;  %v1932_v21 = vadd.f32 %v1931_v10, %v1831_v8  ;;  %v4654_v55 = vpop.permute.xlu1 %2758 }
 0x305   : > { %5906 = vst [vmem:[#allocation28_spill] sm:$0xff] %v4654_v55 }
 0x306   : > { %1954 = vrot.lane.b32.xlu0 %v1926_v7, %s5895_s26 }
 0x308   : > { %1956 = vrot.lane.b32.xlu1 %v1930_v11, %s5895_s26 }
 0x30a   : > { %1958 = vrot.lane.b32.xlu0 %v1932_v21, %s5895_s26 }
 0x36e   : > { %v1961_v59 = vpop.permute.xlu1 %1960 }
 0x36f   : > { %1990 = vst.msk [vmem:[#allocation2 + $0x48] sm:$0xff] %vm1980_vm5, %v1961_v59 }
 0x370   : > { %v1963_v58 = vpop.permute.xlu0 %1962 }
 0x371   : > { %v4660_v60 = vsel %vm740_vm2, %v1961_v59, %v1963_v58  ;;  %1992 = vst.msk [vmem:[#allocation2 + $0x58] sm:$0xff] %vm740_vm2, %v1963_v58 }
 0x372   : > { %v1949_v61 = vpop.permute.xlu1 %1948  ;;  %v2012_v31 = vsel %vm4230_vm4, %v4660_v60, 0.0 }
 0x373   : > { %1981 = vst.msk [vmem:[#allocation2] sm:$0xff] %vm1980_vm5, %v1949_v61 }
 0x374   : > { %v1951_v41 = vpop.permute.xlu0 %1950 }
 0x375   : > { %1983 = vst.msk [vmem:[#allocation2 + $0x10] sm:$0xff] %vm740_vm2, %v1951_v41 }
 0x376   : > { %v4665_v62 = vpop.permute.xlu1 %1952  ;;  %v4667_v63 = vld [vmem:[#allocation2 + $0x48] sm:$0xff] }
 0x377   : > { %1984 = vst.msk [vmem:[#allocation2 + $0x18] sm:$0xff] %vm1980_vm5, %v4665_v62  ;;  %2179 = vrot.lane.b32.xlu0 %v4667_v63, %s5908_s23  ;;  %v2086_v21 = vmul.f32 %v4574_v33, %v4667_v63  ;;  %v2346_v58 = vmul.f32 %v4610_v6, %v4667_v63  ;;  %v2011_v55 = vsel %vm4236_vm6, %v4667_v63, 0.0 }
 0x378   : > { %v4673_v3 = vpop.permute.xlu0 %1954  ;;  %v2060_v10 = vld [vmem:[#allocation2 + $0x58] sm:$0xff] }
 0x379   : > { %1986 = vst.msk [vmem:[#allocation2 + $0x28] sm:$0xff] %vm740_vm2, %v4673_v3 }
 0x37a   : > { %v1957_v44 = vpop.permute.xlu1 %1956  ;;  %v4677_v4 = vld [vmem:[#allocation2] sm:$0xff] }
 0x37b   : > { %5909 = vst [vmem:[#allocation30_spill] sm:$0xff] %v4677_v4  ;;  %1987 = vst.msk [vmem:[#allocation2 + $0x30] sm:$0xff] %vm1980_vm5, %v1957_v44  ;;  %2259 = vrot.lane.b32.xlu0 %v4667_v63, %s5910_s4  ;;  %2161 = vrot.lane.b32.xlu1 %v4677_v4, %s5908_s23  ;;  %v2077_v8 = vmul.f32 %v4602_v56, %v4677_v4  ;;  %v2337_v59 = vmul.f32 %v4615_v49, %v4677_v4 }
 0x37c   : > { %v1959_v5 = vpop.permute.xlu0 %1958  ;;  %v2051_v11 = vld [vmem:[#allocation2 + $0x10] sm:$0xff] }
 0x37d   : > { %v4685_v7 = vsel %vm740_vm2, %v1957_v44, %v1959_v5  ;;  %1989 = vst.msk [vmem:[#allocation2 + $0x40] sm:$0xff] %vm740_vm2, %v1959_v5  ;;  %v4723_v44 = vsel %vm740_vm2, %v1949_v61, %v1951_v41  ;;  %v2594_v5 = vmul.f32 %v4580_v35, %v4667_v63  ;;  %v2088_v41 = vmul.f32 %v4574_v33, %v2060_v10 }
 0x37e   : > { %5911 = vst [vmem:[#allocation31_spill] sm:$0xff] %v4685_v7  ;;  %5917 = vst [vmem:[#allocation32_spill] sm:$0xff] %v4723_v44  ;;  %v4746_v61 = vld [vmem:[#allocation2 + $0x18] sm:$0xff] }
 0x37f   : > { %2241 = vrot.lane.b32.xlu0 %v4677_v4, %s5910_s4  ;;  %2409 = vrot.lane.b32.xlu1 %v4677_v4, %s5912_s6 }
 0x383   : > { %2427 = vrot.lane.b32.xlu0 %v4667_v63, %s5912_s6  ;;  %2675 = vrot.lane.b32.xlu1 %v4667_v63, %s5913_s5 }
 0x384   : > { %v2057_v53 = vld [vmem:[#allocation2 + $0x40] sm:$0xff] }
 0x387   : > { %2507 = vrot.lane.b32.xlu0 %v4667_v63, %s5914_s1  ;;  %2657 = vrot.lane.b32.xlu1 %v4677_v4, %s5913_s5  ;;  %v2039_v63 = vmul.f32 %v4624_v19, %v2011_v55 }
 0x38b   : > { %2489 = vrot.lane.b32.xlu0 %v4677_v4, %s5914_s1  ;;  %2101 = vrot.lane.b32.xlu1 %v2077_v8, %s5915_s28  ;;  %v2079_v8 = vmul.f32 %v4602_v56, %v2051_v11 }
 0x38f   : > { %2183 = vrot.lane.b32.xlu0 %v2060_v10, %s5908_s23  ;;  %2245 = vrot.lane.b32.xlu1 %v2051_v11, %s5910_s4 }
 0x393   : > { %2119 = vrot.lane.b32.xlu0 %v2086_v21, %s5915_s28  ;;  %2361 = vrot.lane.b32.xlu1 %v2337_v59, %s5916_s0  ;;  %v2348_v21 = vmul.f32 %v4610_v6, %v2060_v10  ;;  %v2596_v59 = vmul.f32 %v4580_v35, %v2060_v10 }
 0x397   : > { %2493 = vrot.lane.b32.xlu1 %v2051_v11, %s5914_s1  ;;  %2165 = vrot.lane.b32.xlu0 %v2051_v11, %s5908_s23 }
 0x39b   : > { %2679 = vrot.lane.b32.xlu1 %v2060_v10, %s5913_s5  ;;  %2263 = vrot.lane.b32.xlu0 %v2060_v10, %s5910_s4 }
 0x39f   : > { %2181 = vrot.lane.b32.xlu1 %v4660_v60, %s5908_s23  ;;  %2431 = vrot.lane.b32.xlu0 %v2060_v10, %s5912_s6 }
 0x3a3   : > { %2379 = vrot.lane.b32.xlu0 %v2346_v58, %s5916_s0  ;;  %2163 = vrot.lane.b32.xlu1 %v4723_v44, %s5908_s23  ;;  %v2339_v58 = vmul.f32 %v4615_v49, %v2051_v11 }
 0x3a7   : > { %2413 = vrot.lane.b32.xlu0 %v2051_v11, %s5912_s6  ;;  %2261 = vrot.lane.b32.xlu1 %v4660_v60, %s5910_s4 }
 0x3ab   : > { %2511 = vrot.lane.b32.xlu0 %v2060_v10, %s5914_s1  ;;  %2429 = vrot.lane.b32.xlu1 %v4660_v60, %s5912_s6  ;;  %v2587_v10 = vmul.f32 %v4620_v17, %v2051_v11 }
 0x3af   : > { %2627 = vrot.lane.b32.xlu0 %v2594_v5, %s5918_s3  ;;  %2411 = vrot.lane.b32.xlu1 %v4723_v44, %s5912_s6  ;;  %v2087_v5 = vmul.f32 %v4574_v33, %v4660_v60  ;;  %v2595_v33 = vmul.f32 %v4580_v35, %v4660_v60  ;;  %v2340_v35 = vmul.f32 %v4576_v34, %v4746_v61 }
 0x3b3   : > { %2661 = vrot.lane.b32.xlu0 %v2051_v11, %s5913_s5  ;;  %2509 = vrot.lane.b32.xlu1 %v4660_v60, %s5914_s1  ;;  %v2586_v11 = vmul.f32 %v4620_v17, %v4723_v44 }
 0x3b7   : > { %2243 = vrot.lane.b32.xlu0 %v4723_v44, %s5910_s4  ;;  %2659 = vrot.lane.b32.xlu1 %v4723_v44, %s5913_s5 }
 0x3bb   : > { %2491 = vrot.lane.b32.xlu0 %v4723_v44, %s5914_s1  ;;  %2167 = vrot.lane.b32.xlu1 %v4746_v61, %s5908_s23 }
 0x3bf   : > { %2677 = vrot.lane.b32.xlu0 %v4660_v60, %s5913_s5  ;;  %2247 = vrot.lane.b32.xlu1 %v4746_v61, %s5910_s4 }
 0x3c3   : > { %2123 = vrot.lane.b32.xlu0 %v2088_v41, %s5915_s28  ;;  %2415 = vrot.lane.b32.xlu1 %v4746_v61, %s5912_s6  ;;  %v2078_v41 = vmul.f32 %v4602_v56, %v4723_v44  ;;  %v2338_v56 = vmul.f32 %v4615_v49, %v4723_v44 }
 0x3c7   : > { %2105 = vrot.lane.b32.xlu0 %v2079_v8, %s5915_s28  ;;  %2495 = vrot.lane.b32.xlu1 %v4746_v61, %s5914_s1  ;;  %v2347_v8 = vmul.f32 %v4610_v6, %v4660_v60  ;;  %v2080_v6 = vmul.f32 %v4600_v54, %v4746_v61 }
 0x3cb   : > { %2383 = vrot.lane.b32.xlu0 %v2348_v21, %s5916_s0  ;;  %2631 = vrot.lane.b32.xlu1 %v2596_v59, %s5918_s3  ;;  %v2054_v21 = vld [vmem:[#allocation2 + $0x28] sm:$0xff] }
 0x3cc   : > { %v2590_v51 = vmul.f32 %v4618_v16, %v2054_v21 }
 0x3cf   : > { %2365 = vrot.lane.b32.xlu0 %v2339_v58, %s5916_s0  ;;  %2121 = vrot.lane.b32.xlu1 %v2087_v5, %s5915_s28  ;;  %v2588_v5 = vmul.f32 %v4618_v16, %v4746_v61 }
 0x3d3   : > { %2663 = vrot.lane.b32.xlu0 %v4746_v61, %s5913_s5  ;;  %2103 = vrot.lane.b32.xlu1 %v2078_v41, %s5915_s28  ;;  %v4814_v41 = vsel %vm740_vm2, %v4665_v62, %v4673_v3  ;;  %v4831_v3 = vld [vmem:[#allocation2 + $0x30] sm:$0xff] }
 0x3d4   : > { %5922 = vst [vmem:[#allocation36_spill] sm:$0xff] %v4831_v3  ;;  %v2589_v15 = vmul.f32 %v4618_v16, %v4814_v41  ;;  %v2081_v29 = vmul.f32 %v4600_v54, %v4814_v41  ;;  %v2341_v16 = vmul.f32 %v4576_v34, %v4814_v41 }
 0x3d7   : > { %2613 = vrot.lane.b32.xlu0 %v2587_v10, %s5918_s3  ;;  %2381 = vrot.lane.b32.xlu1 %v2347_v8, %s5916_s0 }
 0x3db   : > { %2629 = vrot.lane.b32.xlu0 %v2595_v33, %s5918_s3  ;;  %2363 = vrot.lane.b32.xlu1 %v2338_v56, %s5916_s0  ;;  %v2082_v33 = vmul.f32 %v4600_v54, %v2054_v21  ;;  %v2083_v54 = vmul.f32 %v4606_v1, %v4831_v3 }
 0x3df   : > { %2611 = vrot.lane.b32.xlu1 %v2586_v11, %s5918_s3  ;;  %2171 = vrot.lane.b32.xlu0 %v2054_v21, %s5908_s23 }
 0x3e3   : > { %2107 = vrot.lane.b32.xlu1 %v2080_v6, %s5915_s28  ;;  %2251 = vrot.lane.b32.xlu0 %v2054_v21, %s5910_s4 }
 0x3e7   : > { %2367 = vrot.lane.b32.xlu1 %v2340_v35, %s5916_s0  ;;  %2419 = vrot.lane.b32.xlu0 %v2054_v21, %s5912_s6  ;;  %v2342_v35 = vmul.f32 %v4576_v34, %v2054_v21 }
 0x3e9   : > { %v4801_v49 = vpop.permute.xlu0 %2179 }
 0x3eb   : > { %2667 = vrot.lane.b32.xlu1 %v2054_v21, %s5913_s5  ;;  %2499 = vrot.lane.b32.xlu0 %v2054_v21, %s5914_s1 }
 0x3ed   : > { %v4805_v59 = vpop.permute.xlu1 %2161  ;;  %v4807_v58 = vpop.permute.xlu0 %2259 }
 0x3ee   : > { %5919 = vst [vmem:[#allocation33_spill] sm:$0xff] %v4805_v59 }
 0x3ef   : > { %2615 = vrot.lane.b32.xlu1 %v2588_v5, %s5918_s3  ;;  %2665 = vrot.lane.b32.xlu0 %v4814_v41, %s5913_s5 }
 0x3f1   : > { %v4819_v10 = vpop.permute.xlu1 %2409  ;;  %v4821_v8 = vpop.permute.xlu0 %2241 }
 0x3f2   : > { %5920 = vst [vmem:[#allocation34_spill] sm:$0xff] %v4819_v10  ;;  %5921 = vst [vmem:[#allocation35_spill] sm:$0xff] %v4821_v8  ;;  %v2593_v10 = vmul.f32 %v4622_v18, %v2057_v53 }
 0x3f3   : > { %2111 = vrot.lane.b32.xlu0 %v2082_v33, %s5915_s28  ;;  %2169 = vrot.lane.b32.xlu1 %v4814_v41, %s5908_s23 }
 0x3f5   : > { %v4827_v56 = vpop.permute.xlu1 %2675  ;;  %v4829_v62 = vpop.permute.xlu0 %2427 }
 0x3f7   : > { %2173 = vrot.lane.b32.xlu0 %v4831_v3, %s5908_s23  ;;  %2249 = vrot.lane.b32.xlu1 %v4814_v41, %s5910_s4 }
 0x3f9   : > { %v4837_v11 = vpop.permute.xlu1 %2657  ;;  %v4839_v6 = vpop.permute.xlu0 %2507 }
 0x3fa   : > { %5923 = vst [vmem:[#allocation37_spill] sm:$0xff] %v4837_v11 }
 0x3fb   : > { %2371 = vrot.lane.b32.xlu0 %v2342_v35, %s5916_s0  ;;  %2417 = vrot.lane.b32.xlu1 %v4814_v41, %s5912_s6 }
 0x3fd   : > { %v4845_v5 = vpop.permute.xlu1 %2101  ;;  %v4847_v33 = vpop.permute.xlu0 %2489 }
 0x3fe   : > { %5924 = vst [vmem:[#allocation38_spill] sm:$0xff] %v4845_v5  ;;  %5925 = vst [vmem:[#allocation39_spill] sm:$0xff] %v4847_v33 }
 0x3ff   : > { %2421 = vrot.lane.b32.xlu0 %v4831_v3, %s5912_s6  ;;  %2497 = vrot.lane.b32.xlu1 %v4814_v41, %s5914_s1 }
 0x401   : > { %v4853_v0 = vpop.permute.xlu1 %2245  ;;  %v4855_v2 = vpop.permute.xlu0 %2183 }
 0x402   : > { %5926 = vst [vmem:[#allocation40_spill] sm:$0xff] %v4853_v0 }
 0x403   : > { %2669 = vrot.lane.b32.xlu0 %v4831_v3, %s5913_s5  ;;  %2253 = vrot.lane.b32.xlu1 %v4831_v3, %s5910_s4 }
 0x405   : > { %v4861_v35 = vpop.permute.xlu1 %2361  ;;  %v4863_v20 = vpop.permute.xlu0 %2119 }
 0x406   : > { %5927 = vst [vmem:[#allocation41_spill] sm:$0xff] %v4861_v35  ;;  %v2343_v35 = vmul.f32 %v4578_v39, %v4831_v3 }
 0x407   : > { %2501 = vrot.lane.b32.xlu1 %v4831_v3, %s5914_s1  ;;  %2617 = vrot.lane.b32.xlu0 %v2589_v15, %s5918_s3 }
 0x409   : > { %v4870_v14 = vpop.permute.xlu1 %2493  ;;  %v4872_v9 = vpop.permute.xlu0 %2165 }
 0x40a   : > { %5928 = vst [vmem:[#allocation42_spill] sm:$0xff] %v4870_v14  ;;  %5929 = vst [vmem:[#allocation43_spill] sm:$0xff] %v4872_v9  ;;  %v2345_v14 = vmul.f32 %v4578_v39, %v2057_v53 }
 0x40b   : > { %2619 = vrot.lane.b32.xlu1 %v2590_v51, %s5918_s3  ;;  %2177 = vrot.lane.b32.xlu0 %v2057_v53, %s5908_s23 }
 0x40d   : > { %v4877_v50 = vpop.permute.xlu1 %2679  ;;  %v4879_v11 = vpop.permute.xlu0 %2263 }
 0x40f   : > { %2109 = vrot.lane.b32.xlu1 %v2081_v29, %s5915_s28  ;;  %2425 = vrot.lane.b32.xlu0 %v2057_v53, %s5912_s6 }
 0x411   : > { %v4885_v15 = vpop.permute.xlu1 %2181  ;;  %v4887_v38 = vpop.permute.xlu0 %2431 }
 0x412   : > { %v2192_v46 = vsel %vm967_vm9, %v4885_v15, %v4855_v2 }
 0x413   : > { %2369 = vrot.lane.b32.xlu1 %v2341_v16, %s5916_s0  ;;  %2673 = vrot.lane.b32.xlu0 %v2057_v53, %s5913_s5 }
 0x415   : > { %v4893_v51 = vpop.permute.xlu1 %2163  ;;  %v4895_v21 = vpop.permute.xlu0 %2379 }
 0x416   : > { %5930 = vst [vmem:[#allocation44_spill] sm:$0xff] %v4893_v51 }
 0x417   : > { %2113 = vrot.lane.b32.xlu1 %v2083_v54, %s5915_s28  ;;  %2255 = vrot.lane.b32.xlu0 %v4685_v7, %s5910_s4  ;;  %v2085_v54 = vmul.f32 %v4606_v1, %v2057_v53 }
 0x419   : > { %v4902_v29 = vpop.permute.xlu1 %2261  ;;  %v4904_v52 = vpop.permute.xlu0 %2413 }
 0x41a   : > { %5931 = vst [vmem:[#allocation45_spill] sm:$0xff] %v4904_v52  ;;  %v2592_v52 = vmul.f32 %v4622_v18, %v4685_v7  ;;  %v2271_v2 = vsel %vm1076_vm10, %v4807_v58, %v4902_v29 }
 0x41b   : > { %2257 = vrot.lane.b32.xlu1 %v2057_v53, %s5910_s4  ;;  %2503 = vrot.lane.b32.xlu0 %v4685_v7, %s5914_s1 }
 0x41d   : > { %v4909_v34 = vpop.permute.xlu1 %2429  ;;  %v4911_v16 = vpop.permute.xlu0 %2511 }
 0x41f   : > { %2373 = vrot.lane.b32.xlu1 %v2343_v35, %s5916_s0  ;;  %2117 = vrot.lane.b32.xlu0 %v2085_v54, %s5915_s28  ;;  %v2739_v35 = vld [vmem:[%s5883_s8 + $0x10] sm:$0xff] }
 0x421   : > { %v4918_v33 = vpop.permute.xlu1 %2411  ;;  %v4920_v25 = vpop.permute.xlu0 %2627 }
 0x422   : > { %5932 = vst [vmem:[#allocation46_spill] sm:$0xff] %v4918_v33  ;;  %v2344_v33 = vmul.f32 %v4578_v39, %v4685_v7 }
 0x423   : > { %2505 = vrot.lane.b32.xlu1 %v2057_v53, %s5914_s1  ;;  %2377 = vrot.lane.b32.xlu0 %v2345_v14, %s5916_s0 }
 0x425   : > { %v4925_v45 = vpop.permute.xlu1 %2509  ;;  %v4927_v8 = vpop.permute.xlu0 %2661 }
 0x426   : > { %5933 = vst [vmem:[#allocation47_spill] sm:$0xff] %v4927_v8 }
 0x427   : > { %2625 = vrot.lane.b32.xlu0 %v2593_v10, %s5918_s3  ;;  %2175 = vrot.lane.b32.xlu1 %v4685_v7, %s5908_s23  ;;  %v2591_v10 = vmul.f32 %v4622_v18, %v4831_v3 }
 0x429   : > { %v4936_v54 = vpop.permute.xlu1 %2659  ;;  %v4938_v48 = vpop.permute.xlu0 %2243 }
 0x42a   : > { %5934 = vst [vmem:[#allocation48_spill] sm:$0xff] %v4936_v54  ;;  %5935 = vst [vmem:[#allocation49_spill] sm:$0xff] %v4938_v48 }
 0x42b   : > { %2753 = vperm.xlu0 %4017, %v2739_v35   ;;  %2423 = vrot.lane.b32.xlu1 %v4685_v7, %s5912_s6  ;;  %v2084_v35 = vmul.f32 %v4606_v1, %v4685_v7 }
 0x42d   : > { %v4942_v14 = vpop.permute.xlu1 %2167  ;;  %v4944_v53 = vpop.permute.xlu0 %2491 }
 0x42e   : > { %5936 = vst [vmem:[#allocation50_spill] sm:$0xff] %v4944_v53  ;;  %v2737_v53 = vld [vmem:[%s5883_s8] sm:$0xff] }
 0x42f   : > { %2621 = vrot.lane.b32.xlu0 %v2591_v10, %s5918_s3  ;;  %2671 = vrot.lane.b32.xlu1 %v4685_v7, %s5913_s5 }
 0x431   : > { %v4951_v8 = vpop.permute.xlu1 %2247  ;;  %v4953_v54 = vpop.permute.xlu0 %2677 }
 0x433   : > { %2115 = vrot.lane.b32.xlu1 %v2084_v35, %s5915_s28 }
 0x435   : > { %v4961_v5 = vpop.permute.xlu1 %2415  ;;  %v2124_v3 = vpop.permute.xlu0 %2123 }
 0x437   : > { %2743 = vperm.xlu1 %4018, %v2737_v53   ;;  %v2585_v53 = vmul.f32 %v4620_v17, %v4677_v4 }
 0x439   : > { %v4963_v10 = vpop.permute.xlu1 %2495  ;;  %v4965_v27 = vpop.permute.xlu0 %2105 }
 0x43a   : > { %5937 = vst [vmem:[#allocation51_spill] sm:$0xff] %v4965_v27 }
 0x43b   : > { %2375 = vrot.lane.b32.xlu1 %v2344_v33, %s5916_s0 }
 0x43d   : > { %v4970_v1 = vpop.permute.xlu1 %2631  ;;  %v2384_v35 = vpop.permute.xlu0 %2383 }
 0x43f   : > { %2623 = vrot.lane.b32.xlu1 %v2592_v52, %s5918_s3 }
 0x441   : > { %v2122_v59 = vpop.permute.xlu1 %2121  ;;  %v4975_v24 = vpop.permute.xlu0 %2365 }
 0x442   : > { %5938 = vst [vmem:[#allocation52_spill] sm:$0xff] %v4975_v24  ;;  %v2132_v47 = vsel %vm773_vm8, %v2122_v59, %v2124_v3 }
 0x443   : > { %2609 = vrot.lane.b32.xlu1 %v2585_v53, %s5918_s3 }
 0x445   : > { %v4980_v48 = vpop.permute.xlu1 %2103  ;;  %v4982_v39 = vpop.permute.xlu0 %2663 }
 0x446   : > { %5939 = vst [vmem:[#allocation53_spill] sm:$0xff] %v4980_v48 }
 0x449   : > { %v2382_v33 = vpop.permute.xlu1 %2381  ;;  %v4984_v0 = vpop.permute.xlu0 %2613 }
 0x44a   : > { %5940 = vst [vmem:[#allocation54_spill] sm:$0xff] %v4984_v0 }
 0x44d   : > { %v4986_v22 = vpop.permute.xlu1 %2363  ;;  %v4988_v18 = vpop.permute.xlu0 %2629 }
 0x44e   : > { %5941 = vst [vmem:[#allocation55_spill] sm:$0xff] %v4986_v22 }
 0x451   : > { %v4990_v52 = vpop.permute.xlu1 %2611  ;;  %v2172_v7 = vpop.permute.xlu0 %2171 }
 0x452   : > { %5942 = vst [vmem:[#allocation56_spill] sm:$0xff] %v4990_v52 }
 0x455   : > { %v4992_v24 = vpop.permute.xlu1 %2107  ;;  %v4994_v27 = vpop.permute.xlu0 %2251 }
 0x459   : > { %v4996_v17 = vpop.permute.xlu1 %2367  ;;  %v4998_v53 = vpop.permute.xlu0 %2419 }
 0x45a   : > { %5943 = vst [vmem:[#allocation57_spill] sm:$0xff] %v4996_v17  ;;  %v2040_v17 = vmul.f32 %v4624_v19, %v2012_v31 }
 0x45c   : > { %v2148_v55 = vadd.f32 %v2132_v47, %v2040_v17  ;;  %v2439_v47 = vsel %vm1288_vm13, %v4829_v62, %v4909_v34  ;;  %v2391_v62 = vsel %vm1185_vm14, %v4895_v21, %v2382_v33 }
 0x45d   : > { %v5000_v4 = vpop.permute.xlu1 %2667  ;;  %v5002_v48 = vpop.permute.xlu0 %2499 }
 0x45e   : > { %5944 = vst [vmem:[#allocation58_spill] sm:$0xff] %v5000_v4  ;;  %v2208_v4 = vsel %vm4321_vm12, %v2192_v46, 0.0 }
 0x45f   : > { %v2232_v31 = vmul.f32 %v4582_v36, %v2208_v4 }
 0x461   : > { %v5004_v0 = vpop.permute.xlu1 %2615  ;;  %v5006_v22 = vpop.permute.xlu0 %2665 }
 0x462   : > { %5945 = vst [vmem:[#allocation59_spill] sm:$0xff] %v5004_v0  ;;  %v2191_v0 = vsel %vm967_vm9, %v4801_v49, %v4885_v15 }
 0x463   : > { %v2207_v49 = vsel %vm4315_vm11, %v2191_v0, 0.0  ;;  %v2287_v0 = vsel %vm4236_vm6, %v2271_v2, 0.0 }
 0x464   : > { %v2231_v19 = vmul.f32 %v4582_v36, %v2207_v49  ;;  %v2440_v36 = vsel %vm1288_vm13, %v4909_v34, %v4887_v38  ;;  %v2311_v4 = vmul.f32 %v4634_v26, %v2287_v0  ;;  %v2007_v38 = vsel %vm4236_vm6, %v4746_v61, 0.0 }
 0x465   : > { %v2170_v51 = vpop.permute.xlu1 %2169  ;;  %v5008_v9 = vpop.permute.xlu0 %2111  ;;  %v5096_v49 = vsel %vm1609_vm1, %v4827_v56, %v4953_v54 }
 0x466   : > { %v2187_v61 = vsel %vm967_vm9, %v4942_v14, %v2170_v51 }
 0x469   : > { %v2250_v52 = vpop.permute.xlu1 %2249  ;;  %v5010_v44 = vpop.permute.xlu0 %2173 }
 0x46a   : > { %5946 = vst [vmem:[#allocation60_spill] sm:$0xff] %v5010_v44  ;;  %v2131_v44 = vsel %vm773_vm8, %v4863_v20, %v2122_v59  ;;  %v2272_v20 = vsel %vm1076_vm10, %v4902_v29, %v4879_v11  ;;  %v2519_v11 = vsel %vm1397_vm15, %v4839_v6, %v4925_v45  ;;  %v2520_v29 = vsel %vm1397_vm15, %v4925_v45, %v4911_v16 }
 0x46b   : > { %v2147_v59 = vadd.f32 %v2131_v44, %v2039_v63  ;;  %v2288_v46 = vsel %vm4230_vm4, %v2272_v20, 0.0  ;;  %v2392_v63 = vsel %vm1185_vm14, %v2382_v33, %v2384_v35  ;;  %v2455_v6 = vsel %vm4315_vm11, %v2439_v47, 0.0 }
 0x46c   : > { %v2312_v44 = vmul.f32 %v4634_v26, %v2288_v46  ;;  %v2008_v26 = vsel %vm4230_vm4, %v4814_v41, 0.0  ;;  %v2456_v45 = vsel %vm4321_vm12, %v2440_v36, 0.0  ;;  %v2535_v21 = vsel %vm4236_vm6, %v2519_v11, 0.0 }
 0x46d   : > { %v5012_v57 = vpop.permute.xlu1 %2417  ;;  %v5029_v28 = vpop.permute.xlu0 %2371  ;;  %v2239_v58 = vadd.f32 %v2231_v19, %v2147_v59  ;;  %v2536_v35 = vsel %vm4230_vm4, %v2520_v29, 0.0  ;;  %v2188_v33 = vsel %vm967_vm9, %v2170_v51, %v2172_v7  ;;  %v2267_v14 = vsel %vm1076_vm10, %v4951_v8, %v2250_v52 }
 0x46e   : > { %5947 = vst [vmem:[#allocation61_spill] sm:$0xff] %v5029_v28  ;;  %v2240_v28 = vadd.f32 %v2232_v31, %v2148_v55  ;;  %v2268_v7 = vsel %vm1076_vm10, %v2250_v52, %v4994_v27  ;;  %v2035_v51 = vmul.f32 %v4648_v32, %v2007_v38  ;;  %v2036_v56 = vmul.f32 %v4648_v32, %v2008_v26 }
 0x46f   : > { %v2319_v34 = vadd.f32 %v2311_v4, %v2239_v58  ;;  %v2479_v55 = vmul.f32 %v4588_v40, %v2455_v6  ;;  %v2480_v19 = vmul.f32 %v4588_v40, %v2456_v45  ;;  %v2559_v31 = vmul.f32 %v4642_v30, %v2535_v21 }
 0x470   : > { %v2320_v16 = vadd.f32 %v2312_v44, %v2240_v28  ;;  %v5101_v28 = vsel %vm1609_vm1, %v4953_v54, %v4877_v50  ;;  %v2203_v50 = vsel %vm4315_vm11, %v2187_v61, 0.0  ;;  %v2204_v54 = vsel %vm4321_vm12, %v2188_v33, 0.0  ;;  %v5949_v61 = vld [vmem:[#allocation57_spill] sm:$0xff] }
 0x471   : > { %v5033_v60 = vpop.permute.xlu1 %2497  ;;  %v5053_v15 = vpop.permute.xlu0 %2421  ;;  %v2407_v2 = vadd.f32 %v2391_v62, %v2319_v34  ;;  %v2560_v8 = vmul.f32 %v4642_v30, %v2536_v35  ;;  %v2703_v27 = vsel %vm4315_vm11, %v5096_v49, 0.0  ;;  %v2704_v32 = vsel %vm4321_vm12, %v5101_v28, 0.0  ;;  %v5951_v28 = vld [vmem:[#allocation22_spill] sm:$0xff] }
 0x472   : > { %v2408_v20 = vadd.f32 %v2392_v63, %v2320_v16  ;;  %v2283_v0 = vsel %vm4236_vm6, %v2267_v14, 0.0  ;;  %v2284_v46 = vsel %vm4230_vm4, %v2268_v7, 0.0  ;;  %v2227_v47 = vmul.f32 %v4628_v23, %v2203_v50 }
 0x473   : > { %v2487_v52 = vadd.f32 %v2479_v55, %v2407_v2  ;;  %v2228_v30 = vmul.f32 %v4628_v23, %v2204_v54  ;;  %v2435_v11 = vsel %vm1288_vm13, %v4961_v5, %v5012_v57  ;;  %v2436_v29 = vsel %vm1288_vm13, %v5012_v57, %v4998_v53  ;;  %v5952_v55 = vld [vmem:[#allocation14_spill] sm:$0xff] }
 0x474   : > { %v2488_v40 = vadd.f32 %v2480_v19, %v2408_v20  ;;  %v2639_v23 = vsel %vm1506_vm0, %v4920_v25, %v4988_v18  ;;  %v2308_v38 = vmul.f32 %v4584_v37, %v2284_v46  ;;  %v2515_v5 = vsel %vm1397_vm15, %v4963_v10, %v5033_v60  ;;  %v5948_v10 = vld [vmem:[#allocation58_spill] sm:$0xff] }
 0x475   : > { %v5047_v3 = vpop.permute.xlu1 %2253  ;;  %v5091_v41 = vpop.permute.xlu0 %2669  ;;  %v2516_v57 = vsel %vm1397_vm15, %v5033_v60, %v5002_v48  ;;  %v2567_v25 = vadd.f32 %v2559_v31, %v2487_v52  ;;  %v2684_v34 = vsel %vm1609_vm1, %v5006_v22, %v5948_v10  ;;  %v2531_v16 = vsel %vm4236_vm6, %v2515_v5, 0.0  ;;  %v5950_v49 = vld [vmem:[#allocation61_spill] sm:$0xff] }
 0x476   : > { %v2568_v45 = vadd.f32 %v2560_v8, %v2488_v40  ;;  %v2532_v21 = vsel %vm4230_vm4, %v2516_v57, 0.0  ;;  %v2555_v19 = vmul.f32 %v5952_v55, %v2531_v16  ;;  %v5953_v8 = vld [vmem:[#allocation16_spill] sm:$0xff]  ;;  %v2700_v46 = vsel %vm4321_vm12, %v2684_v34, 0.0 }
 0x477   : > { %v2556_v50 = vmul.f32 %v5952_v55, %v2532_v21  ;;  %v2727_v52 = vmul.f32 %v5953_v8, %v2703_v27  ;;  %v2728_v40 = vmul.f32 %v5953_v8, %v2704_v32  ;;  %v5955_v32 = vld [vmem:[#allocation25_spill] sm:$0xff]  ;;  %v5959_v21 = vld [vmem:[#allocation43_spill] sm:$0xff]  ;;  %v5967_v8 = vld [vmem:[#allocation30_spill] sm:$0xff] }
 0x479   : > { %v5069_v17 = vpop.permute.xlu1 %2501  ;;  %v2618_v36 = vpop.permute.xlu0 %2617 }
 0x47d   : > { %v5103_v59 = vpop.permute.xlu1 %2619  ;;  %v5169_v35 = vpop.permute.xlu0 %2177 }
 0x47e   : > { %v2636_v27 = vsel %vm1506_vm0, %v2618_v36, %v5103_v59 }
 0x481   : > { %v2110_v58 = vpop.permute.xlu1 %2109 }
 0x482   : > { %v2127_v4 = vsel %vm773_vm8, %v4992_v24, %v2110_v58  ;;  %v2128_v44 = vsel %vm773_vm8, %v2110_v58, %v5008_v9  ;;  %v2640_v24 = vsel %vm1506_vm0, %v4988_v18, %v4970_v1  ;;  %v2307_v9 = vmul.f32 %v4584_v37, %v2283_v0 }
 0x483   : > { %v2143_v62 = vadd.f32 %v2127_v4, %v2035_v51  ;;  %v2144_v63 = vadd.f32 %v2128_v44, %v2036_v56  ;;  %v2451_v1 = vsel %vm4315_vm11, %v2435_v11, 0.0  ;;  %v2452_v18 = vsel %vm4321_vm12, %v2436_v29, 0.0  ;;  %v5954_v11 = vld [vmem:[#allocation59_spill] sm:$0xff] }
 0x484   : > { %v2683_v37 = vsel %vm1609_vm1, %v4982_v39, %v5006_v22  ;;  %v2475_v2 = vmul.f32 %v5951_v28, %v2451_v1  ;;  %v2476_v22 = vmul.f32 %v5951_v28, %v2452_v18  ;;  %v2655_v51 = vadd.f32 %v2639_v23, %v2567_v25 }
 0x485   : > { %v2235_v53 = vadd.f32 %v2227_v47, %v2143_v62  ;;  %v2236_v26 = vadd.f32 %v2228_v30, %v2144_v63  ;;  %v2370_v6 = vpop.permute.xlu1 %2369  ;;  %v2656_v56 = vadd.f32 %v2640_v24, %v2568_v45  ;;  %v2699_v0 = vsel %vm4315_vm11, %v2683_v37, 0.0  ;;  %v5193_v62 = vpop.permute.xlu0 %2425 }
 0x486   : > { %v2387_v33 = vsel %vm1185_vm14, %v5949_v61, %v2370_v6  ;;  %v2388_v39 = vsel %vm1185_vm14, %v2370_v6, %v5950_v49  ;;  %v2735_v4 = vadd.f32 %v2727_v52, %v2655_v51  ;;  %v2635_v29 = vsel %vm1506_vm0, %v5954_v11, %v2618_v36  ;;  %v5957_v6 = vld [vmem:[#allocation29_spill] sm:$0xff]  ;;  %v5960_v61 = vld [vmem:[#allocation44_spill] sm:$0xff]  ;;  %v5961_v49 = vld [vmem:[#allocation51_spill] sm:$0xff] }
 0x487   : > { %v2315_v48 = vadd.f32 %v2307_v9, %v2235_v53  ;;  %v2316_v60 = vadd.f32 %v2308_v38, %v2236_v26  ;;  %v2736_v44 = vadd.f32 %v2728_v40, %v2656_v56  ;;  %v2723_v63 = vmul.f32 %v5955_v32, %v2699_v0  ;;  %v5956_v53 = vld [vmem:[#allocation28_spill] sm:$0xff]  ;;  %v5965_v56 = vld [vmem:[#allocation49_spill] sm:$0xff]  ;;  %v5968_v0 = vld [vmem:[#allocation31_spill] sm:$0xff] }
 0x488   : > { %v2724_v23 = vmul.f32 %v5955_v32, %v2700_v46  ;;  %v2767_v26 = vadd.f32 %v5956_v53, %v2735_v4  ;;  %v5964_v51 = vld [vmem:[#allocation40_spill] sm:$0xff]  ;;  %v2005_v52 = vsel %vm4236_vm6, %v5967_v8, 0.0  ;;  %v2010_v46 = vsel %vm4230_vm4, %v5968_v0, 0.0  ;;  %v5970_v11 = vld [vmem:[#allocation45_spill] sm:$0xff] }
 0x489   : > { %v2403_v20 = vadd.f32 %v2387_v33, %v2315_v48  ;;  %v2404_v14 = vadd.f32 %v2388_v39, %v2316_v60  ;;  %v5177_v7 = vpop.permute.xlu1 %2113  ;;  %v2768_v45 = vadd.f32 %v5956_v53, %v2736_v44  ;;  %v5203_v36 = vpop.permute.xlu0 %2673  ;;  %v5958_v48 = vld [vmem:[#allocation32_spill] sm:$0xff]  ;;  %v2186_v33 = vsel %vm967_vm9, %v5960_v61, %v5959_v21  ;;  %v5962_v39 = vld [vmem:[#allocation53_spill] sm:$0xff] }
 0x48a   : > { %v2006_v60 = vsel %vm4230_vm4, %v5958_v48, 0.0  ;;  %v2126_v28 = vsel %vm773_vm8, %v5962_v39, %v5961_v49  ;;  %v2266_v55 = vsel %vm1076_vm10, %v5965_v56, %v5964_v51  ;;  %v5977_v48 = vld [vmem:[#allocation35_spill] sm:$0xff]  ;;  %v5978_v21 = vld [vmem:[#allocation52_spill] sm:$0xff]  ;;  %v5981_v0 = vld [vmem:[#allocation13_spill] sm:$0xff] }
 0x48b   : > { %v2483_v54 = vadd.f32 %v2475_v2, %v2403_v20  ;;  %v2484_v31 = vadd.f32 %v2476_v22, %v2404_v14  ;;  %v5963_v2 = vld [vmem:[#allocation18_spill] sm:$0xff]  ;;  %v2202_v14 = vsel %vm4321_vm12, %v2186_v33, 0.0  ;;  %v2282_v40 = vsel %vm4230_vm4, %v2266_v55, 0.0 }
 0x48c   : > { %v2034_v22 = vmul.f32 %v5963_v2, %v2006_v60  ;;  %v2033_v32 = vmul.f32 %v5963_v2, %v2005_v52  ;;  %v2265_v60 = vsel %vm1076_vm10, %v5977_v48, %v5965_v56 }
 0x48d   : > { %v2563_v58 = vadd.f32 %v2555_v19, %v2483_v54  ;;  %v2564_v47 = vadd.f32 %v2556_v50, %v2484_v31  ;;  %v5187_v30 = vpop.permute.xlu1 %2257  ;;  %v2256_v34 = vpop.permute.xlu0 %2255  ;;  %v5966_v54 = vld [vmem:[#allocation19_spill] sm:$0xff]  ;;  %v2281_v8 = vsel %vm4236_vm6, %v2265_v60, 0.0 }
 0x48e   : > { %v2142_v19 = vadd.f32 %v2126_v28, %v2034_v22  ;;  %v2226_v31 = vmul.f32 %v5966_v54, %v2202_v14  ;;  %v5980_v28 = vld [vmem:[#allocation60_spill] sm:$0xff] }
 0x48f   : > { %v2651_v24 = vadd.f32 %v2635_v29, %v2563_v58  ;;  %v2652_v9 = vadd.f32 %v2636_v27, %v2564_v47  ;;  %v5969_v58 = vld [vmem:[#allocation33_spill] sm:$0xff]  ;;  %v5971_v29 = vld [vmem:[#allocation46_spill] sm:$0xff] }
 0x490   : > { %v2185_v47 = vsel %vm967_vm9, %v5969_v58, %v5960_v61  ;;  %v2234_v4 = vadd.f32 %v2226_v31, %v2142_v19  ;;  %v2434_v27 = vsel %vm1288_vm13, %v5971_v29, %v5970_v11  ;;  %v5979_v61 = vld [vmem:[#allocation55_spill] sm:$0xff] }
 0x491   : > { %v5197_v38 = vpop.permute.xlu1 %2373  ;;  %v2732_v5 = vadd.f32 %v2724_v23, %v2652_v9  ;;  %v2731_v57 = vadd.f32 %v2723_v63, %v2651_v24  ;;  %v5223_v20 = vpop.permute.xlu0 %2503  ;;  %v5972_v63 = vld [vmem:[#allocation21_spill] sm:$0xff]  ;;  %v5973_v24 = vld [vmem:[#allocation38_spill] sm:$0xff]  ;;  %v2386_v33 = vsel %vm1185_vm14, %v5979_v61, %v5978_v21  ;;  %v2450_v49 = vsel %vm4321_vm12, %v2434_v27, 0.0  ;;  %v5987_v21 = vld [vmem:[#allocation24_spill] sm:$0xff] }
 0x492   : > { %v2306_v23 = vmul.f32 %v5972_v63, %v2282_v40  ;;  %v2125_v9 = vsel %vm773_vm8, %v5973_v24, %v5962_v39  ;;  %v2305_v27 = vmul.f32 %v5972_v63, %v2281_v8 }
 0x493   : > { %v2764_v25 = vadd.f32 %v5957_v6, %v2732_v5  ;;  %v2763_v59 = vadd.f32 %v5957_v6, %v2731_v57  ;;  %v5974_v5 = vld [vmem:[#allocation36_spill] sm:$0xff]  ;;  %v2141_v14 = vadd.f32 %v2125_v9, %v2033_v32 }
 0x494   : > { %v2009_v57 = vsel %vm4236_vm6, %v5974_v5, 0.0  ;;  %v2314_v39 = vadd.f32 %v2306_v23, %v2234_v4  ;;  %v2270_v4 = vsel %vm1076_vm10, %v2256_v34, %v5187_v30  ;;  %v5984_v9 = vld [vmem:[#allocation20_spill] sm:$0xff] }
 0x495   : > { %v5205_v1 = vpop.permute.xlu1 %2505  ;;  %v5207_v18 = vmul.f32 %v2768_v45, %v2764_v25  ;;  %v5209_v37 = vmul.f32 %v2767_v26, %v2763_v59  ;;  %v2118_v44 = vpop.permute.xlu0 %2117  ;;  %v5975_v26 = vld [vmem:[#allocation27_spill] sm:$0xff]  ;;  %v2201_v25 = vsel %vm4315_vm11, %v2185_v47, 0.0  ;;  %v5976_v45 = vld [vmem:[#allocation34_spill] sm:$0xff]  ;;  %v2269_v47 = vsel %vm1076_vm10, %v5047_v3, %v2256_v34 }
 0x496   : > { %v2038_v6 = vmul.f32 %v5975_v26, %v2010_v46  ;;  %v2433_v59 = vsel %vm1288_vm13, %v5976_v45, %v5971_v29  ;;  %v2037_v51 = vmul.f32 %v5975_v26, %v2009_v57  ;;  %v2225_v19 = vmul.f32 %v5966_v54, %v2201_v25  ;;  %v5983_v46 = vld [vmem:[#allocation50_spill] sm:$0xff] }
 0x497   : > { %2809 = vmatprep.subr.mxu0 %v5207_v18  ;;  %v2449_v31 = vsel %vm4315_vm11, %v2433_v59, 0.0  ;;  %v2402_v52 = vadd.f32 %v2386_v33, %v2314_v39  ;;  %v2285_v3 = vsel %vm4236_vm6, %v2269_v47, 0.0  ;;  %v2286_v30 = vsel %vm4230_vm4, %v2270_v4, 0.0 }
 0x498   : > { %2810 = vmatpush1.msra.mxu0 %v5209_v37  ;;  %v2473_v29 = vmul.f32 %v5981_v0, %v2449_v31  ;;  %v2233_v32 = vadd.f32 %v2225_v19, %v2141_v14  ;;  %v5990_v14 = vld [vmem:[#allocation48_spill] sm:$0xff] }
 0x499   : > { %v2176_v10 = vpop.permute.xlu1 %2175  ;;  %v2378_v40 = vpop.permute.xlu0 %2377 }
 0x49a   : > { %v2189_v2 = vsel %vm967_vm9, %v5980_v28, %v2176_v10  ;;  %v2190_v22 = vsel %vm967_vm9, %v2176_v10, %v5169_v35  ;;  %v2474_v35 = vmul.f32 %v5981_v0, %v2450_v49  ;;  %v5982_v10 = vld [vmem:[#allocation42_spill] sm:$0xff]  ;;  %v2313_v49 = vadd.f32 %v2305_v27, %v2233_v32  ;;  %v5991_v0 = vld [vmem:[#allocation23_spill] sm:$0xff] }
 0x49b   : > { %v2514_v58 = vsel %vm1397_vm15, %v5983_v46, %v5982_v10  ;;  %v2206_v54 = vsel %vm4321_vm12, %v2190_v22, 0.0  ;;  %v5989_v22 = vld [vmem:[#allocation47_spill] sm:$0xff] }
 0x49c   : > { %v2530_v23 = vsel %vm4230_vm4, %v2514_v58, 0.0  ;;  %v2482_v24 = vadd.f32 %v2474_v35, %v2402_v52  ;;  %v2230_v57 = vmul.f32 %v5984_v9, %v2206_v54  ;;  %v5993_v32 = vld [vmem:[#allocation15_spill] sm:$0xff] }
 0x49d   : > { %v2424_v16 = vpop.permute.xlu1 %2423  ;;  %v2626_v45 = vpop.permute.xlu0 %2625  ;;  %v2554_v33 = vmul.f32 %v5987_v21, %v2530_v23 }
 0x49e   : > { %v2437_v34 = vsel %vm1288_vm13, %v5053_v15, %v2424_v16  ;;  %v2438_v63 = vsel %vm1288_vm13, %v2424_v16, %v5193_v62  ;;  %v2517_v15 = vsel %vm1397_vm15, %v5069_v17, %v5223_v20  ;;  %v2518_v62 = vsel %vm1397_vm15, %v5223_v20, %v5205_v1  ;;  %v5988_v16 = vld [vmem:[#allocation12_spill] sm:$0xff] }
 0x49f   : > { %v2309_v39 = vmul.f32 %v5988_v16, %v2285_v3  ;;  %v2453_v28 = vsel %vm4315_vm11, %v2437_v34, 0.0  ;;  %v2533_v1 = vsel %vm4236_vm6, %v2517_v15, 0.0  ;;  %v2534_v20 = vsel %vm4230_vm4, %v2518_v62, 0.0 }
 0x4a0   : > { %v2477_v35 = vmul.f32 %v5991_v0, %v2453_v28  ;;  %v2558_v23 = vmul.f32 %v5993_v32, %v2534_v20 }
 0x4a1   : > { %v5230_v50 = vpop.permute.xlu1 %2671 }
 0x4a2   : > { %v2686_v54 = vsel %vm1609_vm1, %v5230_v50, %v5203_v36  ;;  %v5994_v36 = vld [vmem:[#allocation54_spill] sm:$0xff] }
 0x4a5   : > { %v2116_v53 = vpop.permute.xlu1 %2115 }
 0x4a6   : > { %v2129_v56 = vsel %vm773_vm8, %v5177_v7, %v2116_v53  ;;  %v2130_v55 = vsel %vm773_vm8, %v2116_v53, %v2118_v44  ;;  %v2205_v7 = vsel %vm4315_vm11, %v2189_v2, 0.0  ;;  %v5985_v53 = vld [vmem:[#allocation39_spill] sm:$0xff]  ;;  %v2454_v2 = vsel %vm4321_vm12, %v2438_v63, 0.0  ;;  %v2754_v19 = vpop.permute.xlu0 %2753 }
 0x4a7   : > { %v2145_v44 = vadd.f32 %v2129_v56, %v2037_v51  ;;  %v2146_v11 = vadd.f32 %v2130_v55, %v2038_v6  ;;  %v2229_v5 = vmul.f32 %v5984_v9, %v2205_v7  ;;  %v2513_v26 = vsel %vm1397_vm15, %v5985_v53, %v5983_v46  ;;  %v5986_v6 = vld [vmem:[#allocation41_spill] sm:$0xff] }
 0x4a8   : > { %v2385_v25 = vsel %vm1185_vm14, %v5986_v6, %v5979_v61  ;;  %v2310_v61 = vmul.f32 %v5988_v16, %v2286_v30  ;;  %v2682_v51 = vsel %vm1609_vm1, %v5990_v14, %v5989_v22  ;;  %v2529_v17 = vsel %vm4236_vm6, %v2513_v26, 0.0  ;;  %v5996_v6 = vld [vmem:[#allocation17_spill] sm:$0xff] }
 0x4a9   : > { %v2237_v59 = vadd.f32 %v2229_v5, %v2145_v44  ;;  %v2238_v48 = vadd.f32 %v2230_v57, %v2146_v11  ;;  %v2401_v56 = vadd.f32 %v2385_v25, %v2313_v49  ;;  %v2562_v55 = vadd.f32 %v2554_v33, %v2482_v24  ;;  %v5992_v44 = vld [vmem:[#allocation37_spill] sm:$0xff]  ;;  %v5997_v33 = vld [vmem:[#allocation26_spill] sm:$0xff] }
 0x4aa   : > { %v2478_v10 = vmul.f32 %v5991_v0, %v2454_v2  ;;  %v2685_v7 = vsel %vm1609_vm1, %v5091_v41, %v5230_v50  ;;  %v2681_v11 = vsel %vm1609_vm1, %v5992_v44, %v5990_v14  ;;  %v2698_v27 = vsel %vm4321_vm12, %v2682_v51, 0.0  ;;  %v5995_v50 = vld [vmem:[#allocation56_spill] sm:$0xff]  ;;  %v2622_v63 = vpop.permute.xlu0 %2621 }
 0x4ab   : > { %v2317_v8 = vadd.f32 %v2309_v39, %v2237_v59  ;;  %v2318_v52 = vadd.f32 %v2310_v61, %v2238_v48  ;;  %v2553_v5 = vmul.f32 %v5987_v21, %v2529_v17  ;;  %v2634_v57 = vsel %vm1506_vm0, %v5995_v50, %v5994_v36  ;;  %v2868_v44 = vld [vmem:[%s6000_s10 + $0x8] sm:$0xff] }
 0x4ac   : > { %v2701_v3 = vsel %vm4315_vm11, %v2685_v7, 0.0  ;;  %v2702_v30 = vsel %vm4321_vm12, %v2686_v54, 0.0  ;;  %v2650_v34 = vadd.f32 %v2634_v57, %v2562_v55  ;;  %v2722_v25 = vmul.f32 %v5996_v6, %v2698_v27  ;;  %v2867_v7 = vld [vmem:[%s6000_s10] sm:$0xff]  ;;  %v3091_v36 = vld [vmem:[%s5771_s17 + $0x8] sm:$0xff]  ;;  %s6009_s10 = sld [smem:[#allocation73_spill]] }
 0x4ad   : > { %v2725_v49 = vmul.f32 %v5997_v33, %v2701_v3  ;;  %v2726_v15 = vmul.f32 %v5997_v33, %v2702_v30  ;;  %v3090_v57 = vld [vmem:[%s5771_s17] sm:$0xff]  ;;  %v3093_v3 = vld [vmem:[%s5771_s17 + $0x18] sm:$0xff]  ;;  %v3222_v30 = vld [vmem:[%s5773_s19 + $0x8] sm:$0xff] }
 0x4ae   : > { %v2730_v2 = vadd.f32 %v2722_v25, %v2650_v34  ;;  %v3317_v34 = vld [vmem:[%s5774_s20 + $0x8] sm:$0xff]  ;;  %v2885_v33 = vld [vmem:[%s5765_s11] sm:$0xff] }
 0x4b2   : > { %v5314_v60 = vpop.permute.xlu1 %2743 }
 0x4b3   : > { %v2762_v17 = vadd.f32 %v5314_v60, %v2730_v2 }
 0x4b6   : > { %v2376_v31 = vpop.permute.xlu1 %2375 }
 0x4b7   : > { %v2389_v46 = vsel %vm1185_vm14, %v5197_v38, %v2376_v31  ;;  %v2390_v58 = vsel %vm1185_vm14, %v2376_v31, %v2378_v40  ;;  %v2481_v38 = vadd.f32 %v2473_v29, %v2401_v56  ;;  %v2557_v40 = vmul.f32 %v5993_v32, %v2533_v1 }
 0x4b8   : > { %v2405_v47 = vadd.f32 %v2389_v46, %v2317_v8  ;;  %v2406_v4 = vadd.f32 %v2390_v58, %v2318_v52  ;;  %v2697_v29 = vsel %vm4315_vm11, %v2681_v11, 0.0  ;;  %v2773_v8 = vld [vmem:[%s5998_s9] sm:$0xff]  ;;  %v5999_v52 = vmov 0.0  }
 0x4b9   : > { %v2561_v21 = vadd.f32 %v2553_v5, %v2481_v38  ;;  %v2721_v61 = vmul.f32 %v5996_v6, %v2697_v29  ;;  %v2887_v38 = vld [vmem:[%s5766_s12] sm:$0xff]  ;;  %v3092_v29 = vld [vmem:[%s5771_s17 + $0x10] sm:$0xff] }
 0x4ba   : > { %v2485_v24 = vadd.f32 %v2477_v35, %v2405_v47  ;;  %v2486_v41 = vadd.f32 %v2478_v10, %v2406_v4  ;;  %v2624_v9 = vpop.permute.xlu1 %2623  ;;  %v3002_v5 = vld [vmem:[%s5768_s14] sm:$0xff] }
 0x4bb   : > { %v2637_v59 = vsel %vm1506_vm0, %v2622_v63, %v2624_v9  ;;  %v2638_v48 = vsel %vm1506_vm0, %v2624_v9, %v2626_v45  ;;  %v3005_v9 = vld [vmem:[%s5769_s15 + $0x8] sm:$0xff]  ;;  %v3221_v63 = vld [vmem:[%s5773_s19] sm:$0xff] }
 0x4bc   : > { %v2565_v53 = vadd.f32 %v2557_v40, %v2485_v24  ;;  %v2566_v26 = vadd.f32 %v2558_v23, %v2486_v41  ;;  %v2982_v40 = vld [vmem:[%s5767_s13] sm:$0xff]  ;;  %v2888_v23 = vld [vmem:[%s5766_s12 + $0x8] sm:$0xff] }
 0x4bd   : > { %v3003_v24 = vld [vmem:[%s5768_s14 + $0x8] sm:$0xff] }
 0x4be   : > { %v2653_v62 = vadd.f32 %v2637_v59, %v2565_v53  ;;  %v2654_v16 = vadd.f32 %v2638_v48, %v2566_v26  ;;  %v2610_v39 = vpop.permute.xlu1 %2609  ;;  %v2983_v41 = vld [vmem:[%s5767_s13 + $0x8] sm:$0xff]  ;;  %v3316_v53 = vld [vmem:[%s5774_s20] sm:$0xff] }
 0x4bf   : > { %v2633_v28 = vsel %vm1506_vm0, %v2610_v39, %v5995_v50  ;;  %v3004_v50 = vld [vmem:[%s5769_s15] sm:$0xff] }
 0x4c0   : > { %v2733_v22 = vadd.f32 %v2725_v49, %v2653_v62  ;;  %v2734_v14 = vadd.f32 %v2726_v15, %v2654_v16  ;;  %v2649_v51 = vadd.f32 %v2633_v28, %v2561_v21 }
 0x4c2   : > { %v2729_v45 = vadd.f32 %v2721_v61, %v2649_v51  ;;  %v2766_v56 = vadd.f32 %v2754_v19, %v2734_v14  ;;  %v2765_v55 = vadd.f32 %v2754_v19, %v2733_v22 }
 0x4c4   : > { %v2761_v1 = vadd.f32 %v5314_v60, %v2729_v45  ;;  %v5376_v20 = vmul.f32 %v2766_v56, %v2762_v17  ;;  %v2774_v60 = vld [vmem:[%s5998_s9 + $0x8] sm:$0xff] }
 0x4c5   : > { %v6001_v45 = vld [vmem:[#allocation8_spill] sm:$0xff] }
 0x4c6   : > { %2811 = vmatprep.subr.mxu0 %v5376_v20  ;;  %v5379_v31 = vmul.f32 %v2765_v55, %v2761_v1 }
 0x4c8   : > { %2812 = vmatpush1.msra.mxu0 %v5379_v31 }
 0x4c9   : > { %3928 = vmatmul.mubr.msk.f32.vlgmr.msra.gmra.mxu0 %vm1838_vm3, %v2773_v8  ;;  %v6003_v8 = vld [vmem:[#allocation10_spill] sm:$0xff] }
 0x4ca   : > { %2851 = vmatprep.mubr.f32.mxu0 %v5999_v52 }
 0x4cd   : > { %3929 = vmatmul.mubr.msk.f32.gmra.mxu0 %vm1838_vm3, %v2774_v60 }
 0x4ce   : > { %2969 = vmatprep.mubr.f32.mxu0 %v5999_v52 }
 0x589   : > { %v2847_v19 = vpop.f32.mrf.mxu0 }
 0x58b   : > { %v2849_v0 = vpop.f32.mrf.mxu0 }
 0x58c   : > { %v2858_v35 = vadd.f32 %v2849_v0, %v2847_v19 }
 0x58d   : > { %v2853_v10 = vpop.f32.mrf.mxu0 }
 0x58e   : > { %2859 = vadd.xlane.f32.xlu0 %v2858_v35 }
 0x58f   : > { %v2855_v46 = vpop.f32.mrf.mxu0 }
 0x590   : > { %v2861_v58 = vadd.f32 %v2855_v46, %v2853_v10  ;;  %v6004_v46 = vld [vmem:[#allocation11_spill] sm:$0xff] }
 0x592   : > { %2862 = vadd.xlane.f32.xlu1 %v2861_v58 }
 0x617   : > { %v2860_v54 = vpop.xlane.xlu0 %2859 }
 0x618   : > { %v2865_v47 = vmul.f32 0.00390625, %v2860_v54 }
 0x61a   : > { %v2869_v4 = vadd.f32 %v2867_v7, %v2865_v47 }
 0x61b   : > { %v2863_v11 = vpop.xlane.xlu1 %2862 }
 0x61c   : > { %v2866_v27 = vmul.f32 0.00390625, %v2863_v11  ;;  %2873 = vperm.xlu1 %4018, %v2869_v4  }
 0x61e   : > { %v2870_v32 = vadd.f32 %v2868_v44, %v2866_v27 }
 0x620   : > { %2891 = vperm.xlu1 %4018, %v2887_v38   ;;  %2878 = vperm.xlu0 %4017, %v2870_v32  }
 0x624   : > { %2986 = vperm.xlu1 %4018, %v2982_v40   ;;  %2896 = vperm.xlu0 %4017, %v2888_v23  }
 0x628   : > { %3065 = vperm.xlu1 %4018, %v3003_v24   ;;  %2991 = vperm.xlu0 %4017, %v2983_v41  }
 0x62c   : > { %3079 = vperm.xlu1 %4018, %v3005_v9   ;;  %3060 = vperm.xlu0 %4017, %v3002_v5  }
 0x630   : > { %3101 = vperm.xlu1 %4018, %v3091_v36   ;;  %3074 = vperm.xlu0 %4017, %v3004_v50  }
 0x634   : > { %3096 = vperm.xlu1 %4018, %v3090_v57   ;;  %3111 = vperm.xlu0 %4017, %v3093_v3  }
 0x638   : > { %3230 = vperm.xlu1 %4018, %v3222_v30   ;;  %3106 = vperm.xlu0 %4017, %v3092_v29  }
 0x63c   : > { %3325 = vperm.xlu1 %4018, %v3317_v34   ;;  %3225 = vperm.xlu0 %4017, %v3221_v63  }
 0x640   : > { %3320 = vperm.xlu0 %4017, %v3316_v53  }
 0x697   : > { %v2874_v26 = vpop.permute.xlu1 %2873 }
 0x698   : > { %v2882_v48 = vmul.f32 %v2874_v26, %v5376_v20  ;;  %v2881_v21 = vmul.f32 %v2874_v26, %v5379_v31  ;;  %v6002_v20 = vld [vmem:[#allocation9_spill] sm:$0xff] }
 0x69b   : > { %v2879_v6 = vpop.permute.xlu0 %2878 }
 0x69c   : > { %v2883_v25 = vmul.f32 %v2879_v6, %v5209_v37  ;;  %v2884_v59 = vmul.f32 %v2879_v6, %v5207_v18  ;;  %v2886_v18 = vld [vmem:[%s5765_s11 + $0x8] sm:$0xff]  ;;  %v2892_v37 = vpop.permute.xlu1 %2891 }
 0x69e   : > { %2933 = vmatprep.subr.mxu0 %v2884_v59 }
 0x69f   : > { %2934 = vmatpush1.msra.mxu0 %v2883_v25  ;;  %v2897_v49 = vpop.permute.xlu0 %2896 }
 0x6a0   : > { %2935 = vmatprep.subr.mxu0 %v2882_v48  ;;  %v2987_v16 = vpop.permute.xlu1 %2986 }
 0x6a1   : > { %2936 = vmatpush1.msra.mxu0 %v2881_v21 }
 0x6a2   : > { %3930 = vmatmul.mubr.msk.f32.vlgmr.msra.gmra.mxu0 %vm1838_vm3, %v2885_v33 }
 0x6a3   : > { %2975 = vmatprep.mubr.f32.mxu0 %v5999_v52  ;;  %v2992_v51 = vpop.permute.xlu0 %2991 }
 0x6a6   : > { %3931 = vmatmul.mubr.msk.f32.gmra.mxu0 %vm1838_vm3, %v2886_v18 }
 0x6a7   : > { %3303 = vmatprep.mubr.f32.mxu0 %v5999_v52 }
 0x762   : > { %v2971_v15 = vpop.f32.mrf.mxu0 }
 0x763   : > { %v2972_v62 = vadd.f32 %v2971_v15, %v2892_v37 }
 0x764   : > { %v2973_v39 = vpop.f32.mrf.mxu0 }
 0x765   : > { %v2994_v61 = vmul.f32 %v2987_v16, %v2972_v62  ;;  %v2974_v28 = vadd.f32 %v2973_v39, %v2892_v37 }
 0x766   : > { %v2977_v2 = vpop.f32.mrf.mxu0 }
 0x767   : > { %v2995_v22 = vmul.f32 %v2987_v16, %v2974_v28  ;;  %v2978_v14 = vadd.f32 %v2977_v2, %v2897_v49  ;;  %v5461_v56 = vadd.f32 %v2994_v61, %v6001_v45 }
 0x768   : > { %v2979_v17 = vpop.f32.mrf.mxu0 }
 0x769   : > { %v2996_v55 = vmul.f32 %v2992_v51, %v2978_v14  ;;  %v2980_v1 = vadd.f32 %v2979_v17, %v2897_v49  ;;  %v5464_v31 = vadd.f32 %v2995_v22, %v6002_v20  ;;  %v3022_v0 = vmul.f32 %v5461_v56, %v5461_v56  ;;  %v3066_v22 = vpop.permute.xlu1 %3065 }
 0x76b   : > { %v5467_v60 = vadd.f32 %v2996_v55, %v6003_v8  ;;  %v2997_v19 = vmul.f32 %v2992_v51, %v2980_v1  ;;  %v3023_v7 = vmul.f32 %v5464_v31, %v5464_v31  ;;  %v3061_v1 = vpop.permute.xlu0 %3060 }
 0x76d   : > { %v3006_v35 = vadd.f32 %v5467_v60, %v5461_v56  ;;  %v3024_v10 = vmul.f32 %v5467_v60, %v5467_v60  ;;  %v5476_v58 = vadd.f32 %v2997_v19, %v6004_v46  ;;  %v3080_v46 = vpop.permute.xlu1 %3079 }
 0x76f   : > { %v3007_v54 = vrot.slane %v3006_v35, 4  ;;  %v3026_v47 = vadd.f32 %v3024_v10, %v3022_v0  ;;  %v3013_v4 = vadd.f32 %v5476_v58, %v5464_v31  ;;  %v3025_v44 = vmul.f32 %v5476_v58, %v5476_v58 }
 0x771   : > { %v3008_v11 = vadd.f32 %v3007_v54, %v3006_v35  ;;  %v3027_v27 = vrot.slane %v3026_v47, 4  ;;  %v3014_v38 = vrot.slane %v3013_v4, 4  ;;  %v3033_v32 = vadd.f32 %v3025_v44, %v3023_v7 }
 0x773   : > { %v3009_v40 = vrot.slane %v3008_v11, 2  ;;  %v3028_v23 = vadd.f32 %v3027_v27, %v3026_v47  ;;  %v3015_v24 = vadd.f32 %v3014_v38, %v3013_v4  ;;  %v3034_v41 = vrot.slane %v3033_v32, 4  ;;  %v3075_v47 = vpop.permute.xlu0 %3074  ;;  %v3086_v27 = vld [vmem:[%s5770_s16] sm:$0xff]  ;;  %v3087_v38 = vld [vmem:[%s5770_s16 + $0x8] sm:$0xff] }
 0x775   : > { %v3010_v9 = vadd.f32 %v3009_v40, %v3008_v11  ;;  %v3029_v5 = vrot.slane %v3028_v23, 2  ;;  %v3016_v36 = vrot.slane %v3015_v24, 2  ;;  %v3035_v50 = vadd.f32 %v3034_v41, %v3033_v32  ;;  %v3088_v32 = vld [vmem:[%s5770_s16 + $0x10] sm:$0xff]  ;;  %v3089_v40 = vld [vmem:[%s5770_s16 + $0x18] sm:$0xff] }
 0x777   : > { %v3011_v57 = vrot.slane %v3010_v9, 1  ;;  %v3030_v3 = vadd.f32 %v3029_v5, %v3028_v23  ;;  %v3017_v30 = vadd.f32 %v3016_v36, %v3015_v24  ;;  %v3036_v29 = vrot.slane %v3035_v50, 2  ;;  %v3112_v5 = vpop.permute.xlu0 %3111 }
 0x779   : > { %v3012_v34 = vadd.f32 %v3011_v57, %v3010_v9  ;;  %v3031_v63 = vrot.slane %v3030_v3, 1  ;;  %v3037_v53 = vadd.f32 %v3036_v29, %v3035_v50  ;;  %v3018_v26 = vrot.slane %v3017_v30, 1  ;;  %v3102_v50 = vpop.permute.xlu1 %3101 }
 0x77b   : > { %v3020_v6 = vmul.f32 0.0625, %v3012_v34  ;;  %v3032_v25 = vadd.f32 %v3031_v63, %v3030_v3  ;;  %v3038_v59 = vrot.slane %v3037_v53, 1  ;;  %v3019_v48 = vadd.f32 %v3018_v26, %v3017_v30  ;;  %v3107_v30 = vpop.permute.xlu0 %3106 }
 0x77d   : > { %v3040_v21 = vmul.f32 0.0625, %v3032_v25  ;;  %v3042_v33 = vmul.f32 %v3020_v6, %v3020_v6  ;;  %v3039_v18 = vadd.f32 %v3038_v59, %v3037_v53  ;;  %v3021_v37 = vmul.f32 0.0625, %v3019_v48 }
 0x77e   : > { %v3048_v28 = vsub.f32 %v5467_v60, %v3020_v6  ;;  %v3046_v51 = vsub.f32 %v5461_v56, %v3020_v6  ;;  %v3097_v6 = vpop.permute.xlu1 %3096 }
 0x77f   : > { %v3044_v49 = vsub.f32 %v3040_v21, %v3042_v33  ;;  %v3041_v15 = vmul.f32 0.0625, %v3039_v18  ;;  %v3043_v62 = vmul.f32 %v3021_v37, %v3021_v37  ;;  %v3049_v17 = vsub.f32 %v5476_v58, %v3021_v37 }
 0x780   : > { %v3047_v45 = vsub.f32 %v5464_v31, %v3021_v37 }
 0x781   : > { %v3050_v16 = vadd.f32 1e-06, %v3044_v49  ;;  %v3045_v39 = vsub.f32 %v3041_v15, %v3043_v62  ;;  %v3219_v15 = vld [vmem:[%s5772_s18] sm:$0xff]  ;;  %v3220_v62 = vld [vmem:[%s5772_s18 + $0x8] sm:$0xff] }
 0x783   : > { %4025 = vrsqrt.f32 %v3050_v16  ;;  %v3051_v61 = vadd.f32 1e-06, %v3045_v39  ;;  %v3231_v16 = vpop.permute.xlu1 %3230 }
 0x785   : > { %4027 = vrsqrt.f32 %v3051_v61  ;;  %v3226_v61 = vpop.permute.xlu0 %3225 }
 0x790   : > { %v4026_v2 = vpop.eup %4025 }
 0x791   : > { %v3056_v14 = vmul.f32 %v4026_v2, %v3048_v28  ;;  %v3054_v20 = vmul.f32 %v4026_v2, %v3046_v51  ;;  %v3326_v51 = vpop.permute.xlu1 %3325 }
 0x792   : > { %v4028_v55 = vpop.eup %4027 }
 0x793   : > { %v3057_v8 = vmul.f32 %v4028_v55, %v3049_v17  ;;  %v3055_v19 = vmul.f32 %v4028_v55, %v3047_v45  ;;  %v3070_v0 = vmul.f32 %v3066_v22, %v3056_v14  ;;  %v3068_v7 = vmul.f32 %v3061_v1, %v3054_v20  ;;  %v3321_v20 = vpop.permute.xlu0 %3320 }
 0x795   : > { %v3071_v35 = vmul.f32 %v3066_v22, %v3057_v8  ;;  %v3069_v10 = vmul.f32 %v3061_v1, %v3055_v19  ;;  %v3084_v4 = vadd.f32 %v3080_v46, %v3070_v0  ;;  %v3082_v11 = vadd.f32 %v3075_v47, %v3068_v7 }
 0x797   : > { %v3085_v54 = vadd.f32 %v3080_v46, %v3071_v35  ;;  %v3083_v44 = vadd.f32 %v3075_v47, %v3069_v10 }
 0x799   : > { %3154 = vmatprep.subr.mxu1 %v3085_v54 }
 0x79a   : > { %3155 = vmatpush1.msra.mxu1 %v3084_v4 }
 0x79b   : > { %3156 = vmatprep.subr.mxu1 %v3083_v44 }
 0x79c   : > { %3157 = vmatpush1.msra.mxu1 %v3082_v11 }
 0x79d   : > { %3932 = vmatmul.mubr.msk.f32.vlgmr.msra.gmra.mxu1 %vm1838_vm3, %v3086_v27  ;;  %v5610_v27 = vld [vmem:[%s5775_s21] sm:$0x77] }
 0x79e   : > { %3196 = vmatprep.mubr.f32.mxu1 %v5999_v52 }
 0x7a1   : > { %3933 = vmatmul.mubr.msk.f32.gmra.mxu1 %vm1838_vm3, %v3087_v38  ;;  %v3726_v38 = vcombine.high %v5610_v27, %v5610_v27 }
 0x7a2   : > { %3202 = vmatprep.mubr.f32.mxu1 %v5999_v52 }
 0x7a5   : > { %3934 = vmatmul.mubr.msk.f32.gmra.mxu1 %vm1838_vm3, %v3088_v32  ;;  %v3719_v32 = vld [vmem:[%s5776_s22] sm:$0x7] }
 0x7a6   : > { %3208 = vmatprep.mubr.f32.mxu1 %v5999_v52 }
 0x7a9   : > { %3935 = vmatmul.mubr.msk.f32.gmra.mxu1 %vm1838_vm3, %v3089_v40 }
 0x7aa   : > { %3938 = vmatprep.mubr.msk.f32.mxu1 %vm1838_vm3, %v3726_v38 }
 0x85d   : > { %v3192_v23 = vpop.f32.mrf.mxu1 }
 0x85e   : > { %v3193_v33 = vadd.f32 %v3192_v23, %v3097_v6 }
 0x85f   : > { %v3194_v24 = vpop.f32.mrf.mxu1 }
 0x860   : > { %v3195_v48 = vadd.f32 %v3194_v24, %v3097_v6 }
 0x861   : > { %v3198_v41 = vpop.f32.mrf.mxu1 }
 0x862   : > { %v3199_v25 = vadd.f32 %v3198_v41, %v3102_v50 }
 0x863   : > { %v3200_v9 = vpop.f32.mrf.mxu1 }
 0x864   : > { %v3201_v63 = vadd.f32 %v3200_v9, %v3102_v50 }
 0x865   : > { %v3204_v36 = vpop.f32.mrf.mxu1 }
 0x866   : > { %v3205_v59 = vadd.f32 %v3204_v36, %v3107_v30 }
 0x867   : > { %v3206_v57 = vpop.f32.mrf.mxu1 }
 0x868   : > { %v3207_v53 = vadd.f32 %v3206_v57, %v3107_v30  ;;  %v3215_v49 = vmul.f32 %v3205_v59, %v3193_v33 }
 0x869   : > { %v3210_v3 = vpop.f32.mrf.mxu1 }
 0x86a   : > { %v3211_v29 = vadd.f32 %v3210_v3, %v3112_v5  ;;  %v3216_v37 = vmul.f32 %v3207_v53, %v3195_v48 }
 0x86b   : > { %v3212_v34 = vpop.f32.mrf.mxu1 }
 0x86c   : > { %v3213_v26 = vadd.f32 %v3212_v34, %v3112_v5  ;;  %v3217_v18 = vmul.f32 %v3211_v29, %v3199_v25 }
 0x86e   : > { %v3218_v21 = vmul.f32 %v3213_v26, %v3201_v63 }
 0x870   : > { %3267 = vmatprep.subr.mxu0 %v3218_v21 }
 0x871   : > { %3268 = vmatpush1.msra.mxu0 %v3217_v18 }
 0x872   : > { %3269 = vmatprep.subr.mxu0 %v3216_v37 }
 0x873   : > { %3270 = vmatpush1.msra.mxu0 %v3215_v49 }
 0x874   : > { %3936 = vmatmul.mubr.msk.f32.vlgmr.msra.gmra.mxu0 %vm1838_vm3, %v3219_v15 }
 0x875   : > { %3309 = vmatprep.mubr.f32.mxu0 %v5999_v52 }
 0x878   : > { %3937 = vmatmul.mubr.msk.f32.gmra.mxu0 %vm1838_vm3, %v3220_v62 }
 0x934   : > { %v3305_v39 = vpop.f32.mrf.mxu0 }
 0x935   : > { %v3306_v22 = vadd.f32 %v3305_v39, %v3226_v61 }
 0x936   : > { %v3307_v28 = vpop.f32.mrf.mxu0 }
 0x937   : > { %v3308_v45 = vadd.f32 %v3307_v28, %v3226_v61  ;;  %v3328_v52 = vmul.f32 %v3321_v20, %v3306_v22 }
 0x938   : > { %v3311_v2 = vpop.f32.mrf.mxu0 }
 0x939   : > { %v3312_v14 = vadd.f32 %v3311_v2, %v3231_v16  ;;  %v3329_v0 = vmul.f32 %v3321_v20, %v3308_v45  ;;  %v3332_v10 = vadd.f32 %v3328_v52, %v5461_v56 }
 0x93a   : > { %v3313_v17 = vpop.f32.mrf.mxu0 }
 0x93b   : > { %v3330_v55 = vmul.f32 %v3326_v51, %v3312_v14  ;;  %v3314_v1 = vadd.f32 %v3313_v17, %v3231_v16  ;;  %v3333_v46 = vadd.f32 %v3329_v0, %v5464_v31 }
 0x93d   : > { %v3334_v8 = vadd.f32 %v3330_v55, %v5467_v60  ;;  %v3331_v19 = vmul.f32 %v3326_v51, %v3314_v1 }
 0x93f   : > { %v3335_v35 = vadd.f32 %v3331_v19, %v5476_v58  ;;  %3344 = vrot.lane.b32.xlu1 %v3334_v8, %s5895_s26 }
 0x941   : > { %3346 = vrot.lane.b32.xlu0 %v3335_v35, %s5895_s26 }
 0x943   : > { %3340 = vrot.lane.b32.xlu1 %v3332_v10, %s5895_s26 }
 0x945   : > { %3342 = vrot.lane.b32.xlu0 %v3333_v46, %s5895_s26 }
 0x9b1   : > { %v3345_v7 = vpop.permute.xlu1 %3344 }
 0x9b2   : > { %3359 = vst.msk [vmem:[#allocation2 + $0x18] sm:$0xff] %vm1980_vm5, %v3345_v7 }
 0x9b3   : > { %v3347_v60 = vpop.permute.xlu0 %3346 }
 0x9b4   : > { %v5526_v54 = vsel %vm740_vm2, %v3345_v7, %v3347_v60  ;;  %3361 = vst.msk [vmem:[#allocation2 + $0x28] sm:$0xff] %vm740_vm2, %v3347_v60 }
 0x9b5   : > { %v3341_v58 = vpop.permute.xlu1 %3340 }
 0x9b6   : > { %3356 = vst.msk [vmem:[#allocation2] sm:$0xff] %vm1980_vm5, %v3341_v58 }
 0x9b7   : > { %v3343_v56 = vpop.permute.xlu0 %3342 }
 0x9b8   : > { %v5531_v47 = vsel %vm740_vm2, %v3341_v58, %v3343_v56  ;;  %3358 = vst.msk [vmem:[#allocation2 + $0x10] sm:$0xff] %vm740_vm2, %v3343_v56 }
 0x9b9   : > { %3357 = vst [vmem:[#allocation2 + $0x8] sm:$0xff] %v5531_v47  ;;  %v5560_v44 = vld [vmem:[#allocation2 + $0x18] sm:$0xff] }
 0x9bb   : > { %v3611_v11 = vld [vmem:[#allocation2 + $0x28] sm:$0xff] }
 0x9bd   : > { %v5535_v31 = vld [vmem:[#allocation2] sm:$0xff] }
 0x9be   : > { %3618 = vrot.lane.b32.xlu0 %v5535_v31, %s5918_s3 }
 0x9bf   : > { %v3608_v4 = vld [vmem:[#allocation2 + $0x10] sm:$0xff] }
 0x9c0   : > { %3622 = vrot.lane.b32.xlu1 %v3608_v4, %s5918_s3 }
 0x9c2   : > { %3578 = vrot.lane.b32.xlu0 %v5535_v31, %s5914_s1 }
 0x9c4   : > { %3582 = vrot.lane.b32.xlu1 %v3608_v4, %s5914_s1 }
 0x9c6   : > { %3538 = vrot.lane.b32.xlu0 %v5535_v31, %s5912_s6 }
 0x9c8   : > { %3542 = vrot.lane.b32.xlu1 %v3608_v4, %s5912_s6 }
 0x9ca   : > { %3502 = vrot.lane.b32.xlu0 %v5535_v31, %s5916_s0 }
 0x9cc   : > { %3506 = vrot.lane.b32.xlu1 %v3608_v4, %s5916_s0 }
 0x9ce   : > { %3462 = vrot.lane.b32.xlu0 %v5535_v31, %s5910_s4 }
 0x9d0   : > { %3466 = vrot.lane.b32.xlu1 %v3608_v4, %s5910_s4 }
 0x9d2   : > { %3422 = vrot.lane.b32.xlu0 %v5535_v31, %s5908_s23 }
 0x9d4   : > { %3426 = vrot.lane.b32.xlu1 %v3608_v4, %s5908_s23 }
 0x9d6   : > { %3386 = vrot.lane.b32.xlu0 %v5535_v31, %s5915_s28 }
 0x9d8   : > { %3390 = vrot.lane.b32.xlu1 %v3608_v4, %s5915_s28 }
 0x9da   : > { %3620 = vrot.lane.b32.xlu0 %v5531_v47, %s5918_s3 }
 0x9dc   : > { %3624 = vrot.lane.b32.xlu1 %v5560_v44, %s5918_s3 }
 0x9de   : > { %3580 = vrot.lane.b32.xlu0 %v5531_v47, %s5914_s1 }
 0x9e0   : > { %3584 = vrot.lane.b32.xlu1 %v5560_v44, %s5914_s1 }
 0x9e2   : > { %3540 = vrot.lane.b32.xlu0 %v5531_v47, %s5912_s6 }
 0x9e4   : > { %3544 = vrot.lane.b32.xlu1 %v5560_v44, %s5912_s6 }
 0x9e6   : > { %3504 = vrot.lane.b32.xlu0 %v5531_v47, %s5916_s0 }
 0x9e8   : > { %3508 = vrot.lane.b32.xlu1 %v5560_v44, %s5916_s0 }
 0x9ea   : > { %3464 = vrot.lane.b32.xlu0 %v5531_v47, %s5910_s4 }
 0x9ec   : > { %3468 = vrot.lane.b32.xlu1 %v5560_v44, %s5910_s4 }
 0x9ee   : > { %3424 = vrot.lane.b32.xlu0 %v5531_v47, %s5908_s23 }
 0x9f0   : > { %3428 = vrot.lane.b32.xlu1 %v5560_v44, %s5908_s23 }
 0x9f2   : > { %3388 = vrot.lane.b32.xlu0 %v5531_v47, %s5915_s28 }
 0x9f4   : > { %3392 = vrot.lane.b32.xlu1 %v5560_v44, %s5915_s28 }
 0x9f6   : > { %3628 = vrot.lane.b32.xlu0 %v3611_v11, %s5918_s3 }
 0x9f8   : > { %3626 = vrot.lane.b32.xlu1 %v5526_v54, %s5918_s3 }
 0x9fa   : > { %3588 = vrot.lane.b32.xlu0 %v3611_v11, %s5914_s1 }
 0x9fc   : > { %3586 = vrot.lane.b32.xlu1 %v5526_v54, %s5914_s1 }
 0x9fe   : > { %3548 = vrot.lane.b32.xlu0 %v3611_v11, %s5912_s6 }
 0xa00   : > { %3546 = vrot.lane.b32.xlu1 %v5526_v54, %s5912_s6  ;;  %s6006_s6 = sld [smem:[#allocation5_spill]] }
 0xa02   : > { %3512 = vrot.lane.b32.xlu0 %v3611_v11, %s5916_s0 }
 0xa04   : > { %3510 = vrot.lane.b32.xlu1 %v5526_v54, %s5916_s0 }
 0xa06   : > { %3472 = vrot.lane.b32.xlu0 %v3611_v11, %s5910_s4 }
 0xa08   : > { %3470 = vrot.lane.b32.xlu1 %v5526_v54, %s5910_s4  ;;  %s6005_s4 = sld [smem:[#allocation6_spill]] }
 0xa0a   : > { %3432 = vrot.lane.b32.xlu0 %v3611_v11, %s5908_s23 }
 0xa0c   : > { %3430 = vrot.lane.b32.xlu1 %v5526_v54, %s5908_s23 }
 0xa0e   : > { %3396 = vrot.lane.b32.xlu0 %v3611_v11, %s5915_s28 }
 0xa10   : > { %3394 = vrot.lane.b32.xlu1 %v5526_v54, %s5915_s28 }
 0xa12   : > { %3664 = vrot.lane.b32.xlu0 %v3611_v11, %s5913_s5 }
 0xa14   : > { %3660 = vrot.lane.b32.xlu1 %v5560_v44, %s5913_s5 }
 0xa16   : > { %3656 = vrot.lane.b32.xlu0 %v5531_v47, %s5913_s5 }
 0xa18   : > { %3662 = vrot.lane.b32.xlu1 %v5526_v54, %s5913_s5 }
 0xa1a   : > { %3654 = vrot.lane.b32.xlu0 %v5535_v31, %s5913_s5 }
 0xa1c   : > { %3658 = vrot.lane.b32.xlu1 %v3608_v4, %s5913_s5  ;;  %s6008_s5 = sshll.u32 %s6006_s6, 3 }
 0xa1d   : > { %s710_s9 = scalar_lea.vmem %s6009_s10, %s6008_s5 }
 0xa20   : > { %3722 = vperm.xlu1 %4018, %v3719_v32  }
 0xa30   : > { %v3619_v40 = vpop.permute.xlu0 %3618 }
 0xa32   : > { %v3623_v23 = vpop.permute.xlu1 %3622 }
 0xa34   : > { %v3579_v24 = vpop.permute.xlu0 %3578 }
 0xa36   : > { %v3583_v41 = vpop.permute.xlu1 %3582 }
 0xa38   : > { %v3539_v9 = vpop.permute.xlu0 %3538 }
 0xa3a   : > { %v3543_v5 = vpop.permute.xlu1 %3542 }
 0xa3c   : > { %v3503_v36 = vpop.permute.xlu0 %3502 }
 0xa3e   : > { %v3507_v50 = vpop.permute.xlu1 %3506 }
 0xa40   : > { %v5630_v57 = vpop.permute.xlu0 %3462 }
 0xa42   : > { %v5632_v3 = vpop.permute.xlu1 %3466 }
 0xa44   : > { %v5634_v30 = vpop.permute.xlu0 %3422 }
 0xa46   : > { %v5636_v29 = vpop.permute.xlu1 %3426 }
 0xa48   : > { %v5638_v34 = vpop.permute.xlu0 %3386 }
 0xa4a   : > { %v5640_v63 = vpop.permute.xlu1 %3390 }
 0xa4c   : > { %v3621_v53 = vpop.permute.xlu0 %3620 }
 0xa4d   : > { %v3631_v14 = vsel %vm1506_vm0, %v3621_v53, %v3623_v23  ;;  %v3630_v51 = vsel %vm1506_vm0, %v3619_v40, %v3621_v53 }
 0xa4e   : > { %v3625_v26 = vpop.permute.xlu1 %3624 }
 0xa50   : > { %v3581_v6 = vpop.permute.xlu0 %3580 }
 0xa51   : > { %v3591_v20 = vsel %vm1397_vm15, %v3581_v6, %v3583_v41  ;;  %v3590_v52 = vsel %vm1397_vm15, %v3579_v24, %v3581_v6 }
 0xa52   : > { %v3585_v25 = vpop.permute.xlu1 %3584 }
 0xa54   : > { %v3541_v59 = vpop.permute.xlu0 %3540 }
 0xa55   : > { %v3551_v10 = vsel %vm1288_vm13, %v3541_v59, %v3543_v5  ;;  %v3550_v46 = vsel %vm1288_vm13, %v3539_v9, %v3541_v59 }
 0xa56   : > { %v3545_v48 = vpop.permute.xlu1 %3544 }
 0xa58   : > { %v3505_v21 = vpop.permute.xlu0 %3504 }
 0xa59   : > { %v3515_v4 = vsel %vm1185_vm14, %v3505_v21, %v3507_v50  ;;  %v3514_v11 = vsel %vm1185_vm14, %v3503_v36, %v3505_v21 }
 0xa5a   : > { %v3509_v33 = vpop.permute.xlu1 %3508 }
 0xa5c   : > { %v3465_v18 = vpop.permute.xlu0 %3464 }
 0xa5d   : > { %v3475_v24 = vsel %vm1076_vm10, %v3465_v18, %v5632_v3  ;;  %v3474_v41 = vsel %vm1076_vm10, %v5630_v57, %v3465_v18 }
 0xa5e   : > { %v3469_v37 = vpop.permute.xlu1 %3468 }
 0xa60   : > { %v5642_v49 = vpop.permute.xlu0 %3424 }
 0xa61   : > { %v3435_v3 = vsel %vm967_vm9, %v5642_v49, %v5636_v29  ;;  %v3434_v57 = vsel %vm967_vm9, %v5634_v30, %v5642_v49  ;;  %v4029_v49 = vld [vmem:[%s6005_s4] sm:$0x77] }
 0xa62   : > { %v3429_v15 = vpop.permute.xlu1 %3428 }
 0xa64   : > { %v5644_v62 = vpop.permute.xlu0 %3388 }
 0xa65   : > { %v3398_v30 = vsel %vm773_vm8, %v5638_v34, %v5644_v62 }
 0xa66   : > { %v5646_v16 = vpop.permute.xlu1 %3392 }
 0xa68   : > { %v3629_v39 = vpop.permute.xlu0 %3628 }
 0xa6a   : > { %v3627_v61 = vpop.permute.xlu1 %3626 }
 0xa6b   : > { %v3632_v28 = vsel %vm1506_vm0, %v3625_v26, %v3627_v61  ;;  %v3633_v2 = vsel %vm1506_vm0, %v3627_v61, %v3629_v39 }
 0xa6c   : > { %v3589_v22 = vpop.permute.xlu0 %3588  ;;  %3729 = vmatprep.subr.mxu1 %v3633_v2 }
 0xa6d   : > { %3730 = vmatpush1.msra.mxu1 %v3632_v28 }
 0xa6e   : > { %3731 = vmatprep.subr.mxu1 %v3631_v14  ;;  %v3587_v17 = vpop.permute.xlu1 %3586 }
 0xa6f   : > { %v3592_v45 = vsel %vm1397_vm15, %v3585_v25, %v3587_v17  ;;  %v3593_v55 = vsel %vm1397_vm15, %v3587_v17, %v3589_v22  ;;  %3732 = vmatpush1.msra.mxu1 %v3630_v51  ;;  %v3399_v25 = vsel %vm773_vm8, %v5644_v62, %v5640_v63  ;;  %v6007_v62 = vld [vmem:[#allocation7_spill] sm:$0xff] }
 0xa70   : > { %v3549_v1 = vpop.permute.xlu0 %3548  ;;  %3943 = vmatprep.subr.msk.mxu1 %vm4230_vm4, %v3593_v55 }
 0xa71   : > { %3944 = vmatpush1.msk.msra.mxu1 %vm4236_vm6, %v3592_v45 }
 0xa72   : > { %3945 = vmatprep.subr.msk.mxu1 %vm4230_vm4, %v3591_v20  ;;  %v3547_v8 = vpop.permute.xlu1 %3546 }
 0xa73   : > { %v3552_v19 = vsel %vm1288_vm13, %v3545_v48, %v3547_v8  ;;  %v3553_v0 = vsel %vm1288_vm13, %v3547_v8, %v3549_v1  ;;  %3946 = vmatpush1.msk.msra.mxu1 %vm4236_vm6, %v3590_v52 }
 0xa74   : > { %v3513_v35 = vpop.permute.xlu0 %3512  ;;  %3947 = vmatprep.subr.msk.mxu1 %vm4321_vm12, %v3553_v0 }
 0xa75   : > { %3948 = vmatpush1.msk.msra.mxu1 %vm4315_vm11, %v3552_v19 }
 0xa76   : > { %3949 = vmatprep.subr.msk.mxu1 %vm4321_vm12, %v3551_v10  ;;  %v3511_v7 = vpop.permute.xlu1 %3510 }
 0xa77   : > { %v3516_v60 = vsel %vm1185_vm14, %v3509_v33, %v3511_v7  ;;  %3950 = vmatpush1.msk.msra.mxu1 %vm4315_vm11, %v3550_v46  ;;  %v3517_v58 = vsel %vm1185_vm14, %v3511_v7, %v3513_v35 }
 0xa78   : > { %v3473_v56 = vpop.permute.xlu0 %3472  ;;  %3741 = vmatprep.subr.mxu1 %v3517_v58 }
 0xa79   : > { %3742 = vmatpush1.msra.mxu1 %v3516_v60 }
 0xa7a   : > { %3743 = vmatprep.subr.mxu1 %v3515_v4  ;;  %v3471_v38 = vpop.permute.xlu1 %3470 }
 0xa7b   : > { %v3476_v32 = vsel %vm1076_vm10, %v3469_v37, %v3471_v38  ;;  %v3477_v40 = vsel %vm1076_vm10, %v3471_v38, %v3473_v56  ;;  %3744 = vmatpush1.msra.mxu1 %v3514_v11 }
 0xa7c   : > { %v3433_v23 = vpop.permute.xlu0 %3432  ;;  %3951 = vmatprep.subr.msk.mxu1 %vm4230_vm4, %v3477_v40 }
 0xa7d   : > { %3952 = vmatpush1.msk.msra.mxu1 %vm4236_vm6, %v3476_v32 }
 0xa7e   : > { %3953 = vmatprep.subr.msk.mxu1 %vm4230_vm4, %v3475_v24  ;;  %v3431_v9 = vpop.permute.xlu1 %3430 }
 0xa7f   : > { %v3436_v5 = vsel %vm967_vm9, %v3429_v15, %v3431_v9  ;;  %v3437_v36 = vsel %vm967_vm9, %v3431_v9, %v3433_v23  ;;  %3954 = vmatpush1.msk.msra.mxu1 %vm4236_vm6, %v3474_v41 }
 0xa80   : > { %v3397_v50 = vpop.permute.xlu0 %3396  ;;  %3955 = vmatprep.subr.msk.mxu1 %vm4321_vm12, %v3437_v36 }
 0xa81   : > { %3956 = vmatpush1.msk.msra.mxu1 %vm4315_vm11, %v3436_v5 }
 0xa82   : > { %3957 = vmatprep.subr.msk.mxu1 %vm4321_vm12, %v3435_v3  ;;  %v3395_v53 = vpop.permute.xlu1 %3394 }
 0xa83   : > { %v3400_v26 = vsel %vm773_vm8, %v5646_v16, %v3395_v53  ;;  %3958 = vmatpush1.msk.msra.mxu1 %vm4315_vm11, %v3434_v57  ;;  %v3401_v6 = vsel %vm773_vm8, %v3395_v53, %v3397_v50 }
 0xa84   : > { %v3665_v29 = vpop.permute.xlu0 %3664  ;;  %3753 = vmatprep.subr.mxu1 %v3401_v6 }
 0xa85   : > { %3754 = vmatpush1.msra.mxu1 %v3400_v26 }
 0xa86   : > { %3755 = vmatprep.subr.mxu1 %v3399_v25  ;;  %v3661_v59 = vpop.permute.xlu1 %3660 }
 0xa87   : > { %3756 = vmatpush1.msra.mxu1 %v3398_v30 }
 0xa88   : > { %v3657_v48 = vpop.permute.xlu0 %3656  ;;  %3959 = vmatprep.subr.msk.mxu1 %vm4230_vm4, %v5526_v54 }
 0xa89   : > { %3960 = vmatpush1.msk.msra.mxu1 %vm4236_vm6, %v5560_v44 }
 0xa8a   : > { %3961 = vmatprep.subr.msk.mxu1 %vm4230_vm4, %v5531_v47  ;;  %v3663_v63 = vpop.permute.xlu1 %3662 }
 0xa8b   : > { %v3668_v21 = vsel %vm1609_vm1, %v3661_v59, %v3663_v63  ;;  %v3669_v34 = vsel %vm1609_vm1, %v3663_v63, %v3665_v29  ;;  %3962 = vmatpush1.msk.msra.mxu1 %vm4236_vm6, %v5535_v31 }
 0xa8c   : > { %3963 = vmatprep.subr.msk.mxu1 %vm4321_vm12, %v3669_v34  ;;  %v3655_v54 = vpop.permute.xlu0 %3654 }
 0xa8d   : > { %3964 = vmatpush2.msk.msra.mxu1 %vm4315_vm11, %v3668_v21  ;;  %v3666_v44 = vsel %vm1609_vm1, %v3655_v54, %v3657_v48 }
 0xa8e   : > { %v3659_v12 = vpop.permute.xlu1 %3658 }
 0xa8f   : > { %v3667_v47 = vsel %vm1609_vm1, %v3657_v48, %v3659_v12 }
 0xa90   : > { %3965 = vmatprep.subr.msk.mxu1 %vm4321_vm12, %v3667_v47 }
 0xa91   : > { %3966 = vmatpush2.msk.msra.mxu1 %vm4315_vm11, %v3666_v44 }
 0xa92   : > { %3794 = vmatmul.mubr.f32.vlgmr.msra.gmra.mxu1 %v5610_v27 }
 0xa9b   : > { %v3723_v13 = vpop.permute.xlu1 %3722 }
 0xb52   : > { %v3795_v31 = vpop.f32.mrf.mxu1 }
 0xb53   : > { %v3796_v33 = vadd.f32 %v3795_v31, %v3723_v13 }
 0xb54   : > { %v3797_v18 = vpop.f32.mrf.mxu1 }
 0xb55   : > { %v3798_v37 = vadd.f32 %v3797_v18, %v3723_v13  ;;  %v3801_v15 = vadd.f32 %v4029_v49, %v3796_v33 }
 0xb57   : > { %v3802_v16 = vadd.f32 %v3798_v37, %v6007_v62 }
 0xb59   : > { %v3805_v43 = vcombine.low %v3801_v15, %v3802_v16 }
 0xb5b   : > { %3807 = vst [vmem:[%s710_s9] sm:$0x77] %v3805_v43 }
 0xb5c PF: > { %s6010_s2 = sld [smem:[#allocation4_spill]] }
 0xb62   : > { %s33_s4 = sadd.s32 1, %s6010_s2  }
 0xb63   : > { %p30_p4 = scmp.ge.s32.totalorder %s33_s4, 4  }
 0xb65   :  { %32 = sbr.rel (!%p30_p4) target bundleno = 13 (0xd), region = 150 }

</bundles_post_ra>
